<compile_context>
chip_gen: v7x
topology: tpu7x:2x2x1
jax: 0.10.0
libtpu: 0.0.40
codegen_flags: <defaults>
</compile_context>

<pallas_src>
import functools
import jax
import jax.numpy as jnp
from jax.experimental import pallas as pl
from jax.experimental.pallas import tpu as pltpu


# ------------------------------ fused kernel ---------------------------------
def _encoder_kernel(xcat_ref, w1_ref, b1_ref, w2_ref, b2_ref,
                    g_ref, bta_ref, wq_ref, bq_ref, wk_ref, bk_ref,
                    wv_ref, bv_ref, wo_ref, bo_ref,
                    y_ref, attn_ref, *, B, M, E, H, L, eps):
    d = E // H

    # ---- fused subnetwork embedders (block-diagonal weights, 2 matmuls) ----
    h1 = jnp.dot(xcat_ref[...], w1_ref[...], preferred_element_type=jnp.float32) + b1_ref[...]
    h1 = jnp.maximum(h1, 0.0)                                              # ReLU
    tok = jnp.dot(h1, w2_ref[...], preferred_element_type=jnp.float32) + b2_ref[...]   # (B, M*E)
    # (B, M*E) -> (B*M, E) token rows, ordered (batch, subnetwork)
    x = jnp.concatenate([tok[b:b + 1, m * E:(m + 1) * E]
                         for b in range(B) for m in range(M)], axis=0)

    # diag mask built once (hoisted out of the layer loop)
    row = jax.lax.broadcasted_iota(jnp.int32, (M, M), 0)
    col = jax.lax.broadcasted_iota(jnp.int32, (M, M), 1)
    diag = row == col

    def to_heads(t):
        # (B*M, E) -> (B*H, M, d); group g = b*H + h (heads on the leading axis)
        return jnp.stack([t[b * M:(b + 1) * M, h * d:(h + 1) * d]
                          for b in range(B) for h in range(H)], axis=0)

    attn_chunks = []
    for l in range(L):                                   # static unroll; weights stay in VMEM
        # LayerNorm (biased variance, eps inside rsqrt — matches nn.LayerNorm)
        mu = jnp.mean(x, axis=-1, keepdims=True)
        var = jnp.mean(jnp.square(x - mu), axis=-1, keepdims=True)
        norm = (x - mu) * jax.lax.rsqrt(var + eps) * g_ref[l] + bta_ref[l]

        q = jnp.dot(norm, wq_ref[l], preferred_element_type=jnp.float32) + bq_ref[l]
        k = jnp.dot(norm, wk_ref[l], preferred_element_type=jnp.float32) + bk_ref[l]
        v = jnp.dot(norm, wv_ref[l], preferred_element_type=jnp.float32) + bv_ref[l]

        qh, kh, vh = to_heads(q), to_heads(k), to_heads(v)          # (B*H, M, d)

        # one batched MXU contraction covering ALL batches and heads
        s = jnp.einsum('gmd,gnd->gmn', qh, kh,
                       preferred_element_type=jnp.float32) / (d ** 0.5)
        s = jnp.where(diag, -jnp.inf, s)                            # mask self-attention
        s = s - jnp.max(s, axis=-1, keepdims=True)
        p = jnp.exp(s)
        w = p / jnp.sum(p, axis=-1, keepdims=True)                  # (B*H, M, M)
        ctx_h = jnp.einsum('gmn,gnd->gmd', w, vh,
                           preferred_element_type=jnp.float32)      # (B*H, M, d)

        # heads back onto the lane axis: (B*M, E)
        ctx = jnp.concatenate(
            [jnp.concatenate([ctx_h[b * H + h] for b in range(B)], axis=0)
             for h in range(H)], axis=-1)

        out = jnp.dot(ctx, wo_ref[l], preferred_element_type=jnp.float32) + bo_ref[l]
        x = out + x                                                 # residual

        # pack attention weights lane-dense: lane index = h*M*M + m*M + n
        rows = []
        for b in range(B):
            per_b = []
            for h in range(H):
                whb = w[b * H + h]                                  # (M, M)
                per_b.append(jnp.concatenate([whb[m:m + 1, :] for m in range(M)], axis=-1))
            rows.append(jnp.concatenate(per_b, axis=-1))            # (1, H*M*M)
        attn_chunks.append(jnp.concatenate(rows, axis=0))           # (B, H*M*M)

    y_ref[...] = x                                                  # single (B*M, E) store
    attn_ref[...] = jnp.concatenate(attn_chunks, axis=-1)           # single lane-dense store


# --------------------------------- wrapper ------------------------------------
def subnetwork_encoder_forward(xs, emb_params, mhsa_params, num_heads):
    B = xs[0].shape[0]
    M = len(xs)
    Hid = emb_params[0][0].shape[1]
    E = emb_params[0][2].shape[1]
    L = len(mhsa_params)
    H = num_heads
    Din = sum(int(f.shape[1]) for f in xs)

    # pack the M embedder MLPs into block-diagonal weights (done once, outside kernel)
    w1_bd = jnp.zeros((Din, M * Hid), jnp.float32)
    w2_bd = jnp.zeros((M * Hid, M * E), jnp.float32)
    off = 0
    for j, (w1, b1, w2, b2) in enumerate(emb_params):
        dj = int(w1.shape[0])
        w1_bd = w1_bd.at[off:off + dj, j * Hid:(j + 1) * Hid].set(w1)
        w2_bd = w2_bd.at[j * Hid:(j + 1) * Hid, j * E:(j + 1) * E].set(w2)
        off += dj
    b1_cat = jnp.concatenate([p[1] for p in emb_params], axis=-1)        # (1, M*Hid)
    b2_cat = jnp.concatenate([p[3] for p in emb_params], axis=-1)        # (1, M*E)
    xcat = jnp.concatenate(xs, axis=-1)                                  # (B, Din)

    # stack per-layer MHSA params along a leading L axis
    stk = lambda i: jnp.stack([p[i] for p in mhsa_params], axis=0)
    g, bta, wq, bq, wk, bk, wv, bv, wo, bo = (stk(i) for i in range(10))

    operands = (xcat, w1_bd, b1_cat, w2_bd, b2_cat,
                g, bta, wq, bq, wk, bk, wv, bv, wo, bo)

    def full_spec(a):
        n = a.ndim
        return pl.BlockSpec(a.shape, lambda i, _n=n: (0,) * _n)

    d = E // H
    flops = (2 * B * (Din * M * Hid + (M * Hid) * (M * E))
             + L * (4 * 2 * (B * M) * E * E + 2 * 2 * (B * H) * M * M * d))
    transcendentals = L * (B * H * M * M + B * M)
    bytes_accessed = 4 * (sum(int(a.size) for a in operands) + B * M * E + B * L * H * M * M)

    kernel = functools.partial(_encoder_kernel, B=B, M=M, E=E, H=H, L=L, eps=1e-5)
    y2d, attn_flat = pl.pallas_call(
        kernel,
        out_shape=(jax.ShapeDtypeStruct((B * M, E), jnp.float32),
                   jax.ShapeDtypeStruct((B, L * H * M * M), jnp.float32)),
        grid=(1,),
        in_specs=[full_spec(a) for a in operands],
        out_specs=(pl.BlockSpec((B * M, E), lambda i: (0, 0)),
                   pl.BlockSpec((B, L * H * M * M), lambda i: (0, 0))),
        compiler_params=pltpu.CompilerParams(dimension_semantics=("arbitrary",)),
        cost_estimate=pl.CostEstimate(flops=int(flops),
                                      transcendentals=int(transcendentals),
                                      bytes_accessed=int(bytes_accessed)),
    )(*operands)

    y = y2d.reshape(B, M, E)                        # free metadata reshapes in XLA
    attn = attn_flat.reshape(B, L, H, M, M)
    return y, attn


# --------------------------- pure-JAX reference --------------------------------
def reference_forward(xs, emb_params, mhsa_params, num_heads):
    toks = []
    for f, (w1, b1, w2, b2) in zip(xs, emb_params):
        toks.append(jnp.maximum(f @ w1 + b1, 0.0) @ w2 + b2)
    x = jnp.stack(toks, axis=1)
    attns = []
    for (g, bta, wq, bq, wk, bk, wv, bv, wo, bo) in mhsa_params:
        B, M, E = x.shape
        hs = E // num_heads
        mu = x.mean(-1, keepdims=True)
        var = ((x - mu) ** 2).mean(-1, keepdims=True)
        norm = (x - mu) / jnp.sqrt(var + 1e-5) * g + bta
        q = (norm @ wq + bq).reshape(B, M, num_heads, hs).transpose(0, 2, 1, 3)
        k = (norm @ wk + bk).reshape(B, M, num_heads, hs).transpose(0, 2, 1, 3)
        v = (norm @ wv + bv).reshape(B, M, num_heads, hs).transpose(0, 2, 1, 3)
        s = jnp.einsum("bhmd,bhnd->bhmn", q, k) / (hs ** 0.5)
        s = jnp.where(jnp.eye(M, dtype=bool), -jnp.inf, s)
        w = jax.nn.softmax(s, axis=-1)
        ctx = jnp.einsum("bhmn,bhnd->bhmd", w, v).transpose(0, 2, 1, 3).reshape(B, M, E)
        x = ctx @ wo + bo + x
        attns.append(w)
    return x, jnp.stack(attns).transpose(1, 0, 2, 3, 4)


# ----------------------------------- main --------------------------------------
if __name__ == "__main__":
    B = 2
    shapes = [12, 20, 16, 24]       # per-subnetwork input dims (M = 4 tokens)
    hidden_dim = 32
    embd_dim = 32
    num_heads = 4
    num_layers = 2

    key = jax.random.PRNGKey(0)

    # deterministic inputs: one feature vector per subnetwork
    xs = []
    for dd in shapes:
        key, sk = jax.random.split(key)
        xs.append(jax.random.normal(sk, (B, dd), dtype=jnp.float32))

    # deterministic embedder params: Linear(d, hidden) -> ReLU -> Linear(hidden, embd)
    emb_params = []
    for dd in shapes:
        key, k1, k2, k3, k4 = jax.random.split(key, 5)
        w1 = jax.random.normal(k1, (dd, hidden_dim), dtype=jnp.float32) * (1.0 / dd ** 0.5)
        b1 = jax.random.normal(k2, (1, hidden_dim), dtype=jnp.float32) * 0.1
        w2 = jax.random.normal(k3, (hidden_dim, embd_dim), dtype=jnp.float32) * (1.0 / hidden_dim ** 0.5)
        b2 = jax.random.normal(k4, (1, embd_dim), dtype=jnp.float32) * 0.1
        emb_params.append((w1, b1, w2, b2))

    # deterministic MHSA params per layer
    mhsa_params = []
    for _ in range(num_layers):
        key, kg, kb, kq, kbq, kk, kbk, kv, kbv, ko, kbo = jax.random.split(key, 11)
        scale = 1.0 / embd_dim ** 0.5
        g = 1.0 + 0.1 * jax.random.normal(kg, (1, embd_dim), dtype=jnp.float32)
        bta = 0.1 * jax.random.normal(kb, (1, embd_dim), dtype=jnp.float32)
        wq = jax.random.normal(kq, (embd_dim, embd_dim), dtype=jnp.float32) * scale
        bq = 0.1 * jax.random.normal(kbq, (1, embd_dim), dtype=jnp.float32)
        wk = jax.random.normal(kk, (embd_dim, embd_dim), dtype=jnp.float32) * scale
        bk = 0.1 * jax.random.normal(kbk, (1, embd_dim), dtype=jnp.float32)
        wv = jax.random.normal(kv, (embd_dim, embd_dim), dtype=jnp.float32) * scale
        bv = 0.1 * jax.random.normal(kbv, (1, embd_dim), dtype=jnp.float32)
        wo = jax.random.normal(ko, (embd_dim, embd_dim), dtype=jnp.float32) * scale
        bo = 0.1 * jax.random.normal(kbo, (1, embd_dim), dtype=jnp.float32)
        mhsa_params.append((g, bta, wq, bq, wk, bk, wv, bv, wo, bo))

    y, attn = subnetwork_encoder_forward(xs, emb_params, mhsa_params, num_heads)
    y = jax.block_until_ready(y)
    attn = jax.block_until_ready(attn)

    assert y.shape == (B, len(shapes), embd_dim)
    assert attn.shape == (B, num_layers, num_heads, len(shapes), len(shapes))

    y_ref, attn_ref = reference_forward(xs, emb_params, mhsa_params, num_heads)
    assert jnp.allclose(y, y_ref, atol=1e-4, rtol=1e-4)
    assert jnp.allclose(attn, attn_ref, atol=1e-4, rtol=1e-4)

    print("KERNEL_OK")
</pallas_src>

<mosaic_0001>
module attributes {stable_mosaic.version = 11 : i64} {
  func.func @_encoder_kernel(%arg0: i32, %arg1: memref<2x72xf32, #tpu.memory_space<vmem>>, %arg2: memref<72x128xf32, #tpu.memory_space<vmem>>, %arg3: memref<1x128xf32, #tpu.memory_space<vmem>>, %arg4: memref<128x128xf32, #tpu.memory_space<vmem>>, %arg5: memref<1x128xf32, #tpu.memory_space<vmem>>, %arg6: memref<2x1x32xf32, #tpu.memory_space<vmem>>, %arg7: memref<2x1x32xf32, #tpu.memory_space<vmem>>, %arg8: memref<2x32x32xf32, #tpu.memory_space<vmem>>, %arg9: memref<2x1x32xf32, #tpu.memory_space<vmem>>, %arg10: memref<2x32x32xf32, #tpu.memory_space<vmem>>, %arg11: memref<2x1x32xf32, #tpu.memory_space<vmem>>, %arg12: memref<2x32x32xf32, #tpu.memory_space<vmem>>, %arg13: memref<2x1x32xf32, #tpu.memory_space<vmem>>, %arg14: memref<2x32x32xf32, #tpu.memory_space<vmem>>, %arg15: memref<2x1x32xf32, #tpu.memory_space<vmem>>, %arg16: memref<8x32xf32, #tpu.memory_space<vmem>>, %arg17: memref<2x128xf32, #tpu.memory_space<vmem>>) attributes {dimension_semantics = [#tpu.dimension_semantics<arbitrary>], iteration_bounds = array<i64: 1>, scalar_prefetch = 0 : i64, scratch_operands = 0 : i64, tpu.core_type = #tpu.core_type<tc>, window_params = [{pipeline_mode = #tpu.pipeline_mode<synchronous>, transform_indices = @transform_0, window_bounds = array<i64: 2, 72>}, {pipeline_mode = #tpu.pipeline_mode<synchronous>, transform_indices = @transform_1, window_bounds = array<i64: 72, 128>}, {pipeline_mode = #tpu.pipeline_mode<synchronous>, transform_indices = @transform_2, window_bounds = array<i64: 1, 128>}, {pipeline_mode = #tpu.pipeline_mode<synchronous>, transform_indices = @transform_3, window_bounds = array<i64: 128, 128>}, {pipeline_mode = #tpu.pipeline_mode<synchronous>, transform_indices = @transform_4, window_bounds = array<i64: 1, 128>}, {pipeline_mode = #tpu.pipeline_mode<synchronous>, transform_indices = @transform_5, window_bounds = array<i64: 2, 1, 32>}, {pipeline_mode = #tpu.pipeline_mode<synchronous>, transform_indices = @transform_6, window_bounds = array<i64: 2, 1, 32>}, {pipeline_mode = #tpu.pipeline_mode<synchronous>, transform_indices = @transform_7, window_bounds = array<i64: 2, 32, 32>}, {pipeline_mode = #tpu.pipeline_mode<synchronous>, transform_indices = @transform_8, window_bounds = array<i64: 2, 1, 32>}, {pipeline_mode = #tpu.pipeline_mode<synchronous>, transform_indices = @transform_9, window_bounds = array<i64: 2, 32, 32>}, {pipeline_mode = #tpu.pipeline_mode<synchronous>, transform_indices = @transform_10, window_bounds = array<i64: 2, 1, 32>}, {pipeline_mode = #tpu.pipeline_mode<synchronous>, transform_indices = @transform_11, window_bounds = array<i64: 2, 32, 32>}, {pipeline_mode = #tpu.pipeline_mode<synchronous>, transform_indices = @transform_12, window_bounds = array<i64: 2, 1, 32>}, {pipeline_mode = #tpu.pipeline_mode<synchronous>, transform_indices = @transform_13, window_bounds = array<i64: 2, 32, 32>}, {pipeline_mode = #tpu.pipeline_mode<synchronous>, transform_indices = @transform_14, window_bounds = array<i64: 2, 1, 32>}, {pipeline_mode = #tpu.pipeline_mode<synchronous>, transform_indices = @transform_15, window_bounds = array<i64: 8, 32>}, {pipeline_mode = #tpu.pipeline_mode<synchronous>, transform_indices = @transform_16, window_bounds = array<i64: 2, 128>}]} {
    %c0 = arith.constant 0 : index
    %c0_0 = arith.constant 0 : index
    %0 = vector.load %arg1[%c0, %c0_0] : memref<2x72xf32, #tpu.memory_space<vmem>>, vector<2x72xf32>
    %c0_1 = arith.constant 0 : index
    %c0_2 = arith.constant 0 : index
    %1 = vector.load %arg2[%c0_1, %c0_2] : memref<72x128xf32, #tpu.memory_space<vmem>>, vector<72x128xf32>
    %cst = arith.constant dense<0.000000e+00> : vector<2x128xf32>
    %2 = tpu.matmul %0, %1, %cst {dimension_numbers = #tpu.dot_dimension_numbers<[1], [0], [0], [1], [0, 0, 1, 1], [], []>} : vector<2x72xf32>, vector<72x128xf32>, vector<2x128xf32> -> vector<2x128xf32>
    %c0_3 = arith.constant 0 : index
    %c0_4 = arith.constant 0 : index
    %3 = vector.load %arg3[%c0_3, %c0_4] : memref<1x128xf32, #tpu.memory_space<vmem>>, vector<1x128xf32>
    %4 = vector.broadcast %3 : vector<1x128xf32> to vector<2x128xf32>
    %5 = arith.addf %2, %4 : vector<2x128xf32>
    %cst_5 = arith.constant 0.000000e+00 : f32
    %6 = vector.broadcast %cst_5 : f32 to vector<2x128xf32>
    %7 = arith.maximumf %5, %6 : vector<2x128xf32>
    %c0_6 = arith.constant 0 : index
    %c0_7 = arith.constant 0 : index
    %8 = vector.load %arg4[%c0_6, %c0_7] : memref<128x128xf32, #tpu.memory_space<vmem>>, vector<128x128xf32>
    %cst_8 = arith.constant dense<0.000000e+00> : vector<2x128xf32>
    %9 = tpu.matmul %7, %8, %cst_8 {dimension_numbers = #tpu.dot_dimension_numbers<[1], [0], [0], [1], [0, 0, 1, 1], [], []>} : vector<2x128xf32>, vector<128x128xf32>, vector<2x128xf32> -> vector<2x128xf32>
    %c0_9 = arith.constant 0 : index
    %c0_10 = arith.constant 0 : index
    %10 = vector.load %arg5[%c0_9, %c0_10] : memref<1x128xf32, #tpu.memory_space<vmem>>, vector<1x128xf32>
    %11 = vector.broadcast %10 : vector<1x128xf32> to vector<2x128xf32>
    %12 = arith.addf %9, %11 : vector<2x128xf32>
    %13 = vector.extract_strided_slice %12 {offsets = [0, 0], sizes = [1, 32], strides = [1, 1]} : vector<2x128xf32> to vector<1x32xf32>
    %14 = vector.extract_strided_slice %12 {offsets = [0, 32], sizes = [1, 32], strides = [1, 1]} : vector<2x128xf32> to vector<1x32xf32>
    %15 = vector.extract_strided_slice %12 {offsets = [0, 64], sizes = [1, 32], strides = [1, 1]} : vector<2x128xf32> to vector<1x32xf32>
    %16 = vector.extract_strided_slice %12 {offsets = [0, 96], sizes = [1, 32], strides = [1, 1]} : vector<2x128xf32> to vector<1x32xf32>
    %17 = vector.extract_strided_slice %12 {offsets = [1, 0], sizes = [1, 32], strides = [1, 1]} : vector<2x128xf32> to vector<1x32xf32>
    %18 = vector.extract_strided_slice %12 {offsets = [1, 32], sizes = [1, 32], strides = [1, 1]} : vector<2x128xf32> to vector<1x32xf32>
    %19 = vector.extract_strided_slice %12 {offsets = [1, 64], sizes = [1, 32], strides = [1, 1]} : vector<2x128xf32> to vector<1x32xf32>
    %20 = vector.extract_strided_slice %12 {offsets = [1, 96], sizes = [1, 32], strides = [1, 1]} : vector<2x128xf32> to vector<1x32xf32>
    %21 = tpu.concatenate %13, %14, %15, %16, %17, %18, %19, %20 in 0 : vector<1x32xf32>, vector<1x32xf32>, vector<1x32xf32>, vector<1x32xf32>, vector<1x32xf32>, vector<1x32xf32>, vector<1x32xf32>, vector<1x32xf32> -> vector<8x32xf32>
    %22 = tpu.iota {dimensions = array<i32: 0>} : vector<4x4xi32>
    %23 = tpu.iota {dimensions = array<i32: 1>} : vector<4x4xi32>
    %24 = arith.cmpi eq, %22, %23 : vector<4x4xi32>
    %cst_11 = arith.constant dense<0.000000e+00> : vector<8xf32>
    %25 = vector.multi_reduction <add>, %21, %cst_11 [1] : vector<8x32xf32> to vector<8xf32>
    %26 = vector.shape_cast %25 : vector<8xf32> to vector<8x1xf32>
    %cst_12 = arith.constant 3.200000e+01 : f32
    %27 = vector.broadcast %cst_12 : f32 to vector<8x1xf32>
    %28 = arith.divf %26, %27 : vector<8x1xf32>
    %29 = vector.broadcast %28 : vector<8x1xf32> to vector<8x32xf32>
    %30 = arith.subf %21, %29 : vector<8x32xf32>
    %31 = arith.mulf %30, %30 : vector<8x32xf32>
    %cst_13 = arith.constant dense<0.000000e+00> : vector<8xf32>
    %32 = vector.multi_reduction <add>, %31, %cst_13 [1] : vector<8x32xf32> to vector<8xf32>
    %33 = vector.shape_cast %32 : vector<8xf32> to vector<8x1xf32>
    %cst_14 = arith.constant 3.200000e+01 : f32
    %34 = vector.broadcast %cst_14 : f32 to vector<8x1xf32>
    %35 = arith.divf %33, %34 : vector<8x1xf32>
    %36 = vector.broadcast %28 : vector<8x1xf32> to vector<8x32xf32>
    %37 = arith.subf %21, %36 : vector<8x32xf32>
    %cst_15 = arith.constant 9.99999974E-6 : f32
    %38 = vector.broadcast %cst_15 : f32 to vector<8x1xf32>
    %39 = arith.addf %35, %38 : vector<8x1xf32>
    %40 = math.rsqrt %39 : vector<8x1xf32>
    %41 = vector.broadcast %40 : vector<8x1xf32> to vector<8x32xf32>
    %42 = arith.mulf %37, %41 : vector<8x32xf32>
    %c0_16 = arith.constant 0 : index
    %c0_17 = arith.constant 0 : index
    %c0_18 = arith.constant 0 : index
    %43 = vector.load %arg6[%c0_16, %c0_17, %c0_18] : memref<2x1x32xf32, #tpu.memory_space<vmem>>, vector<1x1x32xf32>
    %44 = vector.shape_cast %43 : vector<1x1x32xf32> to vector<1x32xf32>
    %45 = vector.broadcast %44 : vector<1x32xf32> to vector<8x32xf32>
    %46 = arith.mulf %42, %45 : vector<8x32xf32>
    %c0_19 = arith.constant 0 : index
    %c0_20 = arith.constant 0 : index
    %c0_21 = arith.constant 0 : index
    %47 = vector.load %arg7[%c0_19, %c0_20, %c0_21] : memref<2x1x32xf32, #tpu.memory_space<vmem>>, vector<1x1x32xf32>
    %48 = vector.shape_cast %47 : vector<1x1x32xf32> to vector<1x32xf32>
    %49 = vector.broadcast %48 : vector<1x32xf32> to vector<8x32xf32>
    %50 = arith.addf %46, %49 : vector<8x32xf32>
    %c0_22 = arith.constant 0 : index
    %c0_23 = arith.constant 0 : index
    %c0_24 = arith.constant 0 : index
    %51 = vector.load %arg8[%c0_22, %c0_23, %c0_24] : memref<2x32x32xf32, #tpu.memory_space<vmem>>, vector<1x32x32xf32>
    %52 = vector.shape_cast %51 : vector<1x32x32xf32> to vector<32x32xf32>
    %cst_25 = arith.constant dense<0.000000e+00> : vector<8x32xf32>
    %53 = tpu.matmul %50, %52, %cst_25 {dimension_numbers = #tpu.dot_dimension_numbers<[1], [0], [0], [1], [0, 0, 1, 1], [], []>} : vector<8x32xf32>, vector<32x32xf32>, vector<8x32xf32> -> vector<8x32xf32>
    %c0_26 = arith.constant 0 : index
    %c0_27 = arith.constant 0 : index
    %c0_28 = arith.constant 0 : index
    %54 = vector.load %arg9[%c0_26, %c0_27, %c0_28] : memref<2x1x32xf32, #tpu.memory_space<vmem>>, vector<1x1x32xf32>
    %55 = vector.shape_cast %54 : vector<1x1x32xf32> to vector<1x32xf32>
    %56 = vector.broadcast %55 : vector<1x32xf32> to vector<8x32xf32>
    %57 = arith.addf %53, %56 : vector<8x32xf32>
    %c0_29 = arith.constant 0 : index
    %c0_30 = arith.constant 0 : index
    %c0_31 = arith.constant 0 : index
    %58 = vector.load %arg10[%c0_29, %c0_30, %c0_31] : memref<2x32x32xf32, #tpu.memory_space<vmem>>, vector<1x32x32xf32>
    %59 = vector.shape_cast %58 : vector<1x32x32xf32> to vector<32x32xf32>
    %cst_32 = arith.constant dense<0.000000e+00> : vector<8x32xf32>
    %60 = tpu.matmul %50, %59, %cst_32 {dimension_numbers = #tpu.dot_dimension_numbers<[1], [0], [0], [1], [0, 0, 1, 1], [], []>} : vector<8x32xf32>, vector<32x32xf32>, vector<8x32xf32> -> vector<8x32xf32>
    %c0_33 = arith.constant 0 : index
    %c0_34 = arith.constant 0 : index
    %c0_35 = arith.constant 0 : index
    %61 = vector.load %arg11[%c0_33, %c0_34, %c0_35] : memref<2x1x32xf32, #tpu.memory_space<vmem>>, vector<1x1x32xf32>
    %62 = vector.shape_cast %61 : vector<1x1x32xf32> to vector<1x32xf32>
    %63 = vector.broadcast %62 : vector<1x32xf32> to vector<8x32xf32>
    %64 = arith.addf %60, %63 : vector<8x32xf32>
    %c0_36 = arith.constant 0 : index
    %c0_37 = arith.constant 0 : index
    %c0_38 = arith.constant 0 : index
    %65 = vector.load %arg12[%c0_36, %c0_37, %c0_38] : memref<2x32x32xf32, #tpu.memory_space<vmem>>, vector<1x32x32xf32>
    %66 = vector.shape_cast %65 : vector<1x32x32xf32> to vector<32x32xf32>
    %cst_39 = arith.constant dense<0.000000e+00> : vector<8x32xf32>
    %67 = tpu.matmul %50, %66, %cst_39 {dimension_numbers = #tpu.dot_dimension_numbers<[1], [0], [0], [1], [0, 0, 1, 1], [], []>} : vector<8x32xf32>, vector<32x32xf32>, vector<8x32xf32> -> vector<8x32xf32>
    %c0_40 = arith.constant 0 : index
    %c0_41 = arith.constant 0 : index
    %c0_42 = arith.constant 0 : index
    %68 = vector.load %arg13[%c0_40, %c0_41, %c0_42] : memref<2x1x32xf32, #tpu.memory_space<vmem>>, vector<1x1x32xf32>
    %69 = vector.shape_cast %68 : vector<1x1x32xf32> to vector<1x32xf32>
    %70 = vector.broadcast %69 : vector<1x32xf32> to vector<8x32xf32>
    %71 = arith.addf %67, %70 : vector<8x32xf32>
    %72 = vector.extract_strided_slice %57 {offsets = [0, 0], sizes = [4, 8], strides = [1, 1]} : vector<8x32xf32> to vector<4x8xf32>
    %73 = vector.extract_strided_slice %57 {offsets = [0, 8], sizes = [4, 8], strides = [1, 1]} : vector<8x32xf32> to vector<4x8xf32>
    %74 = vector.extract_strided_slice %57 {offsets = [0, 16], sizes = [4, 8], strides = [1, 1]} : vector<8x32xf32> to vector<4x8xf32>
    %75 = vector.extract_strided_slice %57 {offsets = [0, 24], sizes = [4, 8], strides = [1, 1]} : vector<8x32xf32> to vector<4x8xf32>
    %76 = vector.extract_strided_slice %57 {offsets = [4, 0], sizes = [4, 8], strides = [1, 1]} : vector<8x32xf32> to vector<4x8xf32>
    %77 = vector.extract_strided_slice %57 {offsets = [4, 8], sizes = [4, 8], strides = [1, 1]} : vector<8x32xf32> to vector<4x8xf32>
    %78 = vector.extract_strided_slice %57 {offsets = [4, 16], sizes = [4, 8], strides = [1, 1]} : vector<8x32xf32> to vector<4x8xf32>
    %79 = vector.extract_strided_slice %57 {offsets = [4, 24], sizes = [4, 8], strides = [1, 1]} : vector<8x32xf32> to vector<4x8xf32>
    %80 = vector.shape_cast %72 : vector<4x8xf32> to vector<1x4x8xf32>
    %81 = vector.shape_cast %73 : vector<4x8xf32> to vector<1x4x8xf32>
    %82 = vector.shape_cast %74 : vector<4x8xf32> to vector<1x4x8xf32>
    %83 = vector.shape_cast %75 : vector<4x8xf32> to vector<1x4x8xf32>
    %84 = vector.shape_cast %76 : vector<4x8xf32> to vector<1x4x8xf32>
    %85 = vector.shape_cast %77 : vector<4x8xf32> to vector<1x4x8xf32>
    %86 = vector.shape_cast %78 : vector<4x8xf32> to vector<1x4x8xf32>
    %87 = vector.shape_cast %79 : vector<4x8xf32> to vector<1x4x8xf32>
    %88 = tpu.concatenate %80, %81, %82, %83, %84, %85, %86, %87 in 0 : vector<1x4x8xf32>, vector<1x4x8xf32>, vector<1x4x8xf32>, vector<1x4x8xf32>, vector<1x4x8xf32>, vector<1x4x8xf32>, vector<1x4x8xf32>, vector<1x4x8xf32> -> vector<8x4x8xf32>
    %89 = vector.extract_strided_slice %64 {offsets = [0, 0], sizes = [4, 8], strides = [1, 1]} : vector<8x32xf32> to vector<4x8xf32>
    %90 = vector.extract_strided_slice %64 {offsets = [0, 8], sizes = [4, 8], strides = [1, 1]} : vector<8x32xf32> to vector<4x8xf32>
    %91 = vector.extract_strided_slice %64 {offsets = [0, 16], sizes = [4, 8], strides = [1, 1]} : vector<8x32xf32> to vector<4x8xf32>
    %92 = vector.extract_strided_slice %64 {offsets = [0, 24], sizes = [4, 8], strides = [1, 1]} : vector<8x32xf32> to vector<4x8xf32>
    %93 = vector.extract_strided_slice %64 {offsets = [4, 0], sizes = [4, 8], strides = [1, 1]} : vector<8x32xf32> to vector<4x8xf32>
    %94 = vector.extract_strided_slice %64 {offsets = [4, 8], sizes = [4, 8], strides = [1, 1]} : vector<8x32xf32> to vector<4x8xf32>
    %95 = vector.extract_strided_slice %64 {offsets = [4, 16], sizes = [4, 8], strides = [1, 1]} : vector<8x32xf32> to vector<4x8xf32>
    %96 = vector.extract_strided_slice %64 {offsets = [4, 24], sizes = [4, 8], strides = [1, 1]} : vector<8x32xf32> to vector<4x8xf32>
    %97 = vector.shape_cast %89 : vector<4x8xf32> to vector<1x4x8xf32>
    %98 = vector.shape_cast %90 : vector<4x8xf32> to vector<1x4x8xf32>
    %99 = vector.shape_cast %91 : vector<4x8xf32> to vector<1x4x8xf32>
    %100 = vector.shape_cast %92 : vector<4x8xf32> to vector<1x4x8xf32>
    %101 = vector.shape_cast %93 : vector<4x8xf32> to vector<1x4x8xf32>
    %102 = vector.shape_cast %94 : vector<4x8xf32> to vector<1x4x8xf32>
    %103 = vector.shape_cast %95 : vector<4x8xf32> to vector<1x4x8xf32>
    %104 = vector.shape_cast %96 : vector<4x8xf32> to vector<1x4x8xf32>
    %105 = tpu.concatenate %97, %98, %99, %100, %101, %102, %103, %104 in 0 : vector<1x4x8xf32>, vector<1x4x8xf32>, vector<1x4x8xf32>, vector<1x4x8xf32>, vector<1x4x8xf32>, vector<1x4x8xf32>, vector<1x4x8xf32>, vector<1x4x8xf32> -> vector<8x4x8xf32>
    %106 = vector.extract_strided_slice %71 {offsets = [0, 0], sizes = [4, 8], strides = [1, 1]} : vector<8x32xf32> to vector<4x8xf32>
    %107 = vector.extract_strided_slice %71 {offsets = [0, 8], sizes = [4, 8], strides = [1, 1]} : vector<8x32xf32> to vector<4x8xf32>
    %108 = vector.extract_strided_slice %71 {offsets = [0, 16], sizes = [4, 8], strides = [1, 1]} : vector<8x32xf32> to vector<4x8xf32>
    %109 = vector.extract_strided_slice %71 {offsets = [0, 24], sizes = [4, 8], strides = [1, 1]} : vector<8x32xf32> to vector<4x8xf32>
    %110 = vector.extract_strided_slice %71 {offsets = [4, 0], sizes = [4, 8], strides = [1, 1]} : vector<8x32xf32> to vector<4x8xf32>
    %111 = vector.extract_strided_slice %71 {offsets = [4, 8], sizes = [4, 8], strides = [1, 1]} : vector<8x32xf32> to vector<4x8xf32>
    %112 = vector.extract_strided_slice %71 {offsets = [4, 16], sizes = [4, 8], strides = [1, 1]} : vector<8x32xf32> to vector<4x8xf32>
    %113 = vector.extract_strided_slice %71 {offsets = [4, 24], sizes = [4, 8], strides = [1, 1]} : vector<8x32xf32> to vector<4x8xf32>
    %114 = vector.shape_cast %106 : vector<4x8xf32> to vector<1x4x8xf32>
    %115 = vector.shape_cast %107 : vector<4x8xf32> to vector<1x4x8xf32>
    %116 = vector.shape_cast %108 : vector<4x8xf32> to vector<1x4x8xf32>
    %117 = vector.shape_cast %109 : vector<4x8xf32> to vector<1x4x8xf32>
    %118 = vector.shape_cast %110 : vector<4x8xf32> to vector<1x4x8xf32>
    %119 = vector.shape_cast %111 : vector<4x8xf32> to vector<1x4x8xf32>
    %120 = vector.shape_cast %112 : vector<4x8xf32> to vector<1x4x8xf32>
    %121 = vector.shape_cast %113 : vector<4x8xf32> to vector<1x4x8xf32>
    %122 = tpu.concatenate %114, %115, %116, %117, %118, %119, %120, %121 in 0 : vector<1x4x8xf32>, vector<1x4x8xf32>, vector<1x4x8xf32>, vector<1x4x8xf32>, vector<1x4x8xf32>, vector<1x4x8xf32>, vector<1x4x8xf32>, vector<1x4x8xf32> -> vector<8x4x8xf32>
    "tpu.trace_start"() <{level = 10 : i32, message = "gmd,gnd->gmn"}> : () -> ()
    %cst_43 = arith.constant dense<0.000000e+00> : vector<8x4x4xf32>
    %123 = tpu.matmul %88, %105, %cst_43 {dimension_numbers = #tpu.dot_dimension_numbers<[2], [2], [1], [1], [0, 0, 0, 1, 1, 1], [0], [0]>} : vector<8x4x8xf32>, vector<8x4x8xf32>, vector<8x4x4xf32> -> vector<8x4x4xf32>
    "tpu.trace_stop"() : () -> ()
    %cst_44 = arith.constant 2.82842708 : f32
    %124 = vector.broadcast %cst_44 : f32 to vector<8x4x4xf32>
    %125 = arith.divf %123, %124 : vector<8x4x4xf32>
    %cst_45 = arith.constant 0xFF800000 : f32
    %126 = vector.shape_cast %24 : vector<4x4xi1> to vector<1x4x4xi1>
    %127 = vector.broadcast %126 : vector<1x4x4xi1> to vector<8x4x4xi1>
    %128 = vector.broadcast %cst_45 : f32 to vector<8x4x4xf32>
    %129 = arith.select %127, %128, %125 : vector<8x4x4xi1>, vector<8x4x4xf32>
    %cst_46 = arith.constant dense<0xFF800000> : vector<8x4xf32>
    %130 = vector.multi_reduction <maximumf>, %129, %cst_46 [2] : vector<8x4x4xf32> to vector<8x4xf32>
    %131 = vector.shape_cast %130 : vector<8x4xf32> to vector<8x4x1xf32>
    %132 = vector.broadcast %131 : vector<8x4x1xf32> to vector<8x4x4xf32>
    %133 = arith.subf %129, %132 : vector<8x4x4xf32>
    %134 = math.exp %133 : vector<8x4x4xf32>
    %cst_47 = arith.constant dense<0.000000e+00> : vector<8x4xf32>
    %135 = vector.multi_reduction <add>, %134, %cst_47 [2] : vector<8x4x4xf32> to vector<8x4xf32>
    %136 = vector.shape_cast %135 : vector<8x4xf32> to vector<8x4x1xf32>
    %137 = vector.broadcast %136 : vector<8x4x1xf32> to vector<8x4x4xf32>
    %138 = arith.divf %134, %137 : vector<8x4x4xf32>
    "tpu.trace_start"() <{level = 10 : i32, message = "gmn,gnd->gmd"}> : () -> ()
    %cst_48 = arith.constant dense<0.000000e+00> : vector<8x4x8xf32>
    %139 = tpu.matmul %138, %122, %cst_48 {dimension_numbers = #tpu.dot_dimension_numbers<[2], [1], [1], [2], [0, 0, 0, 1, 1, 2], [0], [0]>} : vector<8x4x4xf32>, vector<8x4x8xf32>, vector<8x4x8xf32> -> vector<8x4x8xf32>
    "tpu.trace_stop"() : () -> ()
    %140 = vector.extract_strided_slice %139 {offsets = [0, 0, 0], sizes = [1, 4, 8], strides = [1, 1, 1]} : vector<8x4x8xf32> to vector<1x4x8xf32>
    %141 = vector.shape_cast %140 : vector<1x4x8xf32> to vector<4x8xf32>
    %142 = vector.extract_strided_slice %139 {offsets = [4, 0, 0], sizes = [1, 4, 8], strides = [1, 1, 1]} : vector<8x4x8xf32> to vector<1x4x8xf32>
    %143 = vector.shape_cast %142 : vector<1x4x8xf32> to vector<4x8xf32>
    %144 = tpu.concatenate %141, %143 in 0 : vector<4x8xf32>, vector<4x8xf32> -> vector<8x8xf32>
    %145 = vector.extract_strided_slice %139 {offsets = [1, 0, 0], sizes = [1, 4, 8], strides = [1, 1, 1]} : vector<8x4x8xf32> to vector<1x4x8xf32>
    %146 = vector.shape_cast %145 : vector<1x4x8xf32> to vector<4x8xf32>
    %147 = vector.extract_strided_slice %139 {offsets = [5, 0, 0], sizes = [1, 4, 8], strides = [1, 1, 1]} : vector<8x4x8xf32> to vector<1x4x8xf32>
    %148 = vector.shape_cast %147 : vector<1x4x8xf32> to vector<4x8xf32>
    %149 = tpu.concatenate %146, %148 in 0 : vector<4x8xf32>, vector<4x8xf32> -> vector<8x8xf32>
    %150 = vector.extract_strided_slice %139 {offsets = [2, 0, 0], sizes = [1, 4, 8], strides = [1, 1, 1]} : vector<8x4x8xf32> to vector<1x4x8xf32>
    %151 = vector.shape_cast %150 : vector<1x4x8xf32> to vector<4x8xf32>
    %152 = vector.extract_strided_slice %139 {offsets = [6, 0, 0], sizes = [1, 4, 8], strides = [1, 1, 1]} : vector<8x4x8xf32> to vector<1x4x8xf32>
    %153 = vector.shape_cast %152 : vector<1x4x8xf32> to vector<4x8xf32>
    %154 = tpu.concatenate %151, %153 in 0 : vector<4x8xf32>, vector<4x8xf32> -> vector<8x8xf32>
    %155 = vector.extract_strided_slice %139 {offsets = [3, 0, 0], sizes = [1, 4, 8], strides = [1, 1, 1]} : vector<8x4x8xf32> to vector<1x4x8xf32>
    %156 = vector.shape_cast %155 : vector<1x4x8xf32> to vector<4x8xf32>
    %157 = vector.extract_strided_slice %139 {offsets = [7, 0, 0], sizes = [1, 4, 8], strides = [1, 1, 1]} : vector<8x4x8xf32> to vector<1x4x8xf32>
    %158 = vector.shape_cast %157 : vector<1x4x8xf32> to vector<4x8xf32>
    %159 = tpu.concatenate %156, %158 in 0 : vector<4x8xf32>, vector<4x8xf32> -> vector<8x8xf32>
    %160 = tpu.concatenate %144, %149, %154, %159 in 1 : vector<8x8xf32>, vector<8x8xf32>, vector<8x8xf32>, vector<8x8xf32> -> vector<8x32xf32>
    %c0_49 = arith.constant 0 : index
    %c0_50 = arith.constant 0 : index
    %c0_51 = arith.constant 0 : index
    %161 = vector.load %arg14[%c0_49, %c0_50, %c0_51] : memref<2x32x32xf32, #tpu.memory_space<vmem>>, vector<1x32x32xf32>
    %162 = vector.shape_cast %161 : vector<1x32x32xf32> to vector<32x32xf32>
    %cst_52 = arith.constant dense<0.000000e+00> : vector<8x32xf32>
    %163 = tpu.matmul %160, %162, %cst_52 {dimension_numbers = #tpu.dot_dimension_numbers<[1], [0], [0], [1], [0, 0, 1, 1], [], []>} : vector<8x32xf32>, vector<32x32xf32>, vector<8x32xf32> -> vector<8x32xf32>
    %c0_53 = arith.constant 0 : index
    %c0_54 = arith.constant 0 : index
    %c0_55 = arith.constant 0 : index
    %164 = vector.load %arg15[%c0_53, %c0_54, %c0_55] : memref<2x1x32xf32, #tpu.memory_space<vmem>>, vector<1x1x32xf32>
    %165 = vector.shape_cast %164 : vector<1x1x32xf32> to vector<1x32xf32>
    %166 = vector.broadcast %165 : vector<1x32xf32> to vector<8x32xf32>
    %167 = arith.addf %163, %166 : vector<8x32xf32>
    %168 = arith.addf %167, %21 : vector<8x32xf32>
    %169 = vector.extract_strided_slice %138 {offsets = [0, 0, 0], sizes = [1, 4, 4], strides = [1, 1, 1]} : vector<8x4x4xf32> to vector<1x4x4xf32>
    %170 = vector.shape_cast %169 : vector<1x4x4xf32> to vector<4x4xf32>
    %171 = vector.extract_strided_slice %170 {offsets = [0, 0], sizes = [1, 4], strides = [1, 1]} : vector<4x4xf32> to vector<1x4xf32>
    %172 = vector.extract_strided_slice %170 {offsets = [1, 0], sizes = [1, 4], strides = [1, 1]} : vector<4x4xf32> to vector<1x4xf32>
    %173 = vector.extract_strided_slice %170 {offsets = [2, 0], sizes = [1, 4], strides = [1, 1]} : vector<4x4xf32> to vector<1x4xf32>
    %174 = vector.extract_strided_slice %170 {offsets = [3, 0], sizes = [1, 4], strides = [1, 1]} : vector<4x4xf32> to vector<1x4xf32>
    %175 = tpu.concatenate %171, %172, %173, %174 in 1 : vector<1x4xf32>, vector<1x4xf32>, vector<1x4xf32>, vector<1x4xf32> -> vector<1x16xf32>
    %176 = vector.extract_strided_slice %138 {offsets = [1, 0, 0], sizes = [1, 4, 4], strides = [1, 1, 1]} : vector<8x4x4xf32> to vector<1x4x4xf32>
    %177 = vector.shape_cast %176 : vector<1x4x4xf32> to vector<4x4xf32>
    %178 = vector.extract_strided_slice %177 {offsets = [0, 0], sizes = [1, 4], strides = [1, 1]} : vector<4x4xf32> to vector<1x4xf32>
    %179 = vector.extract_strided_slice %177 {offsets = [1, 0], sizes = [1, 4], strides = [1, 1]} : vector<4x4xf32> to vector<1x4xf32>
    %180 = vector.extract_strided_slice %177 {offsets = [2, 0], sizes = [1, 4], strides = [1, 1]} : vector<4x4xf32> to vector<1x4xf32>
    %181 = vector.extract_strided_slice %177 {offsets = [3, 0], sizes = [1, 4], strides = [1, 1]} : vector<4x4xf32> to vector<1x4xf32>
    %182 = tpu.concatenate %178, %179, %180, %181 in 1 : vector<1x4xf32>, vector<1x4xf32>, vector<1x4xf32>, vector<1x4xf32> -> vector<1x16xf32>
    %183 = vector.extract_strided_slice %138 {offsets = [2, 0, 0], sizes = [1, 4, 4], strides = [1, 1, 1]} : vector<8x4x4xf32> to vector<1x4x4xf32>
    %184 = vector.shape_cast %183 : vector<1x4x4xf32> to vector<4x4xf32>
    %185 = vector.extract_strided_slice %184 {offsets = [0, 0], sizes = [1, 4], strides = [1, 1]} : vector<4x4xf32> to vector<1x4xf32>
    %186 = vector.extract_strided_slice %184 {offsets = [1, 0], sizes = [1, 4], strides = [1, 1]} : vector<4x4xf32> to vector<1x4xf32>
    %187 = vector.extract_strided_slice %184 {offsets = [2, 0], sizes = [1, 4], strides = [1, 1]} : vector<4x4xf32> to vector<1x4xf32>
    %188 = vector.extract_strided_slice %184 {offsets = [3, 0], sizes = [1, 4], strides = [1, 1]} : vector<4x4xf32> to vector<1x4xf32>
    %189 = tpu.concatenate %185, %186, %187, %188 in 1 : vector<1x4xf32>, vector<1x4xf32>, vector<1x4xf32>, vector<1x4xf32> -> vector<1x16xf32>
    %190 = vector.extract_strided_slice %138 {offsets = [3, 0, 0], sizes = [1, 4, 4], strides = [1, 1, 1]} : vector<8x4x4xf32> to vector<1x4x4xf32>
    %191 = vector.shape_cast %190 : vector<1x4x4xf32> to vector<4x4xf32>
    %192 = vector.extract_strided_slice %191 {offsets = [0, 0], sizes = [1, 4], strides = [1, 1]} : vector<4x4xf32> to vector<1x4xf32>
    %193 = vector.extract_strided_slice %191 {offsets = [1, 0], sizes = [1, 4], strides = [1, 1]} : vector<4x4xf32> to vector<1x4xf32>
    %194 = vector.extract_strided_slice %191 {offsets = [2, 0], sizes = [1, 4], strides = [1, 1]} : vector<4x4xf32> to vector<1x4xf32>
    %195 = vector.extract_strided_slice %191 {offsets = [3, 0], sizes = [1, 4], strides = [1, 1]} : vector<4x4xf32> to vector<1x4xf32>
    %196 = tpu.concatenate %192, %193, %194, %195 in 1 : vector<1x4xf32>, vector<1x4xf32>, vector<1x4xf32>, vector<1x4xf32> -> vector<1x16xf32>
    %197 = tpu.concatenate %175, %182, %189, %196 in 1 : vector<1x16xf32>, vector<1x16xf32>, vector<1x16xf32>, vector<1x16xf32> -> vector<1x64xf32>
    %198 = vector.extract_strided_slice %138 {offsets = [4, 0, 0], sizes = [1, 4, 4], strides = [1, 1, 1]} : vector<8x4x4xf32> to vector<1x4x4xf32>
    %199 = vector.shape_cast %198 : vector<1x4x4xf32> to vector<4x4xf32>
    %200 = vector.extract_strided_slice %199 {offsets = [0, 0], sizes = [1, 4], strides = [1, 1]} : vector<4x4xf32> to vector<1x4xf32>
    %201 = vector.extract_strided_slice %199 {offsets = [1, 0], sizes = [1, 4], strides = [1, 1]} : vector<4x4xf32> to vector<1x4xf32>
    %202 = vector.extract_strided_slice %199 {offsets = [2, 0], sizes = [1, 4], strides = [1, 1]} : vector<4x4xf32> to vector<1x4xf32>
    %203 = vector.extract_strided_slice %199 {offsets = [3, 0], sizes = [1, 4], strides = [1, 1]} : vector<4x4xf32> to vector<1x4xf32>
    %204 = tpu.concatenate %200, %201, %202, %203 in 1 : vector<1x4xf32>, vector<1x4xf32>, vector<1x4xf32>, vector<1x4xf32> -> vector<1x16xf32>
    %205 = vector.extract_strided_slice %138 {offsets = [5, 0, 0], sizes = [1, 4, 4], strides = [1, 1, 1]} : vector<8x4x4xf32> to vector<1x4x4xf32>
    %206 = vector.shape_cast %205 : vector<1x4x4xf32> to vector<4x4xf32>
    %207 = vector.extract_strided_slice %206 {offsets = [0, 0], sizes = [1, 4], strides = [1, 1]} : vector<4x4xf32> to vector<1x4xf32>
    %208 = vector.extract_strided_slice %206 {offsets = [1, 0], sizes = [1, 4], strides = [1, 1]} : vector<4x4xf32> to vector<1x4xf32>
    %209 = vector.extract_strided_slice %206 {offsets = [2, 0], sizes = [1, 4], strides = [1, 1]} : vector<4x4xf32> to vector<1x4xf32>
    %210 = vector.extract_strided_slice %206 {offsets = [3, 0], sizes = [1, 4], strides = [1, 1]} : vector<4x4xf32> to vector<1x4xf32>
    %211 = tpu.concatenate %207, %208, %209, %210 in 1 : vector<1x4xf32>, vector<1x4xf32>, vector<1x4xf32>, vector<1x4xf32> -> vector<1x16xf32>
    %212 = vector.extract_strided_slice %138 {offsets = [6, 0, 0], sizes = [1, 4, 4], strides = [1, 1, 1]} : vector<8x4x4xf32> to vector<1x4x4xf32>
    %213 = vector.shape_cast %212 : vector<1x4x4xf32> to vector<4x4xf32>
    %214 = vector.extract_strided_slice %213 {offsets = [0, 0], sizes = [1, 4], strides = [1, 1]} : vector<4x4xf32> to vector<1x4xf32>
    %215 = vector.extract_strided_slice %213 {offsets = [1, 0], sizes = [1, 4], strides = [1, 1]} : vector<4x4xf32> to vector<1x4xf32>
    %216 = vector.extract_strided_slice %213 {offsets = [2, 0], sizes = [1, 4], strides = [1, 1]} : vector<4x4xf32> to vector<1x4xf32>
    %217 = vector.extract_strided_slice %213 {offsets = [3, 0], sizes = [1, 4], strides = [1, 1]} : vector<4x4xf32> to vector<1x4xf32>
    %218 = tpu.concatenate %214, %215, %216, %217 in 1 : vector<1x4xf32>, vector<1x4xf32>, vector<1x4xf32>, vector<1x4xf32> -> vector<1x16xf32>
    %219 = vector.extract_strided_slice %138 {offsets = [7, 0, 0], sizes = [1, 4, 4], strides = [1, 1, 1]} : vector<8x4x4xf32> to vector<1x4x4xf32>
    %220 = vector.shape_cast %219 : vector<1x4x4xf32> to vector<4x4xf32>
    %221 = vector.extract_strided_slice %220 {offsets = [0, 0], sizes = [1, 4], strides = [1, 1]} : vector<4x4xf32> to vector<1x4xf32>
    %222 = vector.extract_strided_slice %220 {offsets = [1, 0], sizes = [1, 4], strides = [1, 1]} : vector<4x4xf32> to vector<1x4xf32>
    %223 = vector.extract_strided_slice %220 {offsets = [2, 0], sizes = [1, 4], strides = [1, 1]} : vector<4x4xf32> to vector<1x4xf32>
    %224 = vector.extract_strided_slice %220 {offsets = [3, 0], sizes = [1, 4], strides = [1, 1]} : vector<4x4xf32> to vector<1x4xf32>
    %225 = tpu.concatenate %221, %222, %223, %224 in 1 : vector<1x4xf32>, vector<1x4xf32>, vector<1x4xf32>, vector<1x4xf32> -> vector<1x16xf32>
    %226 = tpu.concatenate %204, %211, %218, %225 in 1 : vector<1x16xf32>, vector<1x16xf32>, vector<1x16xf32>, vector<1x16xf32> -> vector<1x64xf32>
    %227 = tpu.concatenate %197, %226 in 0 : vector<1x64xf32>, vector<1x64xf32> -> vector<2x64xf32>
    %cst_56 = arith.constant dense<0.000000e+00> : vector<8xf32>
    %228 = vector.multi_reduction <add>, %168, %cst_56 [1] : vector<8x32xf32> to vector<8xf32>
    %229 = vector.shape_cast %228 : vector<8xf32> to vector<8x1xf32>
    %cst_57 = arith.constant 3.200000e+01 : f32
    %230 = vector.broadcast %cst_57 : f32 to vector<8x1xf32>
    %231 = arith.divf %229, %230 : vector<8x1xf32>
    %232 = vector.broadcast %231 : vector<8x1xf32> to vector<8x32xf32>
    %233 = arith.subf %168, %232 : vector<8x32xf32>
    %234 = arith.mulf %233, %233 : vector<8x32xf32>
    %cst_58 = arith.constant dense<0.000000e+00> : vector<8xf32>
    %235 = vector.multi_reduction <add>, %234, %cst_58 [1] : vector<8x32xf32> to vector<8xf32>
    %236 = vector.shape_cast %235 : vector<8xf32> to vector<8x1xf32>
    %cst_59 = arith.constant 3.200000e+01 : f32
    %237 = vector.broadcast %cst_59 : f32 to vector<8x1xf32>
    %238 = arith.divf %236, %237 : vector<8x1xf32>
    %239 = vector.broadcast %231 : vector<8x1xf32> to vector<8x32xf32>
    %240 = arith.subf %168, %239 : vector<8x32xf32>
    %cst_60 = arith.constant 9.99999974E-6 : f32
    %241 = vector.broadcast %cst_60 : f32 to vector<8x1xf32>
    %242 = arith.addf %238, %241 : vector<8x1xf32>
    %243 = math.rsqrt %242 : vector<8x1xf32>
    %244 = vector.broadcast %243 : vector<8x1xf32> to vector<8x32xf32>
    %245 = arith.mulf %240, %244 : vector<8x32xf32>
    %c1 = arith.constant 1 : index
    %c0_61 = arith.constant 0 : index
    %c0_62 = arith.constant 0 : index
    %246 = vector.load %arg6[%c1, %c0_61, %c0_62] : memref<2x1x32xf32, #tpu.memory_space<vmem>>, vector<1x1x32xf32>
    %247 = vector.shape_cast %246 : vector<1x1x32xf32> to vector<1x32xf32>
    %248 = vector.broadcast %247 : vector<1x32xf32> to vector<8x32xf32>
    %249 = arith.mulf %245, %248 : vector<8x32xf32>
    %c1_63 = arith.constant 1 : index
    %c0_64 = arith.constant 0 : index
    %c0_65 = arith.constant 0 : index
    %250 = vector.load %arg7[%c1_63, %c0_64, %c0_65] : memref<2x1x32xf32, #tpu.memory_space<vmem>>, vector<1x1x32xf32>
    %251 = vector.shape_cast %250 : vector<1x1x32xf32> to vector<1x32xf32>
    %252 = vector.broadcast %251 : vector<1x32xf32> to vector<8x32xf32>
    %253 = arith.addf %249, %252 : vector<8x32xf32>
    %c1_66 = arith.constant 1 : index
    %c0_67 = arith.constant 0 : index
    %c0_68 = arith.constant 0 : index
    %254 = vector.load %arg8[%c1_66, %c0_67, %c0_68] : memref<2x32x32xf32, #tpu.memory_space<vmem>>, vector<1x32x32xf32>
    %255 = vector.shape_cast %254 : vector<1x32x32xf32> to vector<32x32xf32>
    %cst_69 = arith.constant dense<0.000000e+00> : vector<8x32xf32>
    %256 = tpu.matmul %253, %255, %cst_69 {dimension_numbers = #tpu.dot_dimension_numbers<[1], [0], [0], [1], [0, 0, 1, 1], [], []>} : vector<8x32xf32>, vector<32x32xf32>, vector<8x32xf32> -> vector<8x32xf32>
    %c1_70 = arith.constant 1 : index
    %c0_71 = arith.constant 0 : index
    %c0_72 = arith.constant 0 : index
    %257 = vector.load %arg9[%c1_70, %c0_71, %c0_72] : memref<2x1x32xf32, #tpu.memory_space<vmem>>, vector<1x1x32xf32>
    %258 = vector.shape_cast %257 : vector<1x1x32xf32> to vector<1x32xf32>
    %259 = vector.broadcast %258 : vector<1x32xf32> to vector<8x32xf32>
    %260 = arith.addf %256, %259 : vector<8x32xf32>
    %c1_73 = arith.constant 1 : index
    %c0_74 = arith.constant 0 : index
    %c0_75 = arith.constant 0 : index
    %261 = vector.load %arg10[%c1_73, %c0_74, %c0_75] : memref<2x32x32xf32, #tpu.memory_space<vmem>>, vector<1x32x32xf32>
    %262 = vector.shape_cast %261 : vector<1x32x32xf32> to vector<32x32xf32>
    %cst_76 = arith.constant dense<0.000000e+00> : vector<8x32xf32>
    %263 = tpu.matmul %253, %262, %cst_76 {dimension_numbers = #tpu.dot_dimension_numbers<[1], [0], [0], [1], [0, 0, 1, 1], [], []>} : vector<8x32xf32>, vector<32x32xf32>, vector<8x32xf32> -> vector<8x32xf32>
    %c1_77 = arith.constant 1 : index
    %c0_78 = arith.constant 0 : index
    %c0_79 = arith.constant 0 : index
    %264 = vector.load %arg11[%c1_77, %c0_78, %c0_79] : memref<2x1x32xf32, #tpu.memory_space<vmem>>, vector<1x1x32xf32>
    %265 = vector.shape_cast %264 : vector<1x1x32xf32> to vector<1x32xf32>
    %266 = vector.broadcast %265 : vector<1x32xf32> to vector<8x32xf32>
    %267 = arith.addf %263, %266 : vector<8x32xf32>
    %c1_80 = arith.constant 1 : index
    %c0_81 = arith.constant 0 : index
    %c0_82 = arith.constant 0 : index
    %268 = vector.load %arg12[%c1_80, %c0_81, %c0_82] : memref<2x32x32xf32, #tpu.memory_space<vmem>>, vector<1x32x32xf32>
    %269 = vector.shape_cast %268 : vector<1x32x32xf32> to vector<32x32xf32>
    %cst_83 = arith.constant dense<0.000000e+00> : vector<8x32xf32>
    %270 = tpu.matmul %253, %269, %cst_83 {dimension_numbers = #tpu.dot_dimension_numbers<[1], [0], [0], [1], [0, 0, 1, 1], [], []>} : vector<8x32xf32>, vector<32x32xf32>, vector<8x32xf32> -> vector<8x32xf32>
    %c1_84 = arith.constant 1 : index
    %c0_85 = arith.constant 0 : index
    %c0_86 = arith.constant 0 : index
    %271 = vector.load %arg13[%c1_84, %c0_85, %c0_86] : memref<2x1x32xf32, #tpu.memory_space<vmem>>, vector<1x1x32xf32>
    %272 = vector.shape_cast %271 : vector<1x1x32xf32> to vector<1x32xf32>
    %273 = vector.broadcast %272 : vector<1x32xf32> to vector<8x32xf32>
    %274 = arith.addf %270, %273 : vector<8x32xf32>
    %275 = vector.extract_strided_slice %260 {offsets = [0, 0], sizes = [4, 8], strides = [1, 1]} : vector<8x32xf32> to vector<4x8xf32>
    %276 = vector.extract_strided_slice %260 {offsets = [0, 8], sizes = [4, 8], strides = [1, 1]} : vector<8x32xf32> to vector<4x8xf32>
    %277 = vector.extract_strided_slice %260 {offsets = [0, 16], sizes = [4, 8], strides = [1, 1]} : vector<8x32xf32> to vector<4x8xf32>
    %278 = vector.extract_strided_slice %260 {offsets = [0, 24], sizes = [4, 8], strides = [1, 1]} : vector<8x32xf32> to vector<4x8xf32>
    %279 = vector.extract_strided_slice %260 {offsets = [4, 0], sizes = [4, 8], strides = [1, 1]} : vector<8x32xf32> to vector<4x8xf32>
    %280 = vector.extract_strided_slice %260 {offsets = [4, 8], sizes = [4, 8], strides = [1, 1]} : vector<8x32xf32> to vector<4x8xf32>
    %281 = vector.extract_strided_slice %260 {offsets = [4, 16], sizes = [4, 8], strides = [1, 1]} : vector<8x32xf32> to vector<4x8xf32>
    %282 = vector.extract_strided_slice %260 {offsets = [4, 24], sizes = [4, 8], strides = [1, 1]} : vector<8x32xf32> to vector<4x8xf32>
    %283 = vector.shape_cast %275 : vector<4x8xf32> to vector<1x4x8xf32>
    %284 = vector.shape_cast %276 : vector<4x8xf32> to vector<1x4x8xf32>
    %285 = vector.shape_cast %277 : vector<4x8xf32> to vector<1x4x8xf32>
    %286 = vector.shape_cast %278 : vector<4x8xf32> to vector<1x4x8xf32>
    %287 = vector.shape_cast %279 : vector<4x8xf32> to vector<1x4x8xf32>
    %288 = vector.shape_cast %280 : vector<4x8xf32> to vector<1x4x8xf32>
    %289 = vector.shape_cast %281 : vector<4x8xf32> to vector<1x4x8xf32>
    %290 = vector.shape_cast %282 : vector<4x8xf32> to vector<1x4x8xf32>
    %291 = tpu.concatenate %283, %284, %285, %286, %287, %288, %289, %290 in 0 : vector<1x4x8xf32>, vector<1x4x8xf32>, vector<1x4x8xf32>, vector<1x4x8xf32>, vector<1x4x8xf32>, vector<1x4x8xf32>, vector<1x4x8xf32>, vector<1x4x8xf32> -> vector<8x4x8xf32>
    %292 = vector.extract_strided_slice %267 {offsets = [0, 0], sizes = [4, 8], strides = [1, 1]} : vector<8x32xf32> to vector<4x8xf32>
    %293 = vector.extract_strided_slice %267 {offsets = [0, 8], sizes = [4, 8], strides = [1, 1]} : vector<8x32xf32> to vector<4x8xf32>
    %294 = vector.extract_strided_slice %267 {offsets = [0, 16], sizes = [4, 8], strides = [1, 1]} : vector<8x32xf32> to vector<4x8xf32>
    %295 = vector.extract_strided_slice %267 {offsets = [0, 24], sizes = [4, 8], strides = [1, 1]} : vector<8x32xf32> to vector<4x8xf32>
    %296 = vector.extract_strided_slice %267 {offsets = [4, 0], sizes = [4, 8], strides = [1, 1]} : vector<8x32xf32> to vector<4x8xf32>
    %297 = vector.extract_strided_slice %267 {offsets = [4, 8], sizes = [4, 8], strides = [1, 1]} : vector<8x32xf32> to vector<4x8xf32>
    %298 = vector.extract_strided_slice %267 {offsets = [4, 16], sizes = [4, 8], strides = [1, 1]} : vector<8x32xf32> to vector<4x8xf32>
    %299 = vector.extract_strided_slice %267 {offsets = [4, 24], sizes = [4, 8], strides = [1, 1]} : vector<8x32xf32> to vector<4x8xf32>
    %300 = vector.shape_cast %292 : vector<4x8xf32> to vector<1x4x8xf32>
    %301 = vector.shape_cast %293 : vector<4x8xf32> to vector<1x4x8xf32>
    %302 = vector.shape_cast %294 : vector<4x8xf32> to vector<1x4x8xf32>
    %303 = vector.shape_cast %295 : vector<4x8xf32> to vector<1x4x8xf32>
    %304 = vector.shape_cast %296 : vector<4x8xf32> to vector<1x4x8xf32>
    %305 = vector.shape_cast %297 : vector<4x8xf32> to vector<1x4x8xf32>
    %306 = vector.shape_cast %298 : vector<4x8xf32> to vector<1x4x8xf32>
    %307 = vector.shape_cast %299 : vector<4x8xf32> to vector<1x4x8xf32>
    %308 = tpu.concatenate %300, %301, %302, %303, %304, %305, %306, %307 in 0 : vector<1x4x8xf32>, vector<1x4x8xf32>, vector<1x4x8xf32>, vector<1x4x8xf32>, vector<1x4x8xf32>, vector<1x4x8xf32>, vector<1x4x8xf32>, vector<1x4x8xf32> -> vector<8x4x8xf32>
    %309 = vector.extract_strided_slice %274 {offsets = [0, 0], sizes = [4, 8], strides = [1, 1]} : vector<8x32xf32> to vector<4x8xf32>
    %310 = vector.extract_strided_slice %274 {offsets = [0, 8], sizes = [4, 8], strides = [1, 1]} : vector<8x32xf32> to vector<4x8xf32>
    %311 = vector.extract_strided_slice %274 {offsets = [0, 16], sizes = [4, 8], strides = [1, 1]} : vector<8x32xf32> to vector<4x8xf32>
    %312 = vector.extract_strided_slice %274 {offsets = [0, 24], sizes = [4, 8], strides = [1, 1]} : vector<8x32xf32> to vector<4x8xf32>
    %313 = vector.extract_strided_slice %274 {offsets = [4, 0], sizes = [4, 8], strides = [1, 1]} : vector<8x32xf32> to vector<4x8xf32>
    %314 = vector.extract_strided_slice %274 {offsets = [4, 8], sizes = [4, 8], strides = [1, 1]} : vector<8x32xf32> to vector<4x8xf32>
    %315 = vector.extract_strided_slice %274 {offsets = [4, 16], sizes = [4, 8], strides = [1, 1]} : vector<8x32xf32> to vector<4x8xf32>
    %316 = vector.extract_strided_slice %274 {offsets = [4, 24], sizes = [4, 8], strides = [1, 1]} : vector<8x32xf32> to vector<4x8xf32>
    %317 = vector.shape_cast %309 : vector<4x8xf32> to vector<1x4x8xf32>
    %318 = vector.shape_cast %310 : vector<4x8xf32> to vector<1x4x8xf32>
    %319 = vector.shape_cast %311 : vector<4x8xf32> to vector<1x4x8xf32>
    %320 = vector.shape_cast %312 : vector<4x8xf32> to vector<1x4x8xf32>
    %321 = vector.shape_cast %313 : vector<4x8xf32> to vector<1x4x8xf32>
    %322 = vector.shape_cast %314 : vector<4x8xf32> to vector<1x4x8xf32>
    %323 = vector.shape_cast %315 : vector<4x8xf32> to vector<1x4x8xf32>
    %324 = vector.shape_cast %316 : vector<4x8xf32> to vector<1x4x8xf32>
    %325 = tpu.concatenate %317, %318, %319, %320, %321, %322, %323, %324 in 0 : vector<1x4x8xf32>, vector<1x4x8xf32>, vector<1x4x8xf32>, vector<1x4x8xf32>, vector<1x4x8xf32>, vector<1x4x8xf32>, vector<1x4x8xf32>, vector<1x4x8xf32> -> vector<8x4x8xf32>
    "tpu.trace_start"() <{level = 10 : i32, message = "gmd,gnd->gmn"}> : () -> ()
    %cst_87 = arith.constant dense<0.000000e+00> : vector<8x4x4xf32>
    %326 = tpu.matmul %291, %308, %cst_87 {dimension_numbers = #tpu.dot_dimension_numbers<[2], [2], [1], [1], [0, 0, 0, 1, 1, 1], [0], [0]>} : vector<8x4x8xf32>, vector<8x4x8xf32>, vector<8x4x4xf32> -> vector<8x4x4xf32>
    "tpu.trace_stop"() : () -> ()
    %cst_88 = arith.constant 2.82842708 : f32
    %327 = vector.broadcast %cst_88 : f32 to vector<8x4x4xf32>
    %328 = arith.divf %326, %327 : vector<8x4x4xf32>
    %cst_89 = arith.constant 0xFF800000 : f32
    %329 = vector.shape_cast %24 : vector<4x4xi1> to vector<1x4x4xi1>
    %330 = vector.broadcast %329 : vector<1x4x4xi1> to vector<8x4x4xi1>
    %331 = vector.broadcast %cst_89 : f32 to vector<8x4x4xf32>
    %332 = arith.select %330, %331, %328 : vector<8x4x4xi1>, vector<8x4x4xf32>
    %cst_90 = arith.constant dense<0xFF800000> : vector<8x4xf32>
    %333 = vector.multi_reduction <maximumf>, %332, %cst_90 [2] : vector<8x4x4xf32> to vector<8x4xf32>
    %334 = vector.shape_cast %333 : vector<8x4xf32> to vector<8x4x1xf32>
    %335 = vector.broadcast %334 : vector<8x4x1xf32> to vector<8x4x4xf32>
    %336 = arith.subf %332, %335 : vector<8x4x4xf32>
    %337 = math.exp %336 : vector<8x4x4xf32>
    %cst_91 = arith.constant dense<0.000000e+00> : vector<8x4xf32>
    %338 = vector.multi_reduction <add>, %337, %cst_91 [2] : vector<8x4x4xf32> to vector<8x4xf32>
    %339 = vector.shape_cast %338 : vector<8x4xf32> to vector<8x4x1xf32>
    %340 = vector.broadcast %339 : vector<8x4x1xf32> to vector<8x4x4xf32>
    %341 = arith.divf %337, %340 : vector<8x4x4xf32>
    "tpu.trace_start"() <{level = 10 : i32, message = "gmn,gnd->gmd"}> : () -> ()
    %cst_92 = arith.constant dense<0.000000e+00> : vector<8x4x8xf32>
    %342 = tpu.matmul %341, %325, %cst_92 {dimension_numbers = #tpu.dot_dimension_numbers<[2], [1], [1], [2], [0, 0, 0, 1, 1, 2], [0], [0]>} : vector<8x4x4xf32>, vector<8x4x8xf32>, vector<8x4x8xf32> -> vector<8x4x8xf32>
    "tpu.trace_stop"() : () -> ()
    %343 = vector.extract_strided_slice %342 {offsets = [0, 0, 0], sizes = [1, 4, 8], strides = [1, 1, 1]} : vector<8x4x8xf32> to vector<1x4x8xf32>
    %344 = vector.shape_cast %343 : vector<1x4x8xf32> to vector<4x8xf32>
    %345 = vector.extract_strided_slice %342 {offsets = [4, 0, 0], sizes = [1, 4, 8], strides = [1, 1, 1]} : vector<8x4x8xf32> to vector<1x4x8xf32>
    %346 = vector.shape_cast %345 : vector<1x4x8xf32> to vector<4x8xf32>
    %347 = tpu.concatenate %344, %346 in 0 : vector<4x8xf32>, vector<4x8xf32> -> vector<8x8xf32>
    %348 = vector.extract_strided_slice %342 {offsets = [1, 0, 0], sizes = [1, 4, 8], strides = [1, 1, 1]} : vector<8x4x8xf32> to vector<1x4x8xf32>
    %349 = vector.shape_cast %348 : vector<1x4x8xf32> to vector<4x8xf32>
    %350 = vector.extract_strided_slice %342 {offsets = [5, 0, 0], sizes = [1, 4, 8], strides = [1, 1, 1]} : vector<8x4x8xf32> to vector<1x4x8xf32>
    %351 = vector.shape_cast %350 : vector<1x4x8xf32> to vector<4x8xf32>
    %352 = tpu.concatenate %349, %351 in 0 : vector<4x8xf32>, vector<4x8xf32> -> vector<8x8xf32>
    %353 = vector.extract_strided_slice %342 {offsets = [2, 0, 0], sizes = [1, 4, 8], strides = [1, 1, 1]} : vector<8x4x8xf32> to vector<1x4x8xf32>
    %354 = vector.shape_cast %353 : vector<1x4x8xf32> to vector<4x8xf32>
    %355 = vector.extract_strided_slice %342 {offsets = [6, 0, 0], sizes = [1, 4, 8], strides = [1, 1, 1]} : vector<8x4x8xf32> to vector<1x4x8xf32>
    %356 = vector.shape_cast %355 : vector<1x4x8xf32> to vector<4x8xf32>
    %357 = tpu.concatenate %354, %356 in 0 : vector<4x8xf32>, vector<4x8xf32> -> vector<8x8xf32>
    %358 = vector.extract_strided_slice %342 {offsets = [3, 0, 0], sizes = [1, 4, 8], strides = [1, 1, 1]} : vector<8x4x8xf32> to vector<1x4x8xf32>
    %359 = vector.shape_cast %358 : vector<1x4x8xf32> to vector<4x8xf32>
    %360 = vector.extract_strided_slice %342 {offsets = [7, 0, 0], sizes = [1, 4, 8], strides = [1, 1, 1]} : vector<8x4x8xf32> to vector<1x4x8xf32>
    %361 = vector.shape_cast %360 : vector<1x4x8xf32> to vector<4x8xf32>
    %362 = tpu.concatenate %359, %361 in 0 : vector<4x8xf32>, vector<4x8xf32> -> vector<8x8xf32>
    %363 = tpu.concatenate %347, %352, %357, %362 in 1 : vector<8x8xf32>, vector<8x8xf32>, vector<8x8xf32>, vector<8x8xf32> -> vector<8x32xf32>
    %c1_93 = arith.constant 1 : index
    %c0_94 = arith.constant 0 : index
    %c0_95 = arith.constant 0 : index
    %364 = vector.load %arg14[%c1_93, %c0_94, %c0_95] : memref<2x32x32xf32, #tpu.memory_space<vmem>>, vector<1x32x32xf32>
    %365 = vector.shape_cast %364 : vector<1x32x32xf32> to vector<32x32xf32>
    %cst_96 = arith.constant dense<0.000000e+00> : vector<8x32xf32>
    %366 = tpu.matmul %363, %365, %cst_96 {dimension_numbers = #tpu.dot_dimension_numbers<[1], [0], [0], [1], [0, 0, 1, 1], [], []>} : vector<8x32xf32>, vector<32x32xf32>, vector<8x32xf32> -> vector<8x32xf32>
    %c1_97 = arith.constant 1 : index
    %c0_98 = arith.constant 0 : index
    %c0_99 = arith.constant 0 : index
    %367 = vector.load %arg15[%c1_97, %c0_98, %c0_99] : memref<2x1x32xf32, #tpu.memory_space<vmem>>, vector<1x1x32xf32>
    %368 = vector.shape_cast %367 : vector<1x1x32xf32> to vector<1x32xf32>
    %369 = vector.broadcast %368 : vector<1x32xf32> to vector<8x32xf32>
    %370 = arith.addf %366, %369 : vector<8x32xf32>
    %371 = arith.addf %370, %168 : vector<8x32xf32>
    %372 = vector.extract_strided_slice %341 {offsets = [0, 0, 0], sizes = [1, 4, 4], strides = [1, 1, 1]} : vector<8x4x4xf32> to vector<1x4x4xf32>
    %373 = vector.shape_cast %372 : vector<1x4x4xf32> to vector<4x4xf32>
    %374 = vector.extract_strided_slice %373 {offsets = [0, 0], sizes = [1, 4], strides = [1, 1]} : vector<4x4xf32> to vector<1x4xf32>
    %375 = vector.extract_strided_slice %373 {offsets = [1, 0], sizes = [1, 4], strides = [1, 1]} : vector<4x4xf32> to vector<1x4xf32>
    %376 = vector.extract_strided_slice %373 {offsets = [2, 0], sizes = [1, 4], strides = [1, 1]} : vector<4x4xf32> to vector<1x4xf32>
    %377 = vector.extract_strided_slice %373 {offsets = [3, 0], sizes = [1, 4], strides = [1, 1]} : vector<4x4xf32> to vector<1x4xf32>
    %378 = tpu.concatenate %374, %375, %376, %377 in 1 : vector<1x4xf32>, vector<1x4xf32>, vector<1x4xf32>, vector<1x4xf32> -> vector<1x16xf32>
    %379 = vector.extract_strided_slice %341 {offsets = [1, 0, 0], sizes = [1, 4, 4], strides = [1, 1, 1]} : vector<8x4x4xf32> to vector<1x4x4xf32>
    %380 = vector.shape_cast %379 : vector<1x4x4xf32> to vector<4x4xf32>
    %381 = vector.extract_strided_slice %380 {offsets = [0, 0], sizes = [1, 4], strides = [1, 1]} : vector<4x4xf32> to vector<1x4xf32>
    %382 = vector.extract_strided_slice %380 {offsets = [1, 0], sizes = [1, 4], strides = [1, 1]} : vector<4x4xf32> to vector<1x4xf32>
    %383 = vector.extract_strided_slice %380 {offsets = [2, 0], sizes = [1, 4], strides = [1, 1]} : vector<4x4xf32> to vector<1x4xf32>
    %384 = vector.extract_strided_slice %380 {offsets = [3, 0], sizes = [1, 4], strides = [1, 1]} : vector<4x4xf32> to vector<1x4xf32>
    %385 = tpu.concatenate %381, %382, %383, %384 in 1 : vector<1x4xf32>, vector<1x4xf32>, vector<1x4xf32>, vector<1x4xf32> -> vector<1x16xf32>
    %386 = vector.extract_strided_slice %341 {offsets = [2, 0, 0], sizes = [1, 4, 4], strides = [1, 1, 1]} : vector<8x4x4xf32> to vector<1x4x4xf32>
    %387 = vector.shape_cast %386 : vector<1x4x4xf32> to vector<4x4xf32>
    %388 = vector.extract_strided_slice %387 {offsets = [0, 0], sizes = [1, 4], strides = [1, 1]} : vector<4x4xf32> to vector<1x4xf32>
    %389 = vector.extract_strided_slice %387 {offsets = [1, 0], sizes = [1, 4], strides = [1, 1]} : vector<4x4xf32> to vector<1x4xf32>
    %390 = vector.extract_strided_slice %387 {offsets = [2, 0], sizes = [1, 4], strides = [1, 1]} : vector<4x4xf32> to vector<1x4xf32>
    %391 = vector.extract_strided_slice %387 {offsets = [3, 0], sizes = [1, 4], strides = [1, 1]} : vector<4x4xf32> to vector<1x4xf32>
    %392 = tpu.concatenate %388, %389, %390, %391 in 1 : vector<1x4xf32>, vector<1x4xf32>, vector<1x4xf32>, vector<1x4xf32> -> vector<1x16xf32>
    %393 = vector.extract_strided_slice %341 {offsets = [3, 0, 0], sizes = [1, 4, 4], strides = [1, 1, 1]} : vector<8x4x4xf32> to vector<1x4x4xf32>
    %394 = vector.shape_cast %393 : vector<1x4x4xf32> to vector<4x4xf32>
    %395 = vector.extract_strided_slice %394 {offsets = [0, 0], sizes = [1, 4], strides = [1, 1]} : vector<4x4xf32> to vector<1x4xf32>
    %396 = vector.extract_strided_slice %394 {offsets = [1, 0], sizes = [1, 4], strides = [1, 1]} : vector<4x4xf32> to vector<1x4xf32>
    %397 = vector.extract_strided_slice %394 {offsets = [2, 0], sizes = [1, 4], strides = [1, 1]} : vector<4x4xf32> to vector<1x4xf32>
    %398 = vector.extract_strided_slice %394 {offsets = [3, 0], sizes = [1, 4], strides = [1, 1]} : vector<4x4xf32> to vector<1x4xf32>
    %399 = tpu.concatenate %395, %396, %397, %398 in 1 : vector<1x4xf32>, vector<1x4xf32>, vector<1x4xf32>, vector<1x4xf32> -> vector<1x16xf32>
    %400 = tpu.concatenate %378, %385, %392, %399 in 1 : vector<1x16xf32>, vector<1x16xf32>, vector<1x16xf32>, vector<1x16xf32> -> vector<1x64xf32>
    %401 = vector.extract_strided_slice %341 {offsets = [4, 0, 0], sizes = [1, 4, 4], strides = [1, 1, 1]} : vector<8x4x4xf32> to vector<1x4x4xf32>
    %402 = vector.shape_cast %401 : vector<1x4x4xf32> to vector<4x4xf32>
    %403 = vector.extract_strided_slice %402 {offsets = [0, 0], sizes = [1, 4], strides = [1, 1]} : vector<4x4xf32> to vector<1x4xf32>
    %404 = vector.extract_strided_slice %402 {offsets = [1, 0], sizes = [1, 4], strides = [1, 1]} : vector<4x4xf32> to vector<1x4xf32>
    %405 = vector.extract_strided_slice %402 {offsets = [2, 0], sizes = [1, 4], strides = [1, 1]} : vector<4x4xf32> to vector<1x4xf32>
    %406 = vector.extract_strided_slice %402 {offsets = [3, 0], sizes = [1, 4], strides = [1, 1]} : vector<4x4xf32> to vector<1x4xf32>
    %407 = tpu.concatenate %403, %404, %405, %406 in 1 : vector<1x4xf32>, vector<1x4xf32>, vector<1x4xf32>, vector<1x4xf32> -> vector<1x16xf32>
    %408 = vector.extract_strided_slice %341 {offsets = [5, 0, 0], sizes = [1, 4, 4], strides = [1, 1, 1]} : vector<8x4x4xf32> to vector<1x4x4xf32>
    %409 = vector.shape_cast %408 : vector<1x4x4xf32> to vector<4x4xf32>
    %410 = vector.extract_strided_slice %409 {offsets = [0, 0], sizes = [1, 4], strides = [1, 1]} : vector<4x4xf32> to vector<1x4xf32>
    %411 = vector.extract_strided_slice %409 {offsets = [1, 0], sizes = [1, 4], strides = [1, 1]} : vector<4x4xf32> to vector<1x4xf32>
    %412 = vector.extract_strided_slice %409 {offsets = [2, 0], sizes = [1, 4], strides = [1, 1]} : vector<4x4xf32> to vector<1x4xf32>
    %413 = vector.extract_strided_slice %409 {offsets = [3, 0], sizes = [1, 4], strides = [1, 1]} : vector<4x4xf32> to vector<1x4xf32>
    %414 = tpu.concatenate %410, %411, %412, %413 in 1 : vector<1x4xf32>, vector<1x4xf32>, vector<1x4xf32>, vector<1x4xf32> -> vector<1x16xf32>
    %415 = vector.extract_strided_slice %341 {offsets = [6, 0, 0], sizes = [1, 4, 4], strides = [1, 1, 1]} : vector<8x4x4xf32> to vector<1x4x4xf32>
    %416 = vector.shape_cast %415 : vector<1x4x4xf32> to vector<4x4xf32>
    %417 = vector.extract_strided_slice %416 {offsets = [0, 0], sizes = [1, 4], strides = [1, 1]} : vector<4x4xf32> to vector<1x4xf32>
    %418 = vector.extract_strided_slice %416 {offsets = [1, 0], sizes = [1, 4], strides = [1, 1]} : vector<4x4xf32> to vector<1x4xf32>
    %419 = vector.extract_strided_slice %416 {offsets = [2, 0], sizes = [1, 4], strides = [1, 1]} : vector<4x4xf32> to vector<1x4xf32>
    %420 = vector.extract_strided_slice %416 {offsets = [3, 0], sizes = [1, 4], strides = [1, 1]} : vector<4x4xf32> to vector<1x4xf32>
    %421 = tpu.concatenate %417, %418, %419, %420 in 1 : vector<1x4xf32>, vector<1x4xf32>, vector<1x4xf32>, vector<1x4xf32> -> vector<1x16xf32>
    %422 = vector.extract_strided_slice %341 {offsets = [7, 0, 0], sizes = [1, 4, 4], strides = [1, 1, 1]} : vector<8x4x4xf32> to vector<1x4x4xf32>
    %423 = vector.shape_cast %422 : vector<1x4x4xf32> to vector<4x4xf32>
    %424 = vector.extract_strided_slice %423 {offsets = [0, 0], sizes = [1, 4], strides = [1, 1]} : vector<4x4xf32> to vector<1x4xf32>
    %425 = vector.extract_strided_slice %423 {offsets = [1, 0], sizes = [1, 4], strides = [1, 1]} : vector<4x4xf32> to vector<1x4xf32>
    %426 = vector.extract_strided_slice %423 {offsets = [2, 0], sizes = [1, 4], strides = [1, 1]} : vector<4x4xf32> to vector<1x4xf32>
    %427 = vector.extract_strided_slice %423 {offsets = [3, 0], sizes = [1, 4], strides = [1, 1]} : vector<4x4xf32> to vector<1x4xf32>
    %428 = tpu.concatenate %424, %425, %426, %427 in 1 : vector<1x4xf32>, vector<1x4xf32>, vector<1x4xf32>, vector<1x4xf32> -> vector<1x16xf32>
    %429 = tpu.concatenate %407, %414, %421, %428 in 1 : vector<1x16xf32>, vector<1x16xf32>, vector<1x16xf32>, vector<1x16xf32> -> vector<1x64xf32>
    %430 = tpu.concatenate %400, %429 in 0 : vector<1x64xf32>, vector<1x64xf32> -> vector<2x64xf32>
    %c0_100 = arith.constant 0 : index
    %c0_101 = arith.constant 0 : index
    %431 = vector.load %arg16[%c0_100, %c0_101] : memref<8x32xf32, #tpu.memory_space<vmem>>, vector<8x32xf32>
    tpu.vector_store %arg16[%c0_100, %c0_101], %371 {strides = array<i32>} : memref<8x32xf32, #tpu.memory_space<vmem>>, vector<8x32xf32>,
    %432 = tpu.concatenate %227, %430 in 1 : vector<2x64xf32>, vector<2x64xf32> -> vector<2x128xf32>
    %c0_102 = arith.constant 0 : index
    %c0_103 = arith.constant 0 : index
    %433 = vector.load %arg17[%c0_102, %c0_103] : memref<2x128xf32, #tpu.memory_space<vmem>>, vector<2x128xf32>
    tpu.vector_store %arg17[%c0_102, %c0_103], %432 {strides = array<i32>} : memref<2x128xf32, #tpu.memory_space<vmem>>, vector<2x128xf32>,
    return
  }
  func.func @transform_0(%arg0: i32) -> (i32, i32) {
    %c0_i32 = arith.constant 0 : i32
    %c0_i32_0 = arith.constant 0 : i32
    %c0_i32_1 = arith.constant 0 : i32
    return %c0_i32, %c0_i32_0 : i32, i32
  }
  func.func @transform_1(%arg0: i32) -> (i32, i32) {
    %c0_i32 = arith.constant 0 : i32
    %c0_i32_0 = arith.constant 0 : i32
    %c0_i32_1 = arith.constant 0 : i32
    return %c0_i32, %c0_i32_0 : i32, i32
  }
  func.func @transform_2(%arg0: i32) -> (i32, i32) {
    %c0_i32 = arith.constant 0 : i32
    %c0_i32_0 = arith.constant 0 : i32
    %c0_i32_1 = arith.constant 0 : i32
    return %c0_i32, %c0_i32_0 : i32, i32
  }
  func.func @transform_3(%arg0: i32) -> (i32, i32) {
    %c0_i32 = arith.constant 0 : i32
    %c0_i32_0 = arith.constant 0 : i32
    %c0_i32_1 = arith.constant 0 : i32
    return %c0_i32, %c0_i32_0 : i32, i32
  }
  func.func @transform_4(%arg0: i32) -> (i32, i32) {
    %c0_i32 = arith.constant 0 : i32
    %c0_i32_0 = arith.constant 0 : i32
    %c0_i32_1 = arith.constant 0 : i32
    return %c0_i32, %c0_i32_0 : i32, i32
  }
  func.func @transform_5(%arg0: i32) -> (i32, i32, i32) {
    %c0_i32 = arith.constant 0 : i32
    %c0_i32_0 = arith.constant 0 : i32
    %c0_i32_1 = arith.constant 0 : i32
    %c0_i32_2 = arith.constant 0 : i32
    return %c0_i32, %c0_i32_0, %c0_i32_1 : i32, i32, i32
  }
  func.func @transform_6(%arg0: i32) -> (i32, i32, i32) {
    %c0_i32 = arith.constant 0 : i32
    %c0_i32_0 = arith.constant 0 : i32
    %c0_i32_1 = arith.constant 0 : i32
    %c0_i32_2 = arith.constant 0 : i32
    return %c0_i32, %c0_i32_0, %c0_i32_1 : i32, i32, i32
  }
  func.func @transform_7(%arg0: i32) -> (i32, i32, i32) {
    %c0_i32 = arith.constant 0 : i32
    %c0_i32_0 = arith.constant 0 : i32
    %c0_i32_1 = arith.constant 0 : i32
    %c0_i32_2 = arith.constant 0 : i32
    return %c0_i32, %c0_i32_0, %c0_i32_1 : i32, i32, i32
  }
  func.func @transform_8(%arg0: i32) -> (i32, i32, i32) {
    %c0_i32 = arith.constant 0 : i32
    %c0_i32_0 = arith.constant 0 : i32
    %c0_i32_1 = arith.constant 0 : i32
    %c0_i32_2 = arith.constant 0 : i32
    return %c0_i32, %c0_i32_0, %c0_i32_1 : i32, i32, i32
  }
  func.func @transform_9(%arg0: i32) -> (i32, i32, i32) {
    %c0_i32 = arith.constant 0 : i32
    %c0_i32_0 = arith.constant 0 : i32
    %c0_i32_1 = arith.constant 0 : i32
    %c0_i32_2 = arith.constant 0 : i32
    return %c0_i32, %c0_i32_0, %c0_i32_1 : i32, i32, i32
  }
  func.func @transform_10(%arg0: i32) -> (i32, i32, i32) {
    %c0_i32 = arith.constant 0 : i32
    %c0_i32_0 = arith.constant 0 : i32
    %c0_i32_1 = arith.constant 0 : i32
    %c0_i32_2 = arith.constant 0 : i32
    return %c0_i32, %c0_i32_0, %c0_i32_1 : i32, i32, i32
  }
  func.func @transform_11(%arg0: i32) -> (i32, i32, i32) {
    %c0_i32 = arith.constant 0 : i32
    %c0_i32_0 = arith.constant 0 : i32
    %c0_i32_1 = arith.constant 0 : i32
    %c0_i32_2 = arith.constant 0 : i32
    return %c0_i32, %c0_i32_0, %c0_i32_1 : i32, i32, i32
  }
  func.func @transform_12(%arg0: i32) -> (i32, i32, i32) {
    %c0_i32 = arith.constant 0 : i32
    %c0_i32_0 = arith.constant 0 : i32
    %c0_i32_1 = arith.constant 0 : i32
    %c0_i32_2 = arith.constant 0 : i32
    return %c0_i32, %c0_i32_0, %c0_i32_1 : i32, i32, i32
  }
  func.func @transform_13(%arg0: i32) -> (i32, i32, i32) {
    %c0_i32 = arith.constant 0 : i32
    %c0_i32_0 = arith.constant 0 : i32
    %c0_i32_1 = arith.constant 0 : i32
    %c0_i32_2 = arith.constant 0 : i32
    return %c0_i32, %c0_i32_0, %c0_i32_1 : i32, i32, i32
  }
  func.func @transform_14(%arg0: i32) -> (i32, i32, i32) {
    %c0_i32 = arith.constant 0 : i32
    %c0_i32_0 = arith.constant 0 : i32
    %c0_i32_1 = arith.constant 0 : i32
    %c0_i32_2 = arith.constant 0 : i32
    return %c0_i32, %c0_i32_0, %c0_i32_1 : i32, i32, i32
  }
  func.func @transform_15(%arg0: i32) -> (i32, i32) {
    %c0_i32 = arith.constant 0 : i32
    %c0_i32_0 = arith.constant 0 : i32
    %c0_i32_1 = arith.constant 0 : i32
    return %c0_i32, %c0_i32_0 : i32, i32
  }
  func.func @transform_16(%arg0: i32) -> (i32, i32) {
    %c0_i32 = arith.constant 0 : i32
    %c0_i32_0 = arith.constant 0 : i32
    %c0_i32_1 = arith.constant 0 : i32
    return %c0_i32, %c0_i32_0 : i32, i32
  }
}

</mosaic_0001>

<bundles_post_ra>
// kernel: tpu_custom_call.1
= control target key start
LH: loop header
LB: loop body
LE: loop exit
PB: predicated region body
PF: predicated region fallthrough
CT: control target
= control target key end

     0   :  { %s6044_s0 = inlined_call_operand.hbm [shape: f32[2,72], index: 0, kind: input, shape index: {}]   ;;  %s6045_s1 = inlined_call_operand.hbm [shape: f32[72,128], index: 1, kind: input, shape index: {}]   ;;  %s6046_s2 = inlined_call_operand.vmem [shape: f32[1,128], index: 2, kind: input, shape index: {}]   ;;  %s6047_s3 = inlined_call_operand.hbm [shape: f32[128,128], index: 3, kind: input, shape index: {}]   ;;  %s6048_s4 = inlined_call_operand.vmem [shape: f32[1,128], index: 4, kind: input, shape index: {}]   ;;  %s6049_s5 = inlined_call_operand.vmem [shape: f32[2,1,32], index: 5, kind: input, shape index: {}]   ;;  %s6050_s6 = inlined_call_operand.vmem [shape: f32[2,1,32], index: 6, kind: input, shape index: {}]   ;;  %s6051_s7 = inlined_call_operand.hbm [shape: f32[2,32,32], index: 7, kind: input, shape index: {}]   ;;  %s6052_s8 = inlined_call_operand.vmem [shape: f32[2,1,32], index: 8, kind: input, shape index: {}]   ;;  %s6053_s9 = inlined_call_operand.hbm [shape: f32[2,32,32], index: 9, kind: input, shape index: {}]   ;;  %s6054_s10 = inlined_call_operand.vmem [shape: f32[2,1,32], index: 10, kind: input, shape index: {}]   ;;  %s6055_s11 = inlined_call_operand.hbm [shape: f32[2,32,32], index: 11, kind: input, shape index: {}]   ;;  %s6056_s12 = inlined_call_operand.vmem [shape: f32[2,1,32], index: 12, kind: input, shape index: {}]   ;;  %s6057_s13 = inlined_call_operand.hbm [shape: f32[2,32,32], index: 13, kind: input, shape index: {}]   ;;  %s6058_s14 = inlined_call_operand.vmem [shape: f32[2,1,32], index: 14, kind: input, shape index: {}]   ;;  %s6059_s15 = inlined_call_operand.hbm [shape: f32[8,32], index: 15, kind: output, shape index: {0}]   ;;  %s6060_s16 = inlined_call_operand.hbm [shape: f32[2,128], index: 16, kind: output, shape index: {1}]  }
   0x1   :  { %6063 = sst [smem:[#allocation23_spill]] %s6044_s0 }
   0x2   :  { %6064 = sst [smem:[#allocation24_spill]] %s6060_s16 }
   0x3   :  { %22 = vsyncpa [#allocation3], 0 }
   0x4   :  { %23 = vsyncpa [#allocation6], 0 }
   0x5   :  { %24 = vsyncpa [#allocation9], 0 }
   0x6   :  { %25 = vsyncpa [#allocation12], 0 }
   0x7   :  { %26 = vsyncpa [#allocation4], 0 }
   0x8   :  { %27 = vsyncpa [#allocation16], 0  ;;  %s5120_s21 = smov [#allocation5]   ;;  %s4910_s25 = scalar_lea.hbm %s6045_s1, 1152 }
   0x9   :  { %s43_s22 = sshll.u32 %s5120_s21, 4  ;;  %p4911_p0 = scmp.ne.s32.totalorder %s6045_s1, %s4910_s25  ;;  %s44_s22 = int_to_ptr.vmem [resolvable:$true] %s43_s22 }
   0xa   :  { %p4914_p1 = scmp.lt.u32.totalorder %s4910_s25, %s6045_s1 }
   0xc   :  { %p4916_p2 = pnand %p4914_p1, %p4911_p0 }
   0xe   :  { %4919 = shalt.err (!%p4916_p2)
}
   0xf   :  { %s4920_s30 = scalar_lea.vmem %s44_s22, 1152  ;;  %p4925_p4 = scmp.lt.s32.totalorder %s44_s22, %s44_s22 }
  0x10   :  { %p4921_p3 = scmp.ne.s32.totalorder %s44_s22, %s4920_s30  ;;  %p4926_p5 = scmp.lt.s32.totalorder %s4920_s30, %s4920_s30 }
  0x12   :  { %p4927_p6 = por %p4926_p5, %p4925_p4 }
  0x14   :  { %p4928_p7 = pnand %p4927_p6, %p4921_p3 }
  0x16   :  { %4931 = shalt.err (!%p4928_p7)
}
  0x17   :  { %s5121_s0 = smov 128   ;;  %s5122_s17 = smov 8  }
  0x18   :  { %49 = dma.hbm_to_vmem [thread:$0]  %s6045_s1, 1152, %s44_s22, [#allocation6], %s5121_s0, %s5121_s0, %s5122_s17  }
  0x19   :  { %s5123_s20 = smov [#allocation8]   ;;  %s5124_s23 = smov [#allocation11]  }
  0x1a   :  { %s75_s21 = sshll.u32 %s5123_s20, 4  ;;  %s103_s24 = sshll.u32 %s5124_s23, 4  ;;  %s76_s21 = int_to_ptr.vmem [resolvable:$true] %s75_s21  ;;  %s104_s24 = int_to_ptr.vmem [resolvable:$true] %s103_s24 }
  0x1b   :  { %s4932_s27 = scalar_lea.hbm %s6051_s7, 1024 }
  0x1c   :  { %p4933_p8 = scmp.ne.s32.totalorder %s6051_s7, %s4932_s27  ;;  %p4936_p9 = scmp.lt.u32.totalorder %s4932_s27, %s6051_s7 }
  0x1e   :  { %p4938_p10 = pnand %p4936_p9, %p4933_p8 }
  0x20   :  { %4941 = shalt.err (!%p4938_p10)
}
  0x21   :  { %s4942_s1 = scalar_lea.vmem %s76_s21, 1024  ;;  %p4947_p12 = scmp.lt.s32.totalorder %s76_s21, %s76_s21 }
  0x22   :  { %p4943_p11 = scmp.ne.s32.totalorder %s76_s21, %s4942_s1  ;;  %p4948_p13 = scmp.lt.s32.totalorder %s4942_s1, %s4942_s1 }
  0x24   :  { %p4949_p0 = por %p4948_p13, %p4947_p12 }
  0x26   :  { %p4950_p1 = pnand %p4949_p0, %p4943_p11 }
  0x28   :  { %4953 = shalt.err (!%p4950_p1)
}
  0x29   :  { %81 = dma.hbm_to_vmem [thread:$0]  %s6051_s7, 1024, %s76_s21, [#allocation9], %s5121_s0, %s5121_s0, %s5122_s17  }
  0x2a   :  { %s4954_s20 = scalar_lea.hbm %s6055_s11, 1024 }
  0x2b   :  { %p4955_p2 = scmp.ne.s32.totalorder %s6055_s11, %s4954_s20  ;;  %p4958_p3 = scmp.lt.u32.totalorder %s4954_s20, %s6055_s11 }
  0x2d   :  { %p4960_p4 = pnand %p4958_p3, %p4955_p2 }
  0x2f   :  { %4963 = shalt.err (!%p4960_p4)
}
  0x30   :  { %s4964_s28 = scalar_lea.vmem %s104_s24, 1024  ;;  %p4969_p6 = scmp.lt.s32.totalorder %s104_s24, %s104_s24 }
  0x31   :  { %p4965_p5 = scmp.ne.s32.totalorder %s104_s24, %s4964_s28  ;;  %p4970_p7 = scmp.lt.s32.totalorder %s4964_s28, %s4964_s28 }
  0x33   :  { %p4971_p8 = por %p4970_p7, %p4969_p6 }
  0x35   :  { %p4972_p9 = pnand %p4971_p8, %p4965_p5 }
  0x37   :  { %4975 = shalt.err (!%p4972_p9)
}
  0x38   :  { %109 = dma.hbm_to_vmem [thread:$0]  %s6055_s11, 1024, %s104_s24, [#allocation12], %s5121_s0, %s5121_s0, %s5122_s17  }
  0x39   :  { %s5125_s29 = smov [#allocation2]   ;;  %s5126_s1 = smov [#allocation7]  }
  0x3a   :  { %s34_s30 = sshll.u32 %s5125_s29, 4  ;;  %s57_s22 = sshll.u32 %s5126_s1, 4  ;;  %s35_s30 = int_to_ptr.vmem [resolvable:$true] %s34_s30  ;;  %s58_s22 = int_to_ptr.vmem [resolvable:$true] %s57_s22 }
  0x3b   :  { %s6065_s16 = sld [smem:[#allocation23_spill]] }
  0x41   :  { %s4976_s20 = scalar_lea.hbm %s6065_s16, 32 }
  0x42   :  { %p4977_p10 = scmp.ne.s32.totalorder %s6065_s16, %s4976_s20  ;;  %p4980_p11 = scmp.lt.u32.totalorder %s4976_s20, %s6065_s16 }
  0x44   :  { %p4982_p12 = pnand %p4980_p11, %p4977_p10 }
  0x46   :  { %4985 = shalt.err (!%p4982_p12)
}
  0x47   :  { %s4986_s11 = scalar_lea.vmem %s35_s30, 32  ;;  %p4991_p0 = scmp.lt.s32.totalorder %s35_s30, %s35_s30 }
  0x48   :  { %p4987_p13 = scmp.ne.s32.totalorder %s35_s30, %s4986_s11  ;;  %p4992_p1 = scmp.lt.s32.totalorder %s4986_s11, %s4986_s11 }
  0x4a   :  { %p4993_p2 = por %p4992_p1, %p4991_p0 }
  0x4c   :  { %p4994_p3 = pnand %p4993_p2, %p4987_p13 }
  0x4e   :  { %4997 = shalt.err (!%p4994_p3)
}
  0x4f   :  { %37 = dma.hbm_to_vmem [thread:$0]  %s6065_s16, 32, %s35_s30, [#allocation3]  }
  0x50   :  { %s4998_s29 = scalar_lea.hbm %s6047_s3, 2048 }
  0x51   :  { %p4999_p4 = scmp.ne.s32.totalorder %s6047_s3, %s4998_s29  ;;  %p5002_p5 = scmp.lt.u32.totalorder %s4998_s29, %s6047_s3 }
  0x53   :  { %p5004_p6 = pnand %p5002_p5, %p4999_p4 }
  0x55   :  { %5007 = shalt.err (!%p5004_p6)
}
  0x56   :  { %s5008_s23 = scalar_lea.vmem %s58_s22, 2048  ;;  %p5013_p8 = scmp.lt.s32.totalorder %s58_s22, %s58_s22 }
  0x57   :  { %p5009_p7 = scmp.ne.s32.totalorder %s58_s22, %s5008_s23  ;;  %p5014_p9 = scmp.lt.s32.totalorder %s5008_s23, %s5008_s23 }
  0x59   :  { %p5015_p10 = por %p5014_p9, %p5013_p8 }
  0x5b   :  { %p5016_p11 = pnand %p5015_p10, %p5009_p7 }
  0x5d   :  { %5019 = shalt.err (!%p5016_p11)
}
  0x5e   :  { %63 = dma.hbm_to_vmem [thread:$0]  %s6047_s3, 2048, %s58_s22, [#allocation6], %s5121_s0, %s5121_s0, %s5122_s17  }
  0x5f   :  { %s5127_s25 = smov [#allocation10]   ;;  %s5128_s27 = smov [#allocation13]  }
  0x60   :  { %s89_s26 = sshll.u32 %s5127_s25, 4  ;;  %s117_s11 = sshll.u32 %s5128_s27, 4  ;;  %s90_s26 = int_to_ptr.vmem [resolvable:$true] %s89_s26  ;;  %s118_s11 = int_to_ptr.vmem [resolvable:$true] %s117_s11 }
  0x61   :  { %s5020_s7 = scalar_lea.hbm %s6053_s9, 1024 }
  0x62   :  { %p5021_p12 = scmp.ne.s32.totalorder %s6053_s9, %s5020_s7  ;;  %p5024_p13 = scmp.lt.u32.totalorder %s5020_s7, %s6053_s9 }
  0x64   :  { %p5026_p0 = pnand %p5024_p13, %p5021_p12 }
  0x66   :  { %5029 = shalt.err (!%p5026_p0)
}
  0x67   :  { %s5030_s3 = scalar_lea.vmem %s90_s26, 1024  ;;  %p5035_p2 = scmp.lt.s32.totalorder %s90_s26, %s90_s26 }
  0x68   :  { %p5031_p1 = scmp.ne.s32.totalorder %s90_s26, %s5030_s3  ;;  %p5036_p3 = scmp.lt.s32.totalorder %s5030_s3, %s5030_s3 }
  0x6a   :  { %p5037_p4 = por %p5036_p3, %p5035_p2 }
  0x6c   :  { %p5038_p5 = pnand %p5037_p4, %p5031_p1 }
  0x6e   :  { %5041 = shalt.err (!%p5038_p5)
}
  0x6f   :  { %95 = dma.hbm_to_vmem [thread:$0]  %s6053_s9, 1024, %s90_s26, [#allocation9], %s5121_s0, %s5121_s0, %s5122_s17  }
  0x70   :  { %s5042_s30 = scalar_lea.hbm %s6057_s13, 1024 }
  0x71   :  { %p5043_p6 = scmp.ne.s32.totalorder %s6057_s13, %s5042_s30  ;;  %p5046_p7 = scmp.lt.u32.totalorder %s5042_s30, %s6057_s13 }
  0x73   :  { %p5048_p8 = pnand %p5046_p7, %p5043_p6 }
  0x75   :  { %5051 = shalt.err (!%p5048_p8)
}
  0x76   :  { %s5052_s28 = scalar_lea.vmem %s118_s11, 1024  ;;  %p5057_p10 = scmp.lt.s32.totalorder %s118_s11, %s118_s11 }
  0x77   :  { %p5053_p9 = scmp.ne.s32.totalorder %s118_s11, %s5052_s28  ;;  %p5058_p11 = scmp.lt.s32.totalorder %s5052_s28, %s5052_s28 }
  0x79   :  { %p5059_p12 = por %p5058_p11, %p5057_p10 }
  0x7b   :  { %p5060_p13 = pnand %p5059_p12, %p5053_p9 }
  0x7d   :  { %5063 = shalt.err (!%p5060_p13)
}
  0x7e   :  { %123 = dma.hbm_to_vmem [thread:$0]  %s6057_s13, 1024, %s118_s11, [#allocation12], %s5121_s0, %s5121_s0, %s5122_s17  }
  0x7f   :  { %5108 = dma.done.wait [#allocation3], 32  }
  0x80   :  { %5109 = vsyncadd [#allocation3], 4294967264 }
  0x81   :  { %5110 = dma.done.wait [#allocation6], 3200  }
  0x82   :  { %5111 = vsyncadd [#allocation6], 4294964096 }
  0x83   :  { %5112 = dma.done.wait [#allocation9], 2048  }
  0x84   :  { %5113 = vsyncadd [#allocation9], 4294965248 }
  0x85   :  { %5114 = dma.done.wait [#allocation12], 2048  }
  0x86   :  { %5115 = vsyncadd [#allocation12], 4294965248  ;;  %v5129_v0 = vmov 0.0|0.0   ;;  %vm5130_vm0 = vmmov 0   ;;  %v5131_v1 = vmov 0.0   ;;  %v148_v2 = vld [vmem:[#allocation5] sm:$0xff] }
  0x87   :  { %4733 = vmatprep.subr.bf16.mxu0 %v5129_v0  ;;  %4447 = vmatprep.mubr.msk.f32.mxu0 %vm5130_vm0, %v5131_v1  ;;  %v149_v3 = vld [vmem:[#allocation5 + $0x8] sm:$0xff]  ;;  %v150_v4 = vld [vmem:[#allocation5 + $0x10] sm:$0xff]  ;;  %v151_v6 = vld [vmem:[#allocation5 + $0x18] sm:$0xff]  ;;  %vm164_vm1 = vcmask 588800   ;;  %s5132_s21 = smov 32   ;;  %s5134_s29 = smov 64  }
  0x88   :  { %4745 = vmatprep.subr.bf16.mxu1 %v5129_v0  ;;  %4482 = vmatprep.mubr.msk.f32.mxu1 %vm5130_vm0, %v5131_v1  ;;  %v4734_v5 = vpack.c.bf16 %v149_v3, %v148_v2  ;;  %v4737_v7 = vpack.c.bf16 %v151_v6, %v150_v4  ;;  %v152_v8 = vld [vmem:[#allocation5 + $0x20] sm:$0xff]  ;;  %v239_v9 = vld [vmem:[#allocation7] sm:$0xff]  ;;  %v240_v10 = vld [vmem:[#allocation7 + $0x8] sm:$0xff]  ;;  %vm358_vm2 = vcmask 1040384   ;;  %vm360_vm3 = vcmask 1041408   ;;  %s5135_s20 = smov 120  }
  0x89   :  { %v153_v11 = vld [vmem:[#allocation5 + $0x28] sm:$0xff]  ;;  %v4746_v12 = vpack.c.bf16 %v240_v10, %v239_v9  ;;  %v241_v13 = vld [vmem:[#allocation7 + $0x10] sm:$0xff]  ;;  %v242_v14 = vld [vmem:[#allocation7 + $0x18] sm:$0xff]  ;;  %vm362_vm4 = vcmask 1042432   ;;  %vm364_vm5 = vcmask 1043456   ;;  %vm366_vm6 = vcmask 1044480  }
  0x8a   :  { %4735 = vmatpush3.bf16.msra.mxu0 %v4734_v5  ;;  %v4749_v15 = vpack.c.bf16 %v242_v14, %v241_v13  ;;  %v4740_v16 = vpack.c.bf16 %v153_v11, %v152_v8  ;;  %v243_v17 = vld [vmem:[#allocation7 + $0x20] sm:$0xff]  ;;  %v244_v18 = vld [vmem:[#allocation7 + $0x28] sm:$0xff]  ;;  %v155_v20 = vld [vmem:[#allocation5 + $0x38] sm:$0xff]  ;;  %vm368_vm7 = vcmask 1045504   ;;  %vm370_vm8 = vcmask 1046528   ;;  %s5136_s16 = smov 112  }
  0x8b   :  { %4736 = vmatprep.subr.bf16.mxu0 %v5129_v0  ;;  %4747 = vmatpush3.bf16.msra.mxu1 %v4746_v12  ;;  %v154_v19 = vld [vmem:[#allocation5 + $0x30] sm:$0xff]  ;;  %v4752_v21 = vpack.c.bf16 %v244_v18, %v243_v17  ;;  %v245_v23 = vld [vmem:[#allocation7 + $0x30] sm:$0xff]  ;;  %v246_v24 = vld [vmem:[#allocation7 + $0x38] sm:$0xff]  ;;  %vm377_vm9 = vcmask 261120   ;;  %vm696_vm10 = vcmask 64512   ;;  %s5137_s25 = smov 104  }
  0x8c   :  { %4748 = vmatprep.subr.bf16.mxu1 %v5129_v0  ;;  %v4743_v22 = vpack.c.bf16 %v155_v20, %v154_v19  ;;  %v4755_v25 = vpack.c.bf16 %v246_v24, %v245_v23  ;;  %v247_v26 = vld [vmem:[#allocation7 + $0x40] sm:$0xff]  ;;  %v248_v27 = vld [vmem:[#allocation7 + $0x48] sm:$0xff]  ;;  %v156_v28 = vld [vmem:[#allocation5 + $0x40] sm:$0xff]  ;;  %vm1308_vm12 = vcmask 27648   ;;  %vm1397_vm13 = vcmask 31744   ;;  %s5138_s28 = smov 24  }
  0x8d   :  { %v147_v29 = vld [vmem:[#allocation2] sm:$0x3]  ;;  %v4758_v30 = vpack.c.bf16 %v248_v27, %v247_v26  ;;  %v250_v32 = vld [vmem:[#allocation7 + $0x58] sm:$0xff]  ;;  %v251_v34 = vld [vmem:[#allocation7 + $0x60] sm:$0xff]  ;;  %s5139_s9 = smov 16   ;;  %vm2027_vm14 = vcmask 130048  }
  0x8e   :  { %4738 = vmatpush3.bf16.msra.mxu0 %v4737_v7  ;;  %v249_v31 = vld [vmem:[#allocation7 + $0x50] sm:$0xff]  ;;  %v252_v35 = vld [vmem:[#allocation7 + $0x68] sm:$0xff]  ;;  %v254_v38 = vld [vmem:[#allocation7 + $0x78] sm:$0xff]  ;;  %vm2029_vm15 = vcmask 195584   ;;  %s5141_s18 = smov 12   ;;  %s5142_s3 = smov 48  }
  0x8f   :  { %4739 = vmatprep.subr.bf16.mxu0 %v5129_v0  ;;  %4750 = vmatpush3.bf16.msra.mxu1 %v4749_v15  ;;  %v4761_v33 = vpack.c.bf16 %v250_v32, %v249_v31  ;;  %v4764_v36 = vpack.c.bf16 %v252_v35, %v251_v34  ;;  %v253_v37 = vld [vmem:[#allocation7 + $0x70] sm:$0xff]  ;;  %v408_v12 = vld [vmem:[#allocation8] sm:$0xff]  ;;  %v409_v13 = vld [vmem:[#allocation8 + $0x8] sm:$0xff]  ;;  %s5143_s22 = smov [#allocation14]  }
  0x90   :  { %4751 = vmatprep.subr.bf16.mxu1 %v5129_v0  ;;  %v4767_v39 = vpack.c.bf16 %v254_v38, %v253_v37  ;;  %v4205_v40 = vld [vmem:[%s6046_s2] ss:$0 sm:$0xff]  ;;  %s5133_s2 = smov 96   ;;  %v4770_v14 = vpack.c.bf16 %v409_v13, %v408_v12  ;;  %v573_v15 = vld [vmem:[#allocation11] sm:$0xff]  ;;  %v411_v19 = vld [vmem:[#allocation8 + $0x18] sm:$0xff]  ;;  %s4179_s19 = sshll.u32 %s5143_s22, 4  ;;  %s4180_s19 = int_to_ptr.vmem [resolvable:$true] %s4179_s19 }
  0x91   :  { %v4207_v45 = vld [vmem:[%s6048_s4] ss:$0 sm:$0xff]  ;;  %v493_v31 = vld [vmem:[#allocation10 + $0x8] sm:$0xff]  ;;  %v495_v37 = vld [vmem:[#allocation10 + $0x18] sm:$0xff]  ;;  %p5069_p1 = scmp.lt.s32.totalorder %s4180_s19, %s4180_s19 }
  0x92   :  { %4741 = vmatpush3.bf16.msra.mxu0 %v4740_v16  ;;  %v574_v16 = vld [vmem:[#allocation11 + $0x8] sm:$0xff]  ;;  %v410_v18 = vld [vmem:[#allocation8 + $0x10] sm:$0xff] }
  0x93   :  { %4742 = vmatprep.subr.bf16.mxu0 %v5129_v0  ;;  %4753 = vmatpush3.bf16.msra.mxu1 %v4752_v21  ;;  %v4782_v17 = vpack.c.bf16 %v574_v16, %v573_v15  ;;  %v575_v20 = vld [vmem:[#allocation11 + $0x10] sm:$0xff]  ;;  %v4773_v21 = vpack.c.bf16 %v411_v19, %v410_v18 }
  0x94   :  { %4754 = vmatprep.subr.bf16.mxu1 %v5129_v0  ;;  %v4209_v32 = vld [vmem:[%s6050_s6] ss:$0 sm:$0xff] }
  0x96   :  { %4744 = vmatpush3.bf16.msra.mxu0 %v4743_v22  ;;  %v576_v22 = vld [vmem:[#allocation11 + $0x18] sm:$0xff] }
  0x97   :  { %4445 = vmatprep.subr.mxu0 %v5131_v1  ;;  %4756 = vmatpush3.bf16.msra.mxu1 %v4755_v25  ;;  %v4785_v23 = vpack.c.bf16 %v576_v22, %v575_v20 }
  0x98   :  { %4757 = vmatprep.subr.bf16.mxu1 %v5129_v0 }
  0x9a   :  { %4446 = vmatpush3.msra.mxu0 %v156_v28  ;;  %v4208_v28 = vld [vmem:[%s6049_s5] ss:$0 sm:$0xff] }
  0x9b   :  { %4448 = vmatmul.mubr.msk.f32.vlgmr.msra.gmra.mrb[0].mxu0 %vm164_vm1, %v147_v29  ;;  %4769 = vmatprep.subr.bf16.mxu0 %v5129_v0  ;;  %vm2191_vm1 = vcmask 392192  }
  0x9c   :  { %4493 = vmatprep.mubr.msk.f32.mxu0 %vm5130_vm0, %v5131_v1  ;;  %4759 = vmatpush3.bf16.msra.mxu1 %v4758_v30  ;;  %v492_v30 = vld [vmem:[#allocation10] sm:$0xff] }
  0x9d   :  { %4760 = vmatprep.subr.bf16.mxu1 %v5129_v0  ;;  %4771 = vmatpush3.bf16.msra.mxu0 %v4770_v14  ;;  %v4776_v34 = vpack.c.bf16 %v493_v31, %v492_v30 }
  0x9e   :  { %4772 = vmatprep.subr.bf16.mxu0 %v5129_v0 }
  0xa0   :  { %4762 = vmatpush3.bf16.msra.mxu1 %v4761_v33 }
  0xa1   :  { %4763 = vmatprep.subr.bf16.mxu1 %v5129_v0  ;;  %4774 = vmatpush3.bf16.msra.mxu0 %v4773_v21 }
  0xa2   :  { %4775 = vmatprep.subr.bf16.mxu0 %v5129_v0 }
  0xa4   :  { %4765 = vmatpush3.bf16.msra.mxu1 %v4764_v36  ;;  %v494_v36 = vld [vmem:[#allocation10 + $0x10] sm:$0xff] }
  0xa5   :  { %4766 = vmatprep.subr.bf16.mxu1 %v5129_v0  ;;  %v4779_v38 = vpack.c.bf16 %v495_v37, %v494_v36 }
  0xa8   :  { %4768 = vmatpush3.bf16.msra.mxu1 %v4767_v39  ;;  %v4210_v39 = vld [vmem:[%s6052_s8] ss:$0 sm:$0xff] }
  0xa9   :  { %4781 = vmatprep.subr.bf16.mxu1 %v5129_v0 }
 0x16e   :  { %v234_v41 = vpop.f32.mrb[0].mxu0 }
 0x16f   :  { %v235_v42 = vadd.f32 %v4205_v40, %v234_v41  ;;  %v4449_v43 = vpop.f32.mrb[1].mxu0 }
 0x171   :  { %v238_v44 = vmax.f32 %v235_v42, 0.0 }
 0x173   :  { %4483 = vmatmul.mubr.f32.vlgmr.msra.gmra.mrb[0].mxu1 %v238_v44 }
 0x174   :  { %4515 = vmatprep.mubr.msk.f32.mxu1 %vm5130_vm0, %v5131_v1  ;;  %4783 = vmatpush3.bf16.msra.mxu1 %v4782_v17 }
 0x175   :  { %4784 = vmatprep.subr.bf16.mxu1 %v5129_v0 }
 0x178   :  { %4786 = vmatpush3.bf16.msra.mxu1 %v4785_v23 }
 0x179   :  { %4538 = vmatprep.subr.mxu1 %v5131_v1 }
 0x246   :  { %v328_v46 = vpop.f32.mrb[0].mxu1 }
 0x247   :  { %v329_v47 = vadd.f32 %v4207_v45, %v328_v46  ;;  %v4484_v48 = vpop.f32.mrb[1].mxu1  ;;  %v4212_v45 = vld [vmem:[%s6054_s10] ss:$0 sm:$0xff] }
 0x249   :  { %v341_v49 = vrot.slane %v329_v47, 5  ;;  %v333_v50 = vrot.slane %v329_v47, 7  ;;  %v346_v51 = vrot.slane %v329_v47, 4  ;;  %v337_v52 = vrot.slane %v329_v47, 6 }
 0x24a   :  { %v354_v53 = vrot.slane %v329_v47, 2  ;;  %v350_v54 = vrot.slane %v329_v47, 3 }
 0x24b   :  { %342 = vrot.lane.b32.xlu1 %v341_v49, %s5132_s21  ;;  %334 = vrot.lane.b32.xlu0 %v333_v50, %s5133_s2 }
 0x24f   :  { %347 = vrot.lane.b32.xlu1 %v346_v51, %s5133_s2  ;;  %338 = vrot.lane.b32.xlu0 %v337_v52, %s5134_s29 }
 0x253   :  { %355 = vrot.lane.b32.xlu1 %v354_v53, %s5132_s21  ;;  %351 = vrot.lane.b32.xlu0 %v350_v54, %s5134_s29 }
 0x2bd   :  { %v343_v55 = vpop.permute.xlu1 %342  ;;  %v335_v56 = vpop.permute.xlu0 %334 }
 0x2be   :  { %v359_v57 = vsel %vm358_vm2, %v329_v47, %v335_v56 }
 0x2c1   :  { %v348_v58 = vpop.permute.xlu1 %347  ;;  %v339_v59 = vpop.permute.xlu0 %338 }
 0x2c2   :  { %v361_v60 = vsel %vm360_vm3, %v359_v57, %v339_v59 }
 0x2c3   :  { %v363_v61 = vsel %vm362_vm4, %v361_v60, %v343_v55 }
 0x2c4   :  { %v365_v62 = vsel %vm364_vm5, %v363_v61, %v341_v49  ;;  %v4214_v61 = vld [vmem:[%s6056_s12] ss:$0 sm:$0xff] }
 0x2c5   :  { %v356_v63 = vpop.permute.xlu1 %355  ;;  %v367_v2 = vsel %vm366_vm6, %v365_v62, %v348_v58  ;;  %v352_v3 = vpop.permute.xlu0 %351 }
 0x2c6   :  { %v369_v4 = vsel %vm368_vm7, %v367_v2, %v352_v3  ;;  %v372_v3 = vlaneseq }
 0x2c7   :  { %v5367_v5 = vsel %vm370_vm8, %v369_v4, %v356_v63 }
 0x2c8   :  { %v378_v6 = vsel %vm377_vm9, %v5367_v5, 0.0  ;;  %v373_v4 = vshrl.u32 %v372_v3, 7 }
 0x2c9   :  { %379 = vadd.xlane.f32.xlu0 %v378_v6  ;;  %v375_v6 = vand.u32 127, %v372_v3 }
 0x2cb   :  { %vm5463_vm11 = vcmp.eq.s32.totalorder %v373_v4, %v375_v6 }
 0x356   :  { %v380_v7 = vpop.xlane.xlu0 %379 }
 0x357   :  { %v382_v8 = vmul.f32 0.03125, %v380_v7 }
 0x359   :  { %v383_v9 = vsub.f32 %v5367_v5, %v382_v8 }
 0x35b   :  { %v384_v10 = vmul.f32 %v383_v9, %v383_v9 }
 0x35d   :  { %v385_v11 = vsel %vm377_vm9, %v384_v10, 0.0 }
 0x35e   :  { %386 = vadd.xlane.f32.xlu1 %v385_v11 }
 0x3eb   :  { %v387_v24 = vpop.xlane.xlu1 %386 }
 0x3ec   :  { %v388_v25 = vmul.f32 0.03125, %v387_v24 }
 0x3ee   :  { %v389_v26 = vadd.f32 1e-05, %v388_v25 }
 0x3f0   :  { %4842 = vrsqrt.f32 %v389_v26 }
 0x3fa   :  { %v4843_v27 = vpop.eup %4842 }
 0x3fb   :  { %v391_v29 = vmul.f32 %v4843_v27, %v383_v9 }
 0x3fd   :  { %v399_v33 = vmul.f32 %v4208_v28, %v391_v29 }
 0x3ff   :  { %v407_v35 = vadd.f32 %v4209_v32, %v399_v33 }
 0x401   :  { %4494 = vmatmul.mubr.msk.f32.vlgmr.msra.gmra.mrb[2].mxu0 %vm377_vm9, %v407_v35  ;;  %4516 = vmatmul.mubr.msk.f32.vlgmr.msra.gmra.mrb[2].mxu1 %vm377_vm9, %v407_v35 }
 0x402   :  { %4777 = vmatpush3.bf16.msra.mxu0 %v4776_v34  ;;  %4504 = vmatprep.mubr.msk.f32.mxu0 %vm5130_vm0, %v5131_v1 }
 0x403   :  { %4778 = vmatprep.subr.bf16.mxu0 %v5129_v0  ;;  %4540 = vmatprep.mubr.msk.f32.mxu1 %vm5130_vm0, %v5131_v1 }
 0x406   :  { %4780 = vmatpush3.bf16.msra.mxu0 %v4779_v38 }
 0x407   :  { %4518 = vmatprep.subr.mxu0 %v5131_v1 }
 0x409   :  { %4505 = vmatmul.mubr.msk.f32.vlgmr.msra.gmra.mrb[4].mxu0 %vm377_vm9, %v407_v35 }
 0x40a   :  { %4520 = vmatprep.mubr.msk.f32.mxu0 %vm5130_vm0, %v5131_v1 }
 0x4d4   :  { %v488_v40 = vpop.f32.mrb[2].mxu0  ;;  %v5397_v41 = vpop.f32.mrb[2].mxu1 }
 0x4d5   :  { %v489_v42 = vadd.f32 %v4210_v39, %v488_v40  ;;  %v4495_v43 = vpop.f32.mrb[3].mxu0  ;;  %v4517_v44 = vpop.f32.mrb[3].mxu1  ;;  %v5452_v63 = vadd.f32 %v4214_v61, %v5397_v41 }
 0x4d7   :  { %655 = vrot.lane.b32.xlu1 %v489_v42, %s5135_s20  ;;  %v661_v50 = vrot.slane %v489_v42, 4 }
 0x4db   :  { %657 = vrot.lane.b32.xlu1 %v489_v42, %s5136_s16 }
 0x4dc   :  { %v569_v46 = vpop.f32.mrb[4].mxu0 }
 0x4dd   :  { %v570_v47 = vadd.f32 %v4212_v45, %v569_v46  ;;  %v4506_v48 = vpop.f32.mrb[5].mxu0 }
 0x4de   :  { %v5501_v48 = vrot.slane %v5452_v63, 4 }
 0x4df   :  { %669 = vrot.lane.b32.xlu0 %v570_v47, %s5135_s20  ;;  %4519 = vmatpush3.xpose.msk.msra.mxu0 %vm696_vm10, %v570_v47  ;;  %v675_v49 = vrot.slane %v570_v47, 4 }
 0x4e0   :  { %659 = vrot.lane.b32.xlu1 %v489_v42, %s5137_s25  ;;  %4523 = vmatprep.subr.mxu0 %v5131_v1 }
 0x4e1   :  { %4539 = vmatpush3.xpose.msk.msra.mxu1 %vm696_vm10, %v675_v49 }
 0x4e2   :  { %4521 = vmatmul.mubr.msk.f32.vlgmr.msra.gmra.mrb[6].mxu0 %vm696_vm10, %v489_v42  ;;  %4548 = vmatprep.subr.mxu1 %v5131_v1 }
 0x4e3   :  { %671 = vrot.lane.b32.xlu0 %v570_v47, %s5136_s16  ;;  %4525 = vmatprep.mubr.msk.f32.mxu0 %vm5130_vm0, %v5131_v1 }
 0x4e4   :  { %662 = vrot.lane.b32.xlu1 %v661_v50, %s5135_s20  ;;  %4541 = vmatmul.mubr.msk.f32.vlgmr.msra.gmra.mrb[4].mxu1 %vm696_vm10, %v661_v50 }
 0x4e5   :  { %4550 = vmatprep.mubr.msk.f32.mxu1 %vm5130_vm0, %v5131_v1 }
 0x4e7   :  { %673 = vrot.lane.b32.xlu0 %v570_v47, %s5137_s25 }
 0x4e8   :  { %680 = vrot.lane.b32.xlu1 %v675_v49, %s5137_s25 }
 0x4eb   :  { %676 = vrot.lane.b32.xlu0 %v675_v49, %s5135_s20 }
 0x4ec   :  { %666 = vrot.lane.b32.xlu1 %v661_v50, %s5137_s25 }
 0x4ef   :  { %678 = vrot.lane.b32.xlu0 %v675_v49, %s5136_s16 }
 0x4f3   :  { %664 = vrot.lane.b32.xlu0 %v661_v50, %s5136_s16 }
 0x549   :  { %v656_v51 = vpop.permute.xlu1 %655 }
 0x54d   :  { %v658_v52 = vpop.permute.xlu1 %657 }
 0x551   :  { %v670_v53 = vpop.permute.xlu0 %669 }
 0x552   :  { %v660_v54 = vpop.permute.xlu1 %659  ;;  %4524 = vmatpush3.xpose.msk.msra.mxu0 %vm696_vm10, %v670_v53 }
 0x553   :  { %4528 = vmatprep.subr.mxu0 %v5131_v1 }
 0x555   :  { %v672_v55 = vpop.permute.xlu0 %671  ;;  %4526 = vmatmul.mubr.msk.f32.vlgmr.msra.gmra.mrb[8].mxu0 %vm696_vm10, %v656_v51 }
 0x556   :  { %4529 = vmatpush3.xpose.msk.msra.mxu0 %vm696_vm10, %v672_v55  ;;  %4530 = vmatprep.mubr.msk.f32.mxu0 %vm5130_vm0, %v5131_v1  ;;  %v663_v56 = vpop.permute.xlu1 %662 }
 0x557   :  { %4533 = vmatprep.subr.mxu0 %v5131_v1 }
 0x559   :  { %v674_v57 = vpop.permute.xlu0 %673  ;;  %4531 = vmatmul.mubr.msk.f32.vlgmr.msra.gmra.mrb[10].mxu0 %vm696_vm10, %v658_v52 }
 0x55a   :  { %4534 = vmatpush3.xpose.msk.msra.mxu0 %vm696_vm10, %v674_v57  ;;  %4535 = vmatprep.mubr.msk.f32.mxu0 %vm5130_vm0, %v5131_v1  ;;  %v681_v59 = vpop.permute.xlu1 %680 }
 0x55b   :  { %4543 = vmatprep.subr.mxu0 %v5131_v1 }
 0x55d   :  { %4536 = vmatmul.mubr.msk.f32.vlgmr.msra.gmra.mrb[12].mxu0 %vm696_vm10, %v660_v54  ;;  %v677_v58 = vpop.permute.xlu0 %676 }
 0x55e   :  { %4544 = vmatpush3.xpose.msk.msra.mxu0 %vm696_vm10, %v677_v58  ;;  %4545 = vmatprep.mubr.msk.f32.mxu0 %vm5130_vm0, %v5131_v1  ;;  %v667_v62 = vpop.permute.xlu1 %666 }
 0x55f   :  { %4553 = vmatprep.subr.mxu0 %v5131_v1 }
 0x561   :  { %4546 = vmatmul.mubr.msk.f32.vlgmr.msra.gmra.mrb[14].mxu0 %vm696_vm10, %v663_v56  ;;  %v679_v60 = vpop.permute.xlu0 %678 }
 0x562   :  { %4549 = vmatpush3.xpose.msk.msra.mxu1 %vm696_vm10, %v679_v60  ;;  %4554 = vmatpush3.xpose.msk.msra.mxu0 %vm696_vm10, %v681_v59 }
 0x563   :  { %4555 = vmatprep.mubr.msk.f32.mxu0 %vm5130_vm0, %v5131_v1  ;;  %4558 = vmatprep.subr.mxu1 %v5131_v1 }
 0x564   :  { %4563 = vmatprep.subr.mxu0 %v5131_v1 }
 0x565   :  { %4556 = vmatmul.mubr.msk.f32.vlgmr.msra.gmra.mrb[16].mxu0 %vm696_vm10, %v667_v62  ;;  %v665_v2 = vpop.permute.xlu0 %664 }
 0x566   :  { %4551 = vmatmul.mubr.msk.f32.vlgmr.msra.gmra.mrb[6].mxu1 %vm696_vm10, %v665_v2  ;;  %4565 = vmatprep.mubr.msk.f32.mxu0 %vm5130_vm0, %v5131_v1 }
 0x567   :  { %4559 = vmatpush3.msk.msra.mxu1 %vm364_vm5, %v5452_v63  ;;  %4560 = vmatprep.mubr.msk.f32.mxu1 %vm5130_vm0, %v5131_v1 }
 0x568   :  { %4568 = vmatprep.subr.mxu1 %v5131_v1 }
 0x5b5   :  { %v767_v7 = vpop.f32.mrb[6].mxu0 }
 0x5b6   :  { %v1290_v9 = vmul.f32 0.35355338, %v767_v7  ;;  %v4522_v10 = vpop.f32.mrb[7].mxu0 }
 0x5b7   :  { %v1063_v11 = vpop.f32.mrb[4].mxu1 }
 0x5b8   :  { %v4542_v12 = vpop.f32.mrb[5].mxu1  ;;  %v1300_v13 = vsel %vm5463_vm11, -inf, %v1290_v9  ;;  %v1294_v16 = vmul.f32 0.35355338, %v1063_v11 }
 0x5b9   :  { %v1309_v14 = vsel %vm1308_vm12, %v1300_v13, -inf }
 0x5ba   :  { %1310 = vmax.xlane.f32.xlu0 %v1309_v14  ;;  %v1304_v24 = vsel %vm5463_vm11, -inf, %v1294_v16 }
 0x5bb   :  { %v1321_v27 = vsel %vm1308_vm12, %v1304_v24, -inf }
 0x628   :  { %v841_v15 = vpop.f32.mrb[8].mxu0 }
 0x629   :  { %v1291_v17 = vmul.f32 0.35355338, %v841_v15  ;;  %v4527_v18 = vpop.f32.mrb[9].mxu0 }
 0x62b   :  { %v1301_v19 = vsel %vm5463_vm11, -inf, %v1291_v17 }
 0x62c   :  { %v915_v20 = vpop.f32.mrb[10].mxu0  ;;  %v1312_v21 = vsel %vm1308_vm12, %v1301_v19, -inf }
 0x62d   :  { %v1292_v22 = vmul.f32 0.35355338, %v915_v20  ;;  %1313 = vmax.xlane.f32.xlu1 %v1312_v21  ;;  %v4532_v23 = vpop.f32.mrb[11].mxu0 }
 0x62f   :  { %v5477_v25 = vsel %vm5463_vm11, -inf, %v1292_v22 }
 0x630   :  { %v989_v26 = vpop.f32.mrb[12].mxu0  ;;  %v1315_v28 = vsel %vm1308_vm12, %v5477_v25, -inf }
 0x631   :  { %v1293_v29 = vmul.f32 0.35355338, %v989_v26  ;;  %1322 = vmax.xlane.f32.xlu1 %v1321_v27  ;;  %1316 = vmax.xlane.f32.xlu0 %v1315_v28  ;;  %v4537_v30 = vpop.f32.mrb[13].mxu0 }
 0x633   :  { %v1303_v31 = vsel %vm5463_vm11, -inf, %v1293_v29 }
 0x634   :  { %v1137_v32 = vpop.f32.mrb[14].mxu0  ;;  %v1318_v33 = vsel %vm1308_vm12, %v1303_v31, -inf }
 0x635   :  { %v1295_v34 = vmul.f32 0.35355338, %v1137_v32  ;;  %1319 = vmax.xlane.f32.xlu0 %v1318_v33  ;;  %v4547_v35 = vpop.f32.mrb[15].mxu0 }
 0x637   :  { %v1305_v36 = vsel %vm5463_vm11, -inf, %v1295_v34 }
 0x638   :  { %v1285_v37 = vpop.f32.mrb[16].mxu0  ;;  %v1324_v38 = vsel %vm1308_vm12, %v1305_v36, -inf }
 0x639   :  { %v1297_v39 = vmul.f32 0.35355338, %v1285_v37  ;;  %v1211_v40 = vpop.f32.mrb[6].mxu1  ;;  %1325 = vmax.xlane.f32.xlu0 %v1324_v38  ;;  %v4557_v41 = vpop.f32.mrb[17].mxu0 }
 0x63a   :  { %v1296_v42 = vmul.f32 0.35355338, %v1211_v40  ;;  %v4552_v43 = vpop.f32.mrb[7].mxu1 }
 0x63b   :  { %v1307_v44 = vsel %vm5463_vm11, -inf, %v1297_v39 }
 0x63c   :  { %v1330_v45 = vsel %vm1308_vm12, %v1307_v44, -inf  ;;  %v1306_v46 = vsel %vm5463_vm11, -inf, %v1296_v42 }
 0x63d   :  { %1331 = vmax.xlane.f32.xlu0 %v1330_v45  ;;  %v1327_v47 = vsel %vm1308_vm12, %v1306_v46, -inf }
 0x63e   :  { %1328 = vmax.xlane.f32.xlu1 %v1327_v47 }
 0x647   :  { %v1311_v49 = vpop.xlane.xlu0 %1310 }
 0x648   :  { %v1333_v50 = vsub.f32 %v1300_v13, %v1311_v49 }
 0x64a   :  { %v1341_v51 = vmul.f32 1.442695, %v1333_v50 }
 0x64c   :  { %4844 = vpow2.f32 %v1341_v51 }
 0x64f   :  { %683 = vrot.lane.b32.xlu1 %v5452_v63, %s5135_s20 }
 0x653   :  { %687 = vrot.lane.b32.xlu1 %v5452_v63, %s5137_s25  ;;  %685 = vrot.lane.b32.xlu0 %v5452_v63, %s5136_s16 }
 0x656   :  { %v5505_v52 = vpop.eup %4844 }
 0x657   :  { %690 = vrot.lane.b32.xlu1 %v5501_v48, %s5135_s20  ;;  %v1357_v53 = vsel %vm1308_vm12, %v5505_v52, 0.0 }
 0x67b   :  { %1358 = vadd.xlane.f32.xlu1 %v1357_v53 }
 0x6ba   :  { %v1314_v54 = vpop.xlane.xlu1 %1313 }
 0x6bb   :  { %v1334_v55 = vsub.f32 %v1301_v19, %v1314_v54 }
 0x6bd   :  { %v1343_v56 = vmul.f32 1.442695, %v1334_v55 }
 0x6be   :  { %v1323_v57 = vpop.xlane.xlu1 %1322  ;;  %v1317_v58 = vpop.xlane.xlu0 %1316 }
 0x6bf   :  { %4846 = vpow2.f32 %v1343_v56  ;;  %v1337_v59 = vsub.f32 %v1304_v24, %v1323_v57  ;;  %v1335_v7 = vsub.f32 %v5477_v25, %v1317_v58 }
 0x6c1   :  { %v1349_v60 = vmul.f32 1.442695, %v1337_v59  ;;  %v1345_v16 = vmul.f32 1.442695, %v1335_v7 }
 0x6c2   :  { %v1320_v61 = vpop.xlane.xlu0 %1319 }
 0x6c3   :  { %4848 = vpow2.f32 %v1349_v60  ;;  %v1336_v62 = vsub.f32 %v1303_v31, %v1320_v61 }
 0x6c5   :  { %v1347_v63 = vmul.f32 1.442695, %v1336_v62 }
 0x6c6   :  { %v1326_v2 = vpop.xlane.xlu0 %1325 }
 0x6c7   :  { %4850 = vpow2.f32 %v1347_v63  ;;  %v1338_v3 = vsub.f32 %v1305_v36, %v1326_v2  ;;  %v2031_v63 = vld [vmem:[#allocation13] sm:$0xff]  ;;  %v2032_v2 = vld [vmem:[#allocation13 + $0x8] sm:$0xff] }
 0x6c9   :  { %v4847_v4 = vpop.eup %4846  ;;  %v1351_v6 = vmul.f32 1.442695, %v1338_v3  ;;  %v2033_v3 = vld [vmem:[#allocation13 + $0x10] sm:$0xff] }
 0x6ca   :  { %v1332_v9 = vpop.xlane.xlu0 %1331  ;;  %v1360_v10 = vsel %vm1308_vm12, %v4847_v4, 0.0 }
 0x6cb   :  { %4852 = vpow2.f32 %v1351_v6  ;;  %v1340_v11 = vsub.f32 %v1307_v44, %v1332_v9  ;;  %v1329_v12 = vpop.xlane.xlu1 %1328  ;;  %1361 = vadd.xlane.f32.xlu0 %v1360_v10  ;;  %v2034_v6 = vld [vmem:[#allocation13 + $0x18] sm:$0xff] }
 0x6cc   :  { %v1339_v13 = vsub.f32 %v1306_v46, %v1329_v12  ;;  %v4791_v10 = vpack.c.bf16 %v2034_v6, %v2033_v3 }
 0x6cd   :  { %v5511_v14 = vpop.eup %4848  ;;  %v1355_v15 = vmul.f32 1.442695, %v1340_v11 }
 0x6ce   :  { %v1353_v17 = vmul.f32 1.442695, %v1339_v13  ;;  %v1369_v18 = vsel %vm1308_vm12, %v5511_v14, 0.0  ;;  %v686_v35 = vpop.permute.xlu0 %685 }
 0x6cf   :  { %4854 = vpow2.f32 %v1355_v15  ;;  %1370 = vadd.xlane.f32.xlu1 %v1369_v18  ;;  %v684_v19 = vpop.permute.xlu1 %683 }
 0x6d0   :  { %4856 = vpow2.f32 %v1353_v17  ;;  %4564 = vmatpush3.msk.msra.mxu0 %vm364_vm5, %v684_v19 }
 0x6d1   :  { %v4851_v20 = vpop.eup %4850  ;;  %4573 = vmatprep.subr.mxu0 %v5131_v1  ;;  %4858 = vpow2.f32 %v1345_v16 }
 0x6d2   :  { %v1366_v21 = vsel %vm1308_vm12, %v4851_v20, 0.0 }
 0x6d3   :  { %1367 = vadd.xlane.f32.xlu0 %v1366_v21  ;;  %v688_v30 = vpop.permute.xlu1 %687 }
 0x6d5   :  { %v4853_v22 = vpop.eup %4852 }
 0x6d6   :  { %v1372_v23 = vsel %vm1308_vm12, %v4853_v22, 0.0 }
 0x6d7   :  { %1373 = vadd.xlane.f32.xlu0 %v1372_v23  ;;  %v691_v31 = vpop.permute.xlu1 %690 }
 0x6d9   :  { %v4855_v24 = vpop.eup %4854 }
 0x6da   :  { %v5519_v25 = vpop.eup %4856  ;;  %v1378_v26 = vsel %vm1308_vm12, %v4855_v24, 0.0 }
 0x6db   :  { %1379 = vadd.xlane.f32.xlu0 %v1378_v26  ;;  %v1375_v27 = vsel %vm1308_vm12, %v5519_v25, 0.0  ;;  %v4859_v28 = vpop.eup %4858 }
 0x6dc   :  { %1376 = vadd.xlane.f32.xlu1 %v1375_v27  ;;  %v1363_v29 = vsel %vm1308_vm12, %v4859_v28, 0.0 }
 0x6e0   :  { %1364 = vadd.xlane.f32.xlu1 %v1363_v29 }
 0x6f1   :  { %694 = vrot.lane.b32.xlu1 %v5501_v48, %s5137_s25  ;;  %692 = vrot.lane.b32.xlu0 %v5501_v48, %s5136_s16 }
 0x708   :  { %v1359_v32 = vpop.xlane.xlu1 %1358 }
 0x709   :  { %4860 = vrcp.f32 %v1359_v32 }
 0x713   :  { %v4861_v33 = vpop.eup %4860 }
 0x714   :  { %v5530_v34 = vmul.f32 %v4861_v33, %v5505_v52 }
 0x716   :  { %4561 = vmatmul.mubr.msk.f32.vlgmr.msra.gmra.mrb[8].mxu1 %vm1397_vm13, %v5530_v34 }
 0x717   :  { %4569 = vmatpush3.msk.msra.mxu1 %vm364_vm5, %v686_v35  ;;  %4570 = vmatprep.mubr.msk.f32.mxu1 %vm5130_vm0, %v5131_v1 }
 0x718   :  { %4578 = vmatprep.subr.mxu1 %v5131_v1 }
 0x758   :  { %v1362_v36 = vpop.xlane.xlu0 %1361 }
 0x759   :  { %4862 = vrcp.f32 %v1362_v36  ;;  %v4248_v36 = vld [vmem:[%s6058_s14] ss:$0 sm:$0xff] }
 0x75c   :  { %v1371_v41 = vpop.xlane.xlu1 %1370 }
 0x760   :  { %v1368_v37 = vpop.xlane.xlu0 %1367 }
 0x761   :  { %4864 = vrcp.f32 %v1368_v37 }
 0x763   :  { %v4863_v38 = vpop.eup %4862 }
 0x764   :  { %v1374_v39 = vpop.xlane.xlu0 %1373  ;;  %v5538_v40 = vmul.f32 %v4863_v38, %v4847_v4  ;;  %v4788_v4 = vpack.c.bf16 %v2032_v2, %v2031_v63  ;;  %v2393_v63 = vld [vmem:[#allocation10 + $0x38] sm:$0xff] }
 0x765   :  { %4866 = vrcp.f32 %v1374_v39 }
 0x766   :  { %4566 = vmatmul.mubr.msk.f32.vlgmr.msra.gmra.mrb[18].mxu0 %vm1397_vm13, %v5538_v40 }
 0x767   :  { %4574 = vmatpush3.msk.msra.mxu0 %vm364_vm5, %v688_v30  ;;  %4575 = vmatprep.mubr.msk.f32.mxu0 %vm5130_vm0, %v5131_v1 }
 0x768   :  { %v1380_v42 = vpop.xlane.xlu0 %1379  ;;  %4583 = vmatprep.subr.mxu0 %v5131_v1 }
 0x769   :  { %4868 = vrcp.f32 %v1380_v42  ;;  %v1377_v43 = vpop.xlane.xlu1 %1376 }
 0x76b   :  { %v4865_v44 = vpop.eup %4864 }
 0x76c   :  { %v5546_v45 = vmul.f32 %v4865_v44, %v4851_v20  ;;  %v693_v58 = vpop.permute.xlu0 %692 }
 0x76d   :  { %v1365_v46 = vpop.xlane.xlu1 %1364 }
 0x76e   :  { %4870 = vrcp.f32 %v1365_v46  ;;  %4576 = vmatmul.mubr.msk.f32.vlgmr.msra.gmra.mrb[20].mxu0 %vm1397_vm13, %v5546_v45 }
 0x76f   :  { %v4867_v47 = vpop.eup %4866  ;;  %4584 = vmatpush3.msk.msra.mxu0 %vm364_vm5, %v691_v31  ;;  %4585 = vmatprep.mubr.msk.f32.mxu0 %vm5130_vm0, %v5131_v1  ;;  %4872 = vrcp.f32 %v1371_v41 }
 0x770   :  { %4593 = vmatprep.subr.mxu0 %v5131_v1  ;;  %v5554_v49 = vmul.f32 %v4867_v47, %v4853_v22  ;;  %4874 = vrcp.f32 %v1377_v43 }
 0x771   :  { %v695_v50 = vpop.permute.xlu1 %694 }
 0x772   :  { %4586 = vmatmul.mubr.msk.f32.vlgmr.msra.gmra.mrb[22].mxu0 %vm1397_vm13, %v5554_v49 }
 0x773   :  { %v4869_v51 = vpop.eup %4868  ;;  %4594 = vmatpush3.msk.msra.mxu0 %vm364_vm5, %v695_v50  ;;  %4595 = vmatprep.mubr.msk.f32.mxu0 %vm5130_vm0, %v5131_v1 }
 0x774   :  { %v5561_v52 = vmul.f32 %v4869_v51, %v4855_v24  ;;  %4793 = vmatprep.subr.bf16.mxu0 %v5129_v0  ;;  %v2304_v51 = vld [vmem:[#allocation8 + $0x20] sm:$0xff] }
 0x776   :  { %4596 = vmatmul.mubr.msk.f32.vlgmr.msra.gmra.mrb[24].mxu0 %vm1397_vm13, %v5561_v52 }
 0x777   :  { %4617 = vmatprep.mubr.msk.f32.mxu0 %vm5130_vm0, %v5131_v1 }
 0x778   :  { %v4871_v53 = vpop.eup %4870 }
 0x779   :  { %v5568_v54 = vmul.f32 %v4871_v53, %v4859_v28  ;;  %v4873_v55 = vpop.eup %4872  ;;  %v2305_v53 = vld [vmem:[#allocation8 + $0x28] sm:$0xff] }
 0x77a   :  { %v5578_v56 = vmul.f32 %v4873_v55, %v5511_v14  ;;  %v4875_v57 = vpop.eup %4874  ;;  %v4794_v55 = vpack.c.bf16 %v2305_v53, %v2304_v51 }
 0x77b   :  { %4571 = vmatmul.mubr.msk.f32.vlgmr.msra.gmra.mrb[10].mxu1 %vm1397_vm13, %v5568_v54 }
 0x77c   :  { %4579 = vmatpush3.msk.msra.mxu1 %vm364_vm5, %v5501_v48  ;;  %4580 = vmatprep.mubr.msk.f32.mxu1 %vm5130_vm0, %v5131_v1  ;;  %v5586_v48 = vmul.f32 %v4875_v57, %v5519_v25  ;;  %v2390_v57 = vld [vmem:[#allocation10 + $0x20] sm:$0xff] }
 0x77d   :  { %4588 = vmatprep.subr.mxu1 %v5131_v1  ;;  %4795 = vmatpush3.bf16.msra.mxu0 %v4794_v55 }
 0x77e   :  { %4796 = vmatprep.subr.bf16.mxu0 %v5129_v0 }
 0x77f   :  { %4581 = vmatmul.mubr.msk.f32.vlgmr.msra.gmra.mrb[12].mxu1 %vm1397_vm13, %v5578_v56 }
 0x780   :  { %4589 = vmatpush3.msk.msra.mxu1 %vm364_vm5, %v693_v58  ;;  %4590 = vmatprep.mubr.msk.f32.mxu1 %vm5130_vm0, %v5131_v1  ;;  %v2391_v58 = vld [vmem:[#allocation10 + $0x28] sm:$0xff] }
 0x781   :  { %4787 = vmatprep.subr.bf16.mxu1 %v5129_v0 }
 0x783   :  { %4591 = vmatmul.mubr.msk.f32.vlgmr.msra.gmra.mrb[14].mxu1 %vm1397_vm13, %v5586_v48 }
 0x784   :  { %4606 = vmatprep.mubr.msk.f32.mxu1 %vm5130_vm0, %v5131_v1  ;;  %4789 = vmatpush3.bf16.msra.mxu1 %v4788_v4 }
 0x785   :  { %4790 = vmatprep.subr.bf16.mxu1 %v5129_v0 }
 0x788   :  { %4792 = vmatpush3.bf16.msra.mxu1 %v4791_v10 }
 0x789   :  { %4799 = vmatprep.subr.bf16.mxu1 %v5129_v0 }
 0x7e9   :  { %v1469_v59 = vpop.f32.mrb[8].mxu1 }
 0x7ea   :  { %v4562_v60 = vpop.f32.mrb[9].mxu1 }
 0x7eb   :  { %v2307_v60 = vld [vmem:[#allocation8 + $0x38] sm:$0xff] }
 0x839   :  { %v1544_v61 = vpop.f32.mrb[18].mxu0 }
 0x83a   :  { %v4567_v62 = vpop.f32.mrb[19].mxu0 }
 0x841   :  { %v1694_v7 = vpop.f32.mrb[20].mxu0 }
 0x842   :  { %v4577_v9 = vpop.f32.mrb[21].mxu0 }
 0x843   :  { %v4251_v9 = vld [vmem:[%s6049_s5 + $0x1] ss:$0 sm:$0xff] }
 0x845   :  { %v1844_v11 = vpop.f32.mrb[22].mxu0 }
 0x846   :  { %v2003_v12 = vrot.slane %v1844_v11, 4  ;;  %v4587_v13 = vpop.f32.mrb[23].mxu0  ;;  %v2473_v11 = vld [vmem:[#allocation11 + $0x20] sm:$0xff] }
 0x847   :  { %v4253_v13 = vld [vmem:[%s6050_s6 + $0x1] ss:$0 sm:$0xff] }
 0x848   :  { %v2005_v14 = vsel %vm364_vm5, %v1544_v61, %v2003_v12  ;;  %v2392_v61 = vld [vmem:[#allocation10 + $0x30] sm:$0xff]  ;;  %v2474_v12 = vld [vmem:[#allocation11 + $0x28] sm:$0xff] }
 0x849   :  { %2015 = vrot.lane.b32.xlu0 %v2005_v14, %s5122_s17  ;;  %v1994_v15 = vpop.f32.mrb[24].mxu0  ;;  %v4803_v2 = vpack.c.bf16 %v2393_v63, %v2392_v61 }
 0x84a   :  { %v2011_v16 = vrot.slane %v1994_v15, 4  ;;  %v4597_v17 = vpop.f32.mrb[25].mxu0  ;;  %v4806_v15 = vpack.c.bf16 %v2474_v12, %v2473_v11 }
 0x84b   :  { %v2475_v17 = vld [vmem:[#allocation11 + $0x30] sm:$0xff] }
 0x84c   :  { %v2013_v18 = vsel %vm364_vm5, %v1694_v7, %v2011_v16 }
 0x84d   :  { %2023 = vrot.lane.b32.xlu0 %v2013_v18, %s5138_s28  ;;  %v2476_v18 = vld [vmem:[#allocation11 + $0x38] sm:$0xff] }
 0x84e   :  { %v1619_v19 = vpop.f32.mrb[10].mxu1 }
 0x84f   :  { %v4572_v20 = vpop.f32.mrb[11].mxu1 }
 0x850   :  { %v4255_v20 = vld [vmem:[%s6052_s8 + $0x1] ss:$0 sm:$0xff] }
 0x852   :  { %v1769_v21 = vpop.f32.mrb[12].mxu1 }
 0x853   :  { %v1999_v22 = vrot.slane %v1769_v21, 4  ;;  %v4582_v23 = vpop.f32.mrb[13].mxu1  ;;  %v4258_v21 = vld [vmem:[%s6054_s10 + $0x1] ss:$0 sm:$0xff] }
 0x855   :  { %v2001_v24 = vsel %vm364_vm5, %v1469_v59, %v1999_v22  ;;  %v4800_v59 = vpack.c.bf16 %v2391_v58, %v2390_v57 }
 0x856   :  { %v1919_v25 = vpop.f32.mrb[14].mxu1 }
 0x857   :  { %v2007_v26 = vrot.slane %v1919_v25, 4  ;;  %v4592_v27 = vpop.f32.mrb[15].mxu1 }
 0x859   :  { %v2009_v28 = vsel %vm364_vm5, %v1619_v19, %v2007_v26  ;;  %v4809_v19 = vpack.c.bf16 %v2476_v18, %v2475_v17 }
 0x85a   :  { %2019 = vrot.lane.b32.xlu1 %v2009_v28, %s5139_s9 }
 0x8bb   :  { %v2016_v29 = vpop.permute.xlu0 %2015 }
 0x8bc   :  { %v2026_v30 = vsel %vm696_vm10, %v2001_v24, %v2016_v29 }
 0x8bf   :  { %v2024_v32 = vpop.permute.xlu0 %2023 }
 0x8cc   :  { %v2020_v31 = vpop.permute.xlu1 %2019 }
 0x8cd   :  { %v2028_v33 = vsel %vm2027_vm14, %v2026_v30, %v2020_v31 }
 0x8ce   :  { %v2030_v35 = vsel %vm2029_vm15, %v2028_v33, %v2024_v32 }
 0x8cf   :  { %4607 = vmatmul.mubr.msk.f32.vlgmr.msra.gmra.mrb[16].mxu1 %vm377_vm9, %v2030_v35 }
 0x8d0   :  { %4628 = vmatprep.mubr.msk.f32.mxu1 %vm5130_vm0, %v5131_v1  ;;  %4801 = vmatpush3.bf16.msra.mxu1 %v4800_v59 }
 0x8d1   :  { %4802 = vmatprep.subr.bf16.mxu1 %v5129_v0 }
 0x8d4   :  { %4804 = vmatpush3.bf16.msra.mxu1 %v4803_v2 }
 0x8d5   :  { %4642 = vmatprep.subr.mxu1 %v5131_v1 }
 0x9a2   :  { %v2111_v37 = vpop.f32.mrb[16].mxu1 }
 0x9a3   :  { %v2112_v38 = vadd.f32 %v4248_v36, %v2111_v37  ;;  %v4608_v39 = vpop.f32.mrb[17].mxu1 }
 0x9a5   :  { %v5612_v41 = vadd.f32 %v2112_v38, %v5367_v5  ;;  %v2306_v5 = vld [vmem:[#allocation8 + $0x30] sm:$0xff] }
 0x9a6   :  { %v4797_v62 = vpack.c.bf16 %v2307_v60, %v2306_v5 }
 0x9a7   :  { %v2272_v42 = vsel %vm377_vm9, %v5612_v41, 0.0 }
 0x9a8   :  { %2273 = vadd.xlane.f32.xlu1 %v2272_v42  ;;  %4798 = vmatpush3.bf16.msra.mxu0 %v4797_v62 }
 0x9a9   :  { %4805 = vmatprep.subr.bf16.mxu0 %v5129_v0 }
 0xa35   :  { %v2274_v43 = vpop.xlane.xlu1 %2273 }
 0xa36   :  { %v2275_v44 = vmul.f32 0.03125, %v2274_v43 }
 0xa38   :  { %v2276_v46 = vsub.f32 %v5612_v41, %v2275_v44 }
 0xa3a   :  { %v2277_v47 = vmul.f32 %v2276_v46, %v2276_v46 }
 0xa3c   :  { %v2278_v50 = vsel %vm377_vm9, %v2277_v47, 0.0 }
 0xa3d   :  { %2279 = vadd.xlane.f32.xlu0 %v2278_v50 }
 0xaca   :  { %v2280_v3 = vpop.xlane.xlu0 %2279 }
 0xacb   :  { %v2281_v4 = vmul.f32 0.03125, %v2280_v3 }
 0xacd   :  { %v2282_v6 = vadd.f32 1e-05, %v2281_v4 }
 0xacf   :  { %4876 = vrsqrt.f32 %v2282_v6 }
 0xad9   :  { %v4877_v7 = vpop.eup %4876 }
 0xada   :  { %v2284_v10 = vmul.f32 %v4877_v7, %v2276_v46  ;;  %v4261_v46 = vld [vmem:[%s6056_s12 + $0x1] ss:$0 sm:$0xff]  ;;  %s5140_s12 = smov 4  }
 0xadc   :  { %v2293_v14 = vmul.f32 %v4251_v9, %v2284_v10 }
 0xade   :  { %v2302_v16 = vadd.f32 %v4253_v13, %v2293_v14 }
 0xae0   :  { %4618 = vmatmul.mubr.msk.f32.vlgmr.msra.gmra.mrb[26].mxu0 %vm377_vm9, %v2302_v16  ;;  %4629 = vmatmul.mubr.msk.f32.vlgmr.msra.gmra.mrb[18].mxu1 %vm377_vm9, %v2302_v16 }
 0xae1   :  { %4807 = vmatpush3.bf16.msra.mxu0 %v4806_v15  ;;  %4639 = vmatprep.mubr.msk.f32.mxu0 %vm5130_vm0, %v5131_v1 }
 0xae2   :  { %4808 = vmatprep.subr.bf16.mxu0 %v5129_v0  ;;  %4644 = vmatprep.mubr.msk.f32.mxu1 %vm5130_vm0, %v5131_v1 }
 0xae5   :  { %4810 = vmatpush3.bf16.msra.mxu0 %v4809_v19 }
 0xae6   :  { %4647 = vmatprep.subr.mxu0 %v5131_v1 }
 0xae8   :  { %4640 = vmatmul.mubr.msk.f32.vlgmr.msra.gmra.mrb[28].mxu0 %vm377_vm9, %v2302_v16 }
 0xae9   :  { %4649 = vmatprep.mubr.msk.f32.mxu0 %vm5130_vm0, %v5131_v1 }
 0xbb3   :  { %v2385_v22 = vpop.f32.mrb[26].mxu0  ;;  %v2468_v23 = vpop.f32.mrb[18].mxu1 }
 0xbb4   :  { %v2386_v24 = vadd.f32 %v4255_v20, %v2385_v22  ;;  %v2469_v25 = vadd.f32 %v4258_v21, %v2468_v23  ;;  %v4619_v26 = vpop.f32.mrb[27].mxu0  ;;  %v4630_v27 = vpop.f32.mrb[19].mxu1 }
 0xbb6   :  { %2570 = vrot.lane.b32.xlu0 %v2469_v25, %s5135_s20  ;;  %4643 = vmatpush3.xpose.msk.msra.mxu1 %vm696_vm10, %v2469_v25  ;;  %v2562_v30 = vrot.slane %v2386_v24, 4  ;;  %v2576_v31 = vrot.slane %v2469_v25, 4 }
 0xbb7   :  { %2556 = vrot.lane.b32.xlu1 %v2386_v24, %s5135_s20  ;;  %4652 = vmatprep.subr.mxu1 %v5131_v1 }
 0xbb9   :  { %4645 = vmatmul.mubr.msk.f32.vlgmr.msra.gmra.mrb[20].mxu1 %vm696_vm10, %v2386_v24 }
 0xbba   :  { %2574 = vrot.lane.b32.xlu0 %v2469_v25, %s5137_s25  ;;  %4654 = vmatprep.mubr.msk.f32.mxu1 %vm5130_vm0, %v5131_v1 }
 0xbbb   :  { %2572 = vrot.lane.b32.xlu1 %v2469_v25, %s5136_s16  ;;  %v2551_v28 = vpop.f32.mrb[28].mxu0 }
 0xbbc   :  { %v4641_v29 = vpop.f32.mrb[29].mxu0  ;;  %v2552_v50 = vadd.f32 %v4261_v46, %v2551_v28 }
 0xbbe   :  { %2560 = vrot.lane.b32.xlu0 %v2386_v24, %s5137_s25 }
 0xbbf   :  { %2558 = vrot.lane.b32.xlu1 %v2386_v24, %s5136_s16 }
 0xbc2   :  { %2563 = vrot.lane.b32.xlu0 %v2562_v30, %s5135_s20 }
 0xbc3   :  { %2577 = vrot.lane.b32.xlu1 %v2576_v31, %s5135_s20 }
 0xbc6   :  { %2581 = vrot.lane.b32.xlu0 %v2576_v31, %s5137_s25 }
 0xbc7   :  { %2579 = vrot.lane.b32.xlu1 %v2576_v31, %s5136_s16 }
 0xbca   :  { %2567 = vrot.lane.b32.xlu0 %v2562_v30, %s5137_s25 }
 0xbcb   :  { %2565 = vrot.lane.b32.xlu1 %v2562_v30, %s5136_s16 }
 0xc28   :  { %v2571_v32 = vpop.permute.xlu0 %2570 }
 0xc29   :  { %v2557_v33 = vpop.permute.xlu1 %2556  ;;  %4648 = vmatpush3.xpose.msk.msra.mxu0 %vm696_vm10, %v2571_v32 }
 0xc2a   :  { %4657 = vmatprep.subr.mxu0 %v5131_v1 }
 0xc2c   :  { %v2575_v35 = vpop.permute.xlu0 %2574  ;;  %4650 = vmatmul.mubr.msk.f32.vlgmr.msra.gmra.mrb[30].mxu0 %vm696_vm10, %v2557_v33 }
 0xc2d   :  { %v2573_v36 = vpop.permute.xlu1 %2572  ;;  %4658 = vmatpush3.xpose.msk.msra.mxu0 %vm696_vm10, %v2575_v35  ;;  %4659 = vmatprep.mubr.msk.f32.mxu0 %vm5130_vm0, %v5131_v1  ;;  %v5729_v35 = vrot.slane %v2552_v50, 4 }
 0xc2e   :  { %4653 = vmatpush3.xpose.msk.msra.mxu1 %vm696_vm10, %v2573_v36  ;;  %4667 = vmatprep.subr.mxu0 %v5131_v1 }
 0xc2f   :  { %4662 = vmatprep.subr.mxu1 %v5131_v1 }
 0xc30   :  { %v2561_v37 = vpop.permute.xlu0 %2560 }
 0xc31   :  { %v2559_v38 = vpop.permute.xlu1 %2558  ;;  %4660 = vmatmul.mubr.msk.f32.vlgmr.msra.gmra.mrb[32].mxu0 %vm696_vm10, %v2561_v37 }
 0xc32   :  { %4655 = vmatmul.mubr.msk.f32.vlgmr.msra.gmra.mrb[22].mxu1 %vm696_vm10, %v2559_v38  ;;  %4669 = vmatprep.mubr.msk.f32.mxu0 %vm5130_vm0, %v5131_v1 }
 0xc33   :  { %4663 = vmatpush3.xpose.msk.msra.mxu1 %vm696_vm10, %v2576_v31  ;;  %4664 = vmatprep.mubr.msk.f32.mxu1 %vm5130_vm0, %v5131_v1 }
 0xc34   :  { %v2564_v39 = vpop.permute.xlu0 %2563  ;;  %4672 = vmatprep.subr.mxu1 %v5131_v1 }
 0xc35   :  { %v2578_v42 = vpop.permute.xlu1 %2577 }
 0xc36   :  { %4665 = vmatmul.mubr.msk.f32.vlgmr.msra.gmra.mrb[24].mxu1 %vm696_vm10, %v2562_v30  ;;  %4668 = vmatpush3.xpose.msk.msra.mxu0 %vm696_vm10, %v2578_v42 }
 0xc37   :  { %4677 = vmatprep.subr.mxu0 %v5131_v1  ;;  %4674 = vmatprep.mubr.msk.f32.mxu1 %vm5130_vm0, %v5131_v1 }
 0xc38   :  { %v2582_v43 = vpop.permute.xlu0 %2581 }
 0xc39   :  { %v2580_v44 = vpop.permute.xlu1 %2579  ;;  %4670 = vmatmul.mubr.msk.f32.vlgmr.msra.gmra.mrb[34].mxu0 %vm696_vm10, %v2564_v39 }
 0xc3a   :  { %4673 = vmatpush3.xpose.msk.msra.mxu1 %vm696_vm10, %v2580_v44  ;;  %4678 = vmatpush3.xpose.msk.msra.mxu0 %vm696_vm10, %v2582_v43 }
 0xc3b   :  { %4679 = vmatprep.mubr.msk.f32.mxu0 %vm5130_vm0, %v5131_v1  ;;  %4682 = vmatprep.subr.mxu1 %v5131_v1 }
 0xc3c   :  { %v2568_v47 = vpop.permute.xlu0 %2567  ;;  %4687 = vmatprep.subr.mxu0 %v5131_v1 }
 0xc3d   :  { %v2566_v51 = vpop.permute.xlu1 %2565  ;;  %4680 = vmatmul.mubr.msk.f32.vlgmr.msra.gmra.mrb[36].mxu0 %vm696_vm10, %v2568_v47 }
 0xc3e   :  { %4675 = vmatmul.mubr.msk.f32.vlgmr.msra.gmra.mrb[26].mxu1 %vm696_vm10, %v2566_v51  ;;  %4689 = vmatprep.mubr.msk.f32.mxu0 %vm5130_vm0, %v5131_v1 }
 0xc3f   :  { %4683 = vmatpush3.msk.msra.mxu1 %vm364_vm5, %v2552_v50  ;;  %4684 = vmatprep.mubr.msk.f32.mxu1 %vm5130_vm0, %v5131_v1 }
 0xc40   :  { %4692 = vmatprep.subr.mxu1 %v5131_v1 }
 0xc8c   :  { %v2667_v53 = vpop.f32.mrb[20].mxu1 }
 0xc8d   :  { %v3189_v55 = vmul.f32 0.35355338, %v2667_v53  ;;  %v4646_v57 = vpop.f32.mrb[21].mxu1 }
 0xc8f   :  { %v3197_v58 = vsel %vm5463_vm11, -inf, %v3189_v55 }
 0xc90   :  { %v3205_v59 = vsel %vm1308_vm12, %v3197_v58, -inf }
 0xc91   :  { %3206 = vmax.xlane.f32.xlu1 %v3205_v59 }
 0xcff   :  { %v2741_v5 = vpop.f32.mrb[30].mxu0 }
 0xd00   :  { %v3190_v60 = vmul.f32 0.35355338, %v2741_v5  ;;  %v4651_v61 = vpop.f32.mrb[31].mxu0 }
 0xd02   :  { %v3198_v62 = vsel %vm5463_vm11, -inf, %v3190_v60 }
 0xd03   :  { %v3208_v63 = vsel %vm1308_vm12, %v3198_v62, -inf }
 0xd04   :  { %3209 = vmax.xlane.f32.xlu0 %v3208_v63  ;;  %v2889_v2 = vpop.f32.mrb[32].mxu0 }
 0xd05   :  { %v2815_v3 = vpop.f32.mrb[22].mxu1  ;;  %v3192_v4 = vmul.f32 0.35355338, %v2889_v2  ;;  %v4661_v6 = vpop.f32.mrb[33].mxu0 }
 0xd06   :  { %v3191_v7 = vmul.f32 0.35355338, %v2815_v3  ;;  %v4656_v9 = vpop.f32.mrb[23].mxu1 }
 0xd07   :  { %v3200_v10 = vsel %vm5463_vm11, -inf, %v3192_v4 }
 0xd08   :  { %v3199_v11 = vsel %vm5463_vm11, -inf, %v3191_v7  ;;  %v3214_v12 = vsel %vm1308_vm12, %v3200_v10, -inf }
 0xd09   :  { %v2963_v13 = vpop.f32.mrb[24].mxu1  ;;  %v3211_v14 = vsel %vm1308_vm12, %v3199_v11, -inf  ;;  %3215 = vmax.xlane.f32.xlu1 %v3214_v12 }
 0xd0a   :  { %v3193_v15 = vmul.f32 0.35355338, %v2963_v13  ;;  %v4666_v16 = vpop.f32.mrb[25].mxu1  ;;  %3212 = vmax.xlane.f32.xlu0 %v3211_v14 }
 0xd0c   :  { %v3037_v17 = vpop.f32.mrb[34].mxu0  ;;  %v3201_v18 = vsel %vm5463_vm11, -inf, %v3193_v15 }
 0xd0d   :  { %v3194_v19 = vmul.f32 0.35355338, %v3037_v17  ;;  %v4671_v20 = vpop.f32.mrb[35].mxu0  ;;  %v3217_v21 = vsel %vm1308_vm12, %v3201_v18, -inf }
 0xd0e   :  { %3218 = vmax.xlane.f32.xlu0 %v3217_v21 }
 0xd0f   :  { %v3202_v22 = vsel %vm5463_vm11, -inf, %v3194_v19 }
 0xd10   :  { %v3220_v23 = vsel %vm1308_vm12, %v3202_v22, -inf  ;;  %v3185_v24 = vpop.f32.mrb[36].mxu0 }
 0xd11   :  { %v3111_v25 = vpop.f32.mrb[26].mxu1  ;;  %3221 = vmax.xlane.f32.xlu1 %v3220_v23  ;;  %v3196_v26 = vmul.f32 0.35355338, %v3185_v24  ;;  %v4681_v27 = vpop.f32.mrb[37].mxu0 }
 0xd12   :  { %v3195_v28 = vmul.f32 0.35355338, %v3111_v25  ;;  %v4676_v29 = vpop.f32.mrb[27].mxu1 }
 0xd13   :  { %v3204_v30 = vsel %vm5463_vm11, -inf, %v3196_v26 }
 0xd14   :  { %v3203_v31 = vsel %vm5463_vm11, -inf, %v3195_v28  ;;  %v3226_v32 = vsel %vm1308_vm12, %v3204_v30, -inf }
 0xd15   :  { %v3223_v33 = vsel %vm1308_vm12, %v3203_v31, -inf  ;;  %3227 = vmax.xlane.f32.xlu1 %v3226_v32 }
 0xd16   :  { %3224 = vmax.xlane.f32.xlu0 %v3223_v33 }
 0xd1e   :  { %v3207_v36 = vpop.xlane.xlu1 %3206 }
 0xd1f   :  { %v3229_v8 = vsub.f32 %v3197_v58, %v3207_v36 }
 0xd21   :  { %v3237_v37 = vmul.f32 1.442695, %v3229_v8 }
 0xd23   :  { %4878 = vpow2.f32 %v3237_v37 }
 0xd26   :  { %2586 = vrot.lane.b32.xlu1 %v2552_v50, %s5136_s16 }
 0xd2a   :  { %2588 = vrot.lane.b32.xlu1 %v2552_v50, %s5137_s25 }
 0xd2c   :  { %2584 = vrot.lane.b32.xlu0 %v2552_v50, %s5135_s20 }
 0xd2d   :  { %v4879_v38 = vpop.eup %4878 }
 0xd2e   :  { %v3253_v39 = vsel %vm1308_vm12, %v4879_v38, 0.0 }
 0xd30   :  { %2591 = vrot.lane.b32.xlu0 %v5729_v35, %s5135_s20  ;;  %s5064_s20 = scalar_lea.vmem %s4180_s19, 128 }
 0xd31   :  { %p5065_p0 = scmp.ne.s32.totalorder %s4180_s19, %s5064_s20  ;;  %p5070_p2 = scmp.lt.s32.totalorder %s5064_s20, %s5064_s20 }
 0xd33   :  { %p5071_p3 = por %p5070_p2, %p5069_p1 }
 0xd35   :  { %p5072_p4 = pnand %p5071_p3, %p5065_p0 }
 0xd4f   :  { %3254 = vadd.xlane.f32.xlu0 %v3253_v39 }
 0xd91   :  { %v3210_v42 = vpop.xlane.xlu0 %3209 }
 0xd92   :  { %v3230_v43 = vsub.f32 %v3198_v62, %v3210_v42 }
 0xd94   :  { %v3239_v44 = vmul.f32 1.442695, %v3230_v43 }
 0xd96   :  { %4880 = vpow2.f32 %v3239_v44  ;;  %v3216_v46 = vpop.xlane.xlu1 %3215 }
 0xd97   :  { %v3213_v47 = vpop.xlane.xlu0 %3212  ;;  %v3232_v51 = vsub.f32 %v3200_v10, %v3216_v46 }
 0xd98   :  { %v3231_v50 = vsub.f32 %v3199_v11, %v3213_v47 }
 0xd99   :  { %v3243_v53 = vmul.f32 1.442695, %v3232_v51 }
 0xd9a   :  { %v3241_v55 = vmul.f32 1.442695, %v3231_v50 }
 0xd9b   :  { %4882 = vpow2.f32 %v3243_v53  ;;  %v3219_v57 = vpop.xlane.xlu0 %3218 }
 0xd9c   :  { %4884 = vpow2.f32 %v3241_v55  ;;  %v3233_v58 = vsub.f32 %v3201_v18, %v3219_v57 }
 0xd9e   :  { %v3245_v59 = vmul.f32 1.442695, %v3233_v58  ;;  %v3222_v5 = vpop.xlane.xlu1 %3221 }
 0xd9f   :  { %v3234_v60 = vsub.f32 %v3202_v22, %v3222_v5 }
 0xda0   :  { %v4881_v61 = vpop.eup %4880  ;;  %4886 = vpow2.f32 %v3245_v59 }
 0xda1   :  { %v3247_v63 = vmul.f32 1.442695, %v3234_v60  ;;  %v3256_v62 = vsel %vm1308_vm12, %v4881_v61, 0.0 }
 0xda2   :  { %3257 = vadd.xlane.f32.xlu1 %v3256_v62  ;;  %v3228_v2 = vpop.xlane.xlu1 %3227  ;;  %v3925_v62 = vld [vmem:[#allocation13 + $0x20] sm:$0xff] }
 0xda3   :  { %4888 = vpow2.f32 %v3247_v63  ;;  %v3225_v3 = vpop.xlane.xlu0 %3224  ;;  %v3236_v4 = vsub.f32 %v3204_v30, %v3228_v2  ;;  %v3926_v2 = vld [vmem:[#allocation13 + $0x28] sm:$0xff] }
 0xda4   :  { %v3235_v6 = vsub.f32 %v3203_v31, %v3225_v3  ;;  %v4812_v3 = vpack.c.bf16 %v3926_v2, %v3925_v62  ;;  %v2212_v62 = vrot.slane %v5554_v49, 2  ;;  %v2132_v2 = vrot.slane %v5538_v40, 1 }
 0xda5   :  { %v4883_v7 = vpop.eup %4882  ;;  %v3251_v9 = vmul.f32 1.442695, %v3236_v4  ;;  %v3927_v4 = vld [vmem:[#allocation13 + $0x30] sm:$0xff] }
 0xda6   :  { %v4885_v10 = vpop.eup %4884  ;;  %v3249_v11 = vmul.f32 1.442695, %v3235_v6  ;;  %v3262_v12 = vsel %vm1308_vm12, %v4883_v7, 0.0  ;;  %v2587_v27 = vpop.permute.xlu1 %2586  ;;  %v3928_v6 = vld [vmem:[#allocation13 + $0x38] sm:$0xff] }
 0xda7   :  { %4890 = vpow2.f32 %v3251_v9  ;;  %v2585_v13 = vpop.permute.xlu0 %2584  ;;  %v3259_v14 = vsel %vm1308_vm12, %v4885_v10, 0.0  ;;  %3263 = vadd.xlane.f32.xlu1 %v3262_v12  ;;  %v4815_v9 = vpack.c.bf16 %v3928_v6, %v3927_v4  ;;  %v2227_v4 = vrot.slane %v5586_v48, 2 }
 0xda8   :  { %4892 = vpow2.f32 %v3249_v11  ;;  %3260 = vadd.xlane.f32.xlu0 %v3259_v14  ;;  %4688 = vmatpush3.msk.msra.mxu0 %vm364_vm5, %v2585_v13  ;;  %v2216_v6 = vrot.slane %v5554_v49, 3 }
 0xda9   :  { %4697 = vmatprep.subr.mxu0 %v5131_v1 }
 0xdaa   :  { %v4887_v15 = vpop.eup %4886  ;;  %v2589_v28 = vpop.permute.xlu1 %2588 }
 0xdab   :  { %v3265_v16 = vsel %vm1308_vm12, %v4887_v15, 0.0  ;;  %v2592_v23 = vpop.permute.xlu0 %2591 }
 0xdac   :  { %3266 = vadd.xlane.f32.xlu0 %v3265_v16 }
 0xdad   :  { %v4889_v17 = vpop.eup %4888 }
 0xdae   :  { %v3268_v18 = vsel %vm1308_vm12, %v4889_v17, 0.0 }
 0xdaf   :  { %3269 = vadd.xlane.f32.xlu1 %v3268_v18 }
 0xdb1   :  { %v5741_v19 = vpop.eup %4890 }
 0xdb2   :  { %v5743_v20 = vpop.eup %4892  ;;  %v3274_v21 = vsel %vm1308_vm12, %v5741_v19, 0.0 }
 0xdb3   :  { %v3271_v22 = vsel %vm1308_vm12, %v5743_v20, 0.0  ;;  %3275 = vadd.xlane.f32.xlu1 %v3274_v21 }
 0xdb4   :  { %3272 = vadd.xlane.f32.xlu0 %v3271_v22 }
 0xdc4   :  { %2593 = vrot.lane.b32.xlu1 %v5729_v35, %s5136_s16 }
 0xdca   :  { %2595 = vrot.lane.b32.xlu0 %v5729_v35, %s5137_s25 }
 0xddc   :  { %v3255_v24 = vpop.xlane.xlu0 %3254 }
 0xddd   :  { %4894 = vrcp.f32 %v3255_v24 }
 0xde7   :  { %v4895_v25 = vpop.eup %4894 }
 0xde8   :  { %v5753_v26 = vmul.f32 %v4895_v25, %v4879_v38 }
 0xdea   :  { %4685 = vmatmul.mubr.msk.f32.vlgmr.msra.gmra.mrb[28].mxu1 %vm1397_vm13, %v5753_v26 }
 0xdeb   :  { %4693 = vmatpush3.msk.msra.mxu1 %vm364_vm5, %v2587_v27  ;;  %4694 = vmatprep.mubr.msk.f32.mxu1 %vm5130_vm0, %v5131_v1 }
 0xdec   :  { %4702 = vmatprep.subr.mxu1 %v5131_v1 }
 0xe2f   :  { %v3258_v29 = vpop.xlane.xlu1 %3257 }
 0xe30   :  { %4896 = vrcp.f32 %v3258_v29 }
 0xe34   :  { %v3264_v30 = vpop.xlane.xlu1 %3263 }
 0xe35   :  { %v3261_v31 = vpop.xlane.xlu0 %3260  ;;  %4898 = vrcp.f32 %v3264_v30 }
 0xe36   :  { %4900 = vrcp.f32 %v3261_v31 }
 0xe39   :  { %v3267_v32 = vpop.xlane.xlu0 %3266 }
 0xe3a   :  { %v4897_v33 = vpop.eup %4896  ;;  %4902 = vrcp.f32 %v3267_v32 }
 0xe3b   :  { %v5761_v36 = vmul.f32 %v4897_v33, %v4881_v61 }
 0xe3c   :  { %v3270_v8 = vpop.xlane.xlu1 %3269 }
 0xe3d   :  { %4904 = vrcp.f32 %v3270_v8  ;;  %4690 = vmatmul.mubr.msk.f32.vlgmr.msra.gmra.mrb[38].mxu0 %vm1397_vm13, %v5761_v36  ;;  %v4026_v30 = vrot.slane %v5761_v36, 1  ;;  %v4030_v8 = vrot.slane %v5761_v36, 2 }
 0xe3e   :  { %4698 = vmatpush3.msk.msra.mxu0 %vm364_vm5, %v2589_v28  ;;  %4699 = vmatprep.mubr.msk.f32.mxu0 %vm5130_vm0, %v5131_v1 }
 0xe3f   :  { %v4899_v37 = vpop.eup %4898  ;;  %4707 = vmatprep.subr.mxu0 %v5131_v1 }
 0xe40   :  { %v4901_v38 = vpop.eup %4900  ;;  %v5769_v39 = vmul.f32 %v4899_v37, %v4883_v7  ;;  %v3276_v42 = vpop.xlane.xlu1 %3275 }
 0xe41   :  { %v5771_v43 = vmul.f32 %v4901_v38, %v4885_v10  ;;  %v3273_v44 = vpop.xlane.xlu0 %3272  ;;  %4906 = vrcp.f32 %v3276_v42 }
 0xe42   :  { %4908 = vrcp.f32 %v3273_v44  ;;  %4700 = vmatmul.mubr.msk.f32.vlgmr.msra.gmra.mrb[40].mxu0 %vm1397_vm13, %v5769_v39  ;;  %v4034_v44 = vrot.slane %v5761_v36, 3 }
 0xe43   :  { %4695 = vmatmul.mubr.msk.f32.vlgmr.msra.gmra.mrb[30].mxu1 %vm1397_vm13, %v5771_v43  ;;  %4708 = vmatpush3.msk.msra.mxu0 %vm364_vm5, %v2592_v23  ;;  %v4041_v42 = vrot.slane %v5771_v43, 1 }
 0xe44   :  { %v4903_v46 = vpop.eup %4902  ;;  %4703 = vmatpush3.msk.msra.mxu1 %vm364_vm5, %v5729_v35  ;;  %4704 = vmatprep.mubr.msk.f32.mxu1 %vm5130_vm0, %v5131_v1  ;;  %v2594_v51 = vpop.permute.xlu1 %2593 }
 0xe45   :  { %v5782_v47 = vmul.f32 %v4903_v46, %v4887_v15  ;;  %4712 = vmatprep.subr.mxu1 %v5131_v1  ;;  %4709 = vmatprep.mubr.msk.f32.mxu0 %vm5130_vm0, %v5131_v1  ;;  %v2596_v35 = vpop.permute.xlu0 %2595 }
 0xe46   :  { %4717 = vmatprep.subr.mxu0 %v5131_v1 }
 0xe47   :  { %v4905_v50 = vpop.eup %4904  ;;  %4705 = vmatmul.mubr.msk.f32.vlgmr.msra.gmra.mrb[32].mxu1 %vm1397_vm13, %v5782_v47 }
 0xe48   :  { %v5790_v53 = vmul.f32 %v4905_v50, %v4889_v17  ;;  %4713 = vmatpush3.msk.msra.mxu1 %vm364_vm5, %v2594_v51  ;;  %4714 = vmatprep.mubr.msk.f32.mxu1 %vm5130_vm0, %v5131_v1  ;;  %v4056_v51 = vrot.slane %v5769_v39, 1  ;;  %v4045_v50 = vrot.slane %v5771_v43, 2 }
 0xe49   :  { %4811 = vmatprep.subr.bf16.mxu1 %v5129_v0 }
 0xe4a   :  { %4710 = vmatmul.mubr.msk.f32.vlgmr.msra.gmra.mrb[42].mxu0 %vm1397_vm13, %v5790_v53  ;;  %v4105_v28 = vrot.slane %v5790_v53, 2  ;;  %v4101_v29 = vrot.slane %v5790_v53, 1  ;;  %v4109_v33 = vrot.slane %v5790_v53, 3 }
 0xe4b   :  { %v4907_v55 = vpop.eup %4906  ;;  %4718 = vmatpush3.msk.msra.mxu0 %vm364_vm5, %v2596_v35  ;;  %4719 = vmatprep.mubr.msk.f32.mxu0 %vm5130_vm0, %v5131_v1  ;;  %v4049_v35 = vrot.slane %v5771_v43, 3 }
 0xe4c   :  { %v4909_v57 = vpop.eup %4908  ;;  %v5802_v58 = vmul.f32 %v4907_v55, %v5741_v19 }
 0xe4d   :  { %v5805_v59 = vmul.f32 %v4909_v57, %v5743_v20  ;;  %v4064_v57 = vrot.slane %v5769_v39, 3 }
 0xe4e   :  { %4720 = vmatmul.mubr.msk.f32.vlgmr.msra.gmra.mrb[44].mxu0 %vm1397_vm13, %v5802_v58  ;;  %v4131_v37 = vrot.slane %v5802_v58, 1  ;;  %v4135_v46 = vrot.slane %v5802_v58, 2  ;;  %v4139_v55 = vrot.slane %v5802_v58, 3 }
 0xe4f   :  { %4715 = vmatmul.mubr.msk.f32.vlgmr.msra.gmra.mrb[34].mxu1 %vm1397_vm13, %v5805_v59  ;;  %v4116_v31 = vrot.slane %v5805_v59, 1  ;;  %v4120_v32 = vrot.slane %v5805_v59, 2  ;;  %v4124_v38 = vrot.slane %v5805_v59, 3 }
 0xe50   :  { %4730 = vmatprep.mubr.msk.f32.mxu1 %vm5130_vm0, %v5131_v1  ;;  %4813 = vmatpush3.bf16.msra.mxu1 %v4812_v3  ;;  %v4090_v3 = vrot.slane %v5782_v47, 2  ;;  %vm2130_vm0 = vcmask 97280  }
 0xe51   :  { %4814 = vmatprep.subr.bf16.mxu1 %v5129_v0 }
 0xe54   :  { %4816 = vmatpush3.bf16.msra.mxu1 %v4815_v9  ;;  %v2238_v9 = vrot.slane %v5561_v52, 1 }
 0xebd   :  { %v3364_v5 = vpop.f32.mrb[28].mxu1 }
 0xebe   :  { %v4686_v60 = vpop.f32.mrb[29].mxu1 }
 0xebf   :  { %v4086_v60 = vrot.slane %v5782_v47, 1 }
 0xf10   :  { %v3439_v61 = vpop.f32.mrb[38].mxu0 }
 0xf11   :  { %v4691_v63 = vpop.f32.mrb[39].mxu0 }
 0xf12   :  { %v2223_v63 = vrot.slane %v5586_v48, 1 }
 0xf15   :  { %v3589_v7 = vpop.f32.mrb[40].mxu0 }
 0xf16   :  { %v3514_v10 = vpop.f32.mrb[30].mxu1  ;;  %v4701_v11 = vpop.f32.mrb[41].mxu0 }
 0xf17   :  { %v4696_v12 = vpop.f32.mrb[31].mxu1  ;;  %v4094_v11 = vrot.slane %v5782_v47, 3 }
 0xf18   :  { %v2231_v12 = vrot.slane %v5586_v48, 3 }
 0xf1a   :  { %v3664_v13 = vpop.f32.mrb[32].mxu1 }
 0xf1b   :  { %v3894_v1 = vrot.slane %v3664_v13, 4  ;;  %v4706_v14 = vpop.f32.mrb[33].mxu1  ;;  %v2147_v13 = vrot.slane %v5568_v54, 1 }
 0xf1c   :  { %v2242_v14 = vrot.slane %v5561_v52, 2 }
 0xf1d   :  { %v3739_v15 = vpop.f32.mrb[42].mxu0  ;;  %v5815_v16 = vsel %vm364_vm5, %v3364_v5, %v3894_v1  ;;  %v4060_v5 = vrot.slane %v5769_v39, 2  ;;  %v4015_v1 = vrot.slane %v5753_v26, 2 }
 0xf1e   :  { %v3898_v17 = vrot.slane %v3739_v15, 4  ;;  %v4711_v18 = vpop.f32.mrb[43].mxu0  ;;  %v2140_v15 = vrot.slane %v5538_v40, 3 }
 0xf1f   :  { %v4019_v18 = vrot.slane %v5753_v26, 3 }
 0xf20   :  { %v3900_v19 = vsel %vm364_vm5, %v3439_v61, %v3898_v17  ;;  %v2208_v61 = vrot.slane %v5554_v49, 1  ;;  %v2162_v17 = vrot.slane %v5546_v45, 1 }
 0xf21   :  { %3910 = vrot.lane.b32.xlu1 %v3900_v19, %s5122_s17  ;;  %v3889_v20 = vpop.f32.mrb[44].mxu0  ;;  %v2155_v19 = vrot.slane %v5568_v54, 3 }
 0xf22   :  { %v3814_v21 = vpop.f32.mrb[34].mxu1  ;;  %v3906_v22 = vrot.slane %v3889_v20, 4  ;;  %v4721_v23 = vpop.f32.mrb[45].mxu0 }
 0xf23   :  { %v3902_v0 = vrot.slane %v3814_v21, 4  ;;  %v4716_v24 = vpop.f32.mrb[35].mxu1 }
 0xf24   :  { %v3908_v25 = vsel %vm364_vm5, %v3589_v7, %v3906_v22  ;;  %v4011_v7 = vrot.slane %v5753_v26, 1 }
 0xf25   :  { %v3904_v27 = vsel %vm364_vm5, %v3514_v10, %v3902_v0  ;;  %3918 = vrot.lane.b32.xlu1 %v3908_v25, %s5138_s28  ;;  %v2136_v10 = vrot.slane %v5538_v40, 2 }
 0xf26   :  { %3914 = vrot.lane.b32.xlu0 %v3904_v27, %s5139_s9 }
 0xf29   :  { %4106 = vrot.lane.b32.xlu1 %v4105_v28, %s5122_s17 }
 0xf2a   :  { %4102 = vrot.lane.b32.xlu0 %v4101_v29, %s5140_s12 }
 0xf2d   :  { %4027 = vrot.lane.b32.xlu1 %v4026_v30, %s5140_s12 }
 0xf2e   :  { %4117 = vrot.lane.b32.xlu0 %v4116_v31, %s5140_s12 }
 0xf31   :  { %4121 = vrot.lane.b32.xlu1 %v4120_v32, %s5122_s17 }
 0xf32   :  { %4110 = vrot.lane.b32.xlu0 %v4109_v33, %s5141_s18 }
 0xf35   :  { %4031 = vrot.lane.b32.xlu1 %v4030_v8, %s5122_s17 }
 0xf36   :  { %4132 = vrot.lane.b32.xlu0 %v4131_v37, %s5140_s12 }
 0xf39   :  { %4125 = vrot.lane.b32.xlu1 %v4124_v38, %s5141_s18  ;;  %v2151_v38 = vrot.slane %v5568_v54, 2 }
 0xf3a   :  { %4042 = vrot.lane.b32.xlu0 %v4041_v42, %s5140_s12 }
 0xf3d   :  { %4035 = vrot.lane.b32.xlu1 %v4034_v44, %s5141_s18 }
 0xf3e   :  { %4136 = vrot.lane.b32.xlu0 %v4135_v46, %s5122_s17  ;;  %v2246_v46 = vrot.slane %v5561_v52, 3 }
 0xf41   :  { %4057 = vrot.lane.b32.xlu1 %v4056_v51, %s5140_s12 }
 0xf42   :  { %4046 = vrot.lane.b32.xlu0 %v4045_v50, %s5122_s17 }
 0xf45   :  { %4050 = vrot.lane.b32.xlu1 %v4049_v35, %s5141_s18 }
 0xf46   :  { %4140 = vrot.lane.b32.xlu0 %v4139_v55, %s5141_s18 }
 0xf49   :  { %4065 = vrot.lane.b32.xlu1 %v4064_v57, %s5141_s18 }
 0xf4a   :  { %4061 = vrot.lane.b32.xlu0 %v4060_v5, %s5122_s17 }
 0xf4d   :  { %4087 = vrot.lane.b32.xlu1 %v4086_v60, %s5140_s12 }
 0xf4e   :  { %2209 = vrot.lane.b32.xlu0 %v2208_v61, %s5140_s12  ;;  %v2170_v61 = vrot.slane %v5546_v45, 3 }
 0xf51   :  { %2224 = vrot.lane.b32.xlu1 %v2223_v63, %s5140_s12 }
 0xf52   :  { %2213 = vrot.lane.b32.xlu0 %v2212_v62, %s5122_s17 }
 0xf55   :  { %2133 = vrot.lane.b32.xlu1 %v2132_v2, %s5140_s12 }
 0xf56   :  { %4091 = vrot.lane.b32.xlu0 %v4090_v3, %s5122_s17 }
 0xf59   :  { %2228 = vrot.lane.b32.xlu1 %v2227_v4, %s5122_s17 }
 0xf5a   :  { %2217 = vrot.lane.b32.xlu0 %v2216_v6, %s5141_s18 }
 0xf5d   :  { %4012 = vrot.lane.b32.xlu1 %v4011_v7, %s5140_s12 }
 0xf5e   :  { %2239 = vrot.lane.b32.xlu0 %v2238_v9, %s5140_s12 }
 0xf61   :  { %2137 = vrot.lane.b32.xlu1 %v2136_v10, %s5122_s17 }
 0xf62   :  { %4095 = vrot.lane.b32.xlu0 %v4094_v11, %s5141_s18 }
 0xf65   :  { %2232 = vrot.lane.b32.xlu1 %v2231_v12, %s5141_s18 }
 0xf66   :  { %2148 = vrot.lane.b32.xlu0 %v2147_v13, %s5140_s12 }
 0xf69   :  { %4016 = vrot.lane.b32.xlu1 %v4015_v1, %s5122_s17 }
 0xf6a   :  { %2243 = vrot.lane.b32.xlu0 %v2242_v14, %s5122_s17 }
 0xf6d   :  { %2141 = vrot.lane.b32.xlu1 %v2140_v15, %s5141_s18 }
 0xf71   :  { %2163 = vrot.lane.b32.xlu1 %v2162_v17, %s5140_s12  ;;  %v2197_v17 = vrot.slane %v5578_v56, 2 }
 0xf75   :  { %4020 = vrot.lane.b32.xlu1 %v4019_v18, %s5141_s18 }
 0xf79   :  { %2156 = vrot.lane.b32.xlu1 %v2155_v19, %s5141_s18  ;;  %v2116_v19 = vrot.slane %v5530_v34, 1 }
 0xf93   :  { %v3911_v20 = vpop.permute.xlu1 %3910 }
 0xf94   :  { %v3921_v22 = vsel %vm696_vm10, %v5815_v16, %v3911_v20  ;;  %v2201_v20 = vrot.slane %v5578_v56, 3 }
 0xf97   :  { %v3919_v21 = vpop.permute.xlu1 %3918 }
 0xf98   :  { %v3915_v23 = vpop.permute.xlu0 %3914 }
 0xf99   :  { %v3922_v0 = vsel %vm2027_vm14, %v3921_v22, %v3915_v23 }
 0xf9a   :  { %v3923_v24 = vsel %vm2029_vm15, %v3922_v0, %v3919_v21  ;;  %v2120_v0 = vrot.slane %v5530_v34, 2 }
 0xf9b   :  { %4731 = vmatmul.mubr.msk.f32.vlgmr.msra.gmra.mrb[36].mxu1 %vm377_vm9, %v3923_v24  ;;  %v4107_v25 = vpop.permute.xlu1 %4106 }
 0xf9c   :  { %v4103_v27 = vpop.permute.xlu0 %4102 }
 0xf9d   :  { %v4113_v30 = vsel %vm1397_vm13, %v5790_v53, %v4103_v27 }
 0xf9e   :  { %v4114_v32 = vsel %vm696_vm10, %v4113_v30, %v4107_v25  ;;  %v2124_v30 = vrot.slane %v5530_v34, 3 }
 0xf9f   :  { %v4028_v28 = vpop.permute.xlu1 %4027 }
 0xfa0   :  { %v4118_v29 = vpop.permute.xlu0 %4117  ;;  %v4038_v53 = vsel %vm1397_vm13, %v5761_v36, %v4028_v28 }
 0xfa1   :  { %v4128_v51 = vsel %vm1397_vm13, %v5805_v59, %v4118_v29  ;;  %v2166_v59 = vrot.slane %v5546_v45, 2 }
 0xfa3   :  { %v4122_v31 = vpop.permute.xlu1 %4121 }
 0xfa4   :  { %v4111_v33 = vpop.permute.xlu0 %4110  ;;  %v4129_v55 = vsel %vm696_vm10, %v4128_v51, %v4122_v31 }
 0xfa5   :  { %v4115_v16 = vsel %vm2130_vm0, %v4114_v32, %v4111_v33 }
 0xfa6   :  { %4147 = vrot.lane.b32.xlu0 %v4115_v16, %s5139_s9 }
 0xfa7   :  { %v4032_v8 = vpop.permute.xlu1 %4031 }
 0xfa8   :  { %v4133_v37 = vpop.permute.xlu0 %4132  ;;  %v4039_v50 = vsel %vm696_vm10, %v4038_v53, %v4032_v8 }
 0xfa9   :  { %v4143_v62 = vsel %vm1397_vm13, %v5802_v58, %v4133_v37 }
 0xfaa   :  { %2152 = vrot.lane.b32.xlu0 %v2151_v38, %s5122_s17 }
 0xfab   :  { %v4126_v42 = vpop.permute.xlu1 %4125 }
 0xfac   :  { %v4043_v44 = vpop.permute.xlu0 %4042  ;;  %v4130_v60 = vsel %vm2130_vm0, %v4129_v55, %v4126_v42 }
 0xfad   :  { %v4053_v7 = vsel %vm1397_vm13, %v5771_v43, %v4043_v44  ;;  %v2193_v43 = vrot.slane %v5578_v56, 1 }
 0xfae   :  { %2247 = vrot.lane.b32.xlu0 %v2246_v46, %s5141_s18 }
 0xfaf   :  { %v4036_v35 = vpop.permute.xlu1 %4035 }
 0xfb0   :  { %v4137_v57 = vpop.permute.xlu0 %4136  ;;  %v4040_v5 = vsel %vm2130_vm0, %v4039_v50, %v4036_v35 }
 0xfb1   :  { %4072 = vrot.lane.b32.xlu1 %v4040_v5, %s5139_s9  ;;  %v4144_v3 = vsel %vm696_vm10, %v4143_v62, %v4137_v57 }
 0xfb2   :  { %4151 = vrot.lane.b32.xlu0 %v4130_v60, %s5132_s21 }
 0xfb3   :  { %v4058_v36 = vpop.permute.xlu1 %4057 }
 0xfb4   :  { %v4047_v63 = vpop.permute.xlu0 %4046  ;;  %v4068_v11 = vsel %vm1397_vm13, %v5769_v39, %v4058_v36 }
 0xfb5   :  { %2171 = vrot.lane.b32.xlu1 %v2170_v61, %s5141_s18  ;;  %v4054_v10 = vsel %vm696_vm10, %v4053_v7, %v4047_v63 }
 0xfb6   :  { %2167 = vrot.lane.b32.xlu0 %v2166_v59, %s5122_s17 }
 0xfb7   :  { %v4051_v2 = vpop.permute.xlu1 %4050 }
 0xfb8   :  { %v4141_v4 = vpop.permute.xlu0 %4140  ;;  %v4055_v58 = vsel %vm2130_vm0, %v4054_v10, %v4051_v2 }
 0xfb9   :  { %v4145_v6 = vsel %vm2130_vm0, %v4144_v3, %v4141_v4 }
 0xfba   :  { %4155 = vrot.lane.b32.xlu0 %v4145_v6, %s5142_s3 }
 0xfbb   :  { %v4066_v9 = vpop.permute.xlu1 %4065 }
 0xfbc   :  { %v4062_v12 = vpop.permute.xlu0 %4061 }
 0xfbd   :  { %v4069_v13 = vsel %vm696_vm10, %v4068_v11, %v4062_v12 }
 0xfbe   :  { %v4070_v1 = vsel %vm2130_vm0, %v4069_v13, %v4066_v9  ;;  %4076 = vrot.lane.b32.xlu0 %v4055_v58, %s5132_s21 }
 0xfbf   :  { %4080 = vrot.lane.b32.xlu1 %v4070_v1, %s5142_s3  ;;  %v4088_v14 = vpop.permute.xlu1 %4087 }
 0xfc0   :  { %v2210_v15 = vpop.permute.xlu0 %2209  ;;  %v4098_v22 = vsel %vm1397_vm13, %v5782_v47, %v4088_v14 }
 0xfc1   :  { %v2220_v25 = vsel %vm1397_vm13, %v5554_v49, %v2210_v15 }
 0xfc2   :  { %2194 = vrot.lane.b32.xlu0 %v2193_v43, %s5140_s12 }
 0xfc3   :  { %2198 = vrot.lane.b32.xlu1 %v2197_v17, %s5122_s17  ;;  %v2225_v39 = vpop.permute.xlu1 %2224 }
 0xfc4   :  { %v2214_v18 = vpop.permute.xlu0 %2213  ;;  %v2235_v33 = vsel %vm1397_vm13, %v5586_v48, %v2225_v39 }
 0xfc5   :  { %v2221_v28 = vsel %vm696_vm10, %v2220_v25, %v2214_v18 }
 0xfc6   :  { %2117 = vrot.lane.b32.xlu0 %v2116_v19, %s5140_s12 }
 0xfc7   :  { %2202 = vrot.lane.b32.xlu1 %v2201_v20, %s5141_s18  ;;  %v2134_v21 = vpop.permute.xlu1 %2133  ;;  %v4296_v20 = vld [vmem:[%s6058_s14 + $0x1] ss:$0 sm:$0xff] }
 0xfc8   :  { %v4092_v23 = vpop.permute.xlu0 %4091  ;;  %v2144_v44 = vsel %vm1397_vm13, %v5538_v40, %v2134_v21 }
 0xfc9   :  { %v4099_v24 = vsel %vm696_vm10, %v4098_v22, %v4092_v23 }
 0xfca   :  { %2121 = vrot.lane.b32.xlu0 %v2120_v0, %s5122_s17 }
 0xfcb   :  { %v2229_v27 = vpop.permute.xlu1 %2228 }
 0xfcc   :  { %v2218_v29 = vpop.permute.xlu0 %2217  ;;  %v2236_v16 = vsel %vm696_vm10, %v2235_v33, %v2229_v27 }
 0xfcd   :  { %v2222_v31 = vsel %vm2130_vm0, %v2221_v28, %v2218_v29 }
 0xfce   :  { %2125 = vrot.lane.b32.xlu0 %v2124_v30, %s5141_s18  ;;  %2254 = vrot.lane.b32.xlu1 %v2222_v31, %s5139_s9 }
 0xfcf   :  { %v4013_v47 = vpop.permute.xlu1 %4012 }
 0xfd0   :  { %v4023_v37 = vsel %vm1397_vm13, %v5753_v26, %v4013_v47  ;;  %v2240_v51 = vpop.permute.xlu0 %2239 }
 0xfd1   :  { %v2250_v59 = vsel %vm1397_vm13, %v5561_v52, %v2240_v51 }
 0xfd3   :  { %v2138_v32 = vpop.permute.xlu1 %2137 }
 0xfd4   :  { %v2145_v46 = vsel %vm696_vm10, %v2144_v44, %v2138_v32  ;;  %v4096_v50 = vpop.permute.xlu0 %4095 }
 0xfd5   :  { %v4100_v11 = vsel %vm2130_vm0, %v4099_v24, %v4096_v50 }
 0xfd7   :  { %v2233_v49 = vpop.permute.xlu1 %2232 }
 0xfd8   :  { %v2237_v8 = vsel %vm2130_vm0, %v2236_v16, %v2233_v49  ;;  %v2149_v35 = vpop.permute.xlu0 %2148 }
 0xfd9   :  { %2258 = vrot.lane.b32.xlu1 %v2237_v8, %s5132_s21  ;;  %v2159_v60 = vsel %vm1397_vm13, %v5568_v54, %v2149_v35 }
 0xfdb   :  { %v4017_v38 = vpop.permute.xlu1 %4016 }
 0xfdc   :  { %v4024_v42 = vsel %vm696_vm10, %v4023_v37, %v4017_v38  ;;  %v2244_v57 = vpop.permute.xlu0 %2243 }
 0xfdd   :  { %v2251_v62 = vsel %vm696_vm10, %v2250_v59, %v2244_v57 }
 0xfdf   :  { %v2142_v53 = vpop.permute.xlu1 %2141 }
 0xfe0   :  { %v2146_v48 = vsel %vm2130_vm0, %v2145_v46, %v2142_v53 }
 0xfe1   :  { %2178 = vrot.lane.b32.xlu0 %v2146_v48, %s5139_s9 }
 0xfe3   :  { %v2164_v55 = vpop.permute.xlu1 %2163 }
 0xfe4   :  { %v2174_v7 = vsel %vm1397_vm13, %v5546_v45, %v2164_v55 }
 0xfe7   :  { %v4021_v5 = vpop.permute.xlu1 %4020 }
 0xfe8   :  { %v4025_v14 = vsel %vm2130_vm0, %v4024_v42, %v4021_v5 }
 0xfeb   :  { %v2157_v61 = vpop.permute.xlu1 %2156 }
0x1018   :  { %v4148_v26 = vpop.permute.xlu0 %4147 }
0x1019   :  { %v4158_v12 = vsel %vm2027_vm14, %v4100_v11, %v4148_v26 }
0x101c   :  { %v2153_v36 = vpop.permute.xlu0 %2152 }
0x101d   :  { %v2160_v40 = vsel %vm696_vm10, %v2159_v60, %v2153_v36 }
0x101e   :  { %v2161_v63 = vsel %vm2130_vm0, %v2160_v40, %v2157_v61 }
0x101f   :  { %2182 = vrot.lane.b32.xlu0 %v2161_v63, %s5132_s21 }
0x1020   :  { %v2248_v2 = vpop.permute.xlu0 %2247 }
0x1021   :  { %v2252_v3 = vsel %vm2130_vm0, %v2251_v62, %v2248_v2 }
0x1022   :  { %2262 = vrot.lane.b32.xlu1 %v2252_v3, %s5142_s3 }
0x1023   :  { %v4073_v4 = vpop.permute.xlu1 %4072 }
0x1024   :  { %v4152_v54 = vpop.permute.xlu0 %4151  ;;  %v4083_v45 = vsel %vm2027_vm14, %v4025_v14, %v4073_v4 }
0x1025   :  { %v4159_v13 = vsel %vm377_vm9, %v4158_v12, %v4152_v54 }
0x1027   :  { %v2172_v6 = vpop.permute.xlu1 %2171 }
0x1028   :  { %v2168_v9 = vpop.permute.xlu0 %2167 }
0x1029   :  { %v2175_v10 = vsel %vm696_vm10, %v2174_v7, %v2168_v9 }
0x102a   :  { %v2176_v52 = vsel %vm2130_vm0, %v2175_v10, %v2172_v6 }
0x102b   :  { %2186 = vrot.lane.b32.xlu1 %v2176_v52, %s5142_s3 }
0x102c   :  { %v4156_v58 = vpop.permute.xlu0 %4155 }
0x102d   :  { %v4160_v1 = vsel %vm2191_vm1, %v4159_v13, %v4156_v58 }
0x102e   :  { %v4162_v43 = vrot.slane %v4160_v1, 7 }
0x1030   :  { %v4077_v15 = vpop.permute.xlu0 %4076 }
0x1031   :  { %v4084_v17 = vsel %vm377_vm9, %v4083_v45, %v4077_v15  ;;  %v4081_v39 = vpop.permute.xlu1 %4080 }
0x1032   :  { %v4085_v18 = vsel %vm2191_vm1, %v4084_v17, %v4081_v39 }
0x1033   :  { %v4164_v19 = vsel %vm358_vm2, %v4085_v18, %v4162_v43 }
0x1034   :  { %4167 = vrot.lane.b32.xlu0 %v4164_v19, %s5134_s29 }
0x106e   :  { %v4006_v21 = vpop.f32.mrb[36].mxu1 }
0x106f   :  { %v4007_v22 = vadd.f32 %v4296_v20, %v4006_v21  ;;  %v4732_v23 = vpop.f32.mrb[37].mxu1 }
0x1071   :  { %v4010_v0 = vadd.f32 %v4007_v22, %v5612_v41 }
0x1073   :  { %4165 = vst.msk [vmem:[#allocation14] sm:$0xff] %vm377_vm9, %v4010_v0 }
0x1074   :  { %5075 = shalt.err (!%p5072_p4)
}
0x1075   :  { %s5076_s14 = scalar_lea.hbm %s6059_s15, 128 }
0x1076   :  { %p5077_p5 = scmp.ne.s32.totalorder %s6059_s15, %s5076_s14  ;;  %p5080_p6 = scmp.lt.u32.totalorder %s5076_s14, %s6059_s15 }
0x1078   :  { %p5082_p7 = pnand %p5080_p6, %p5077_p5 }
0x107a   :  { %5085 = shalt.err (!%p5082_p7)
}
0x107b   :  { %4182 = dma.vmem_to_hbm [thread:$0]  %s4180_s19, 128, %s6059_s15, [#allocation4]   ;;  %v2195_v41 = vpop.permute.xlu0 %2194  ;;  %v2199_v24 = vpop.permute.xlu1 %2198  ;;  %vm4170_vm3 = vcmask 523264  }
0x107c   :  { %v2205_v47 = vsel %vm1397_vm13, %v5578_v56, %v2195_v41  ;;  %s5144_s15 = smov [#allocation15]  }
0x107d   :  { %v2206_v16 = vsel %vm696_vm10, %v2205_v47, %v2199_v24  ;;  %s4189_s9 = sshll.u32 %s5144_s15, 4  ;;  %s4190_s9 = int_to_ptr.vmem [resolvable:$true] %s4189_s9 }
0x107e   :  { %s5086_s26 = scalar_lea.vmem %s4190_s9, 32  ;;  %p5091_p9 = scmp.lt.s32.totalorder %s4190_s9, %s4190_s9 }
0x107f   :  { %v2118_v25 = vpop.permute.xlu0 %2117  ;;  %v2203_v27 = vpop.permute.xlu1 %2202  ;;  %p5087_p8 = scmp.ne.s32.totalorder %s4190_s9, %s5086_s26  ;;  %p5092_p10 = scmp.lt.s32.totalorder %s5086_s26, %s5086_s26 }
0x1080   :  { %v2128_v49 = vsel %vm1397_vm13, %v5530_v34, %v2118_v25  ;;  %v2207_v8 = vsel %vm2130_vm0, %v2206_v16, %v2203_v27 }
0x1081   :  { %p5093_p11 = por %p5092_p10, %p5091_p9 }
0x1083   :  { %v2122_v28 = vpop.permute.xlu0 %2121  ;;  %v2255_v29 = vpop.permute.xlu1 %2254  ;;  %p5094_p12 = pnand %p5093_p11, %p5087_p8 }
0x1084   :  { %v2129_v37 = vsel %vm696_vm10, %v2128_v49, %v2122_v28  ;;  %v2265_v38 = vsel %vm2027_vm14, %v2207_v8, %v2255_v29 }
0x1087   :  { %v2126_v30 = vpop.permute.xlu0 %2125  ;;  %v2259_v31 = vpop.permute.xlu1 %2258 }
0x1088   :  { %v2131_v44 = vsel %vm2130_vm0, %v2129_v37, %v2126_v30  ;;  %v2266_v46 = vsel %vm377_vm9, %v2265_v38, %v2259_v31 }
0x108b   :  { %v2179_v32 = vpop.permute.xlu0 %2178 }
0x108c   :  { %v2189_v56 = vsel %vm2027_vm14, %v2131_v44, %v2179_v32 }
0x1091   :  { %v2183_v42 = vpop.permute.xlu0 %2182 }
0x1092   :  { %v2190_v51 = vsel %vm377_vm9, %v2189_v56, %v2183_v42 }
0x1094   :  { %v2263_v33 = vpop.permute.xlu1 %2262 }
0x1095   :  { %v2267_v48 = vsel %vm2191_vm1, %v2266_v46, %v2263_v33 }
0x1096   :  { %v2269_v50 = vrot.slane %v2267_v48, 7 }
0x109d   :  { %v2187_v53 = vpop.permute.xlu1 %2186 }
0x109e   :  { %v2192_v34 = vsel %vm2191_vm1, %v2190_v51, %v2187_v53 }
0x109f   :  { %v2271_v55 = vsel %vm358_vm2, %v2192_v34, %v2269_v50 }
0x10a6   :  { %v4168_v35 = vpop.permute.xlu0 %4167 }
0x10a7   :  { %v4171_v57 = vsel %vm4170_vm3, %v2271_v55, %v4168_v35 }
0x10a8   :  { %4172 = vst [vmem:[#allocation15] sm:$0x3] %v4171_v57 }
0x10a9   :  { %5097 = shalt.err (!%p5094_p12)
}
0x10aa   :  { %s6068_s11 = sld [smem:[#allocation24_spill]] }
0x10b0   :  { %s5098_s7 = scalar_lea.hbm %s6068_s11, 32 }
0x10b1   :  { %p5099_p13 = scmp.ne.s32.totalorder %s6068_s11, %s5098_s7  ;;  %p5102_p0 = scmp.lt.u32.totalorder %s5098_s7, %s6068_s11 }
0x10b3   :  { %p5104_p1 = pnand %p5102_p0, %p5099_p13 }
0x10b5   :  { %5107 = shalt.err (!%p5104_p1)
}
0x10b6   :  { %4192 = dma.vmem_to_hbm [thread:$0]  %s4190_s9, 32, %s6068_s11, [#allocation16]  }
0x10b7   :  { %5116 = dma.done.wait [#allocation4], 128  }
0x10b8   :  { %5117 = vsyncadd [#allocation4], 4294967168 }
0x10b9   :  { %5118 = dma.done.wait [#allocation16], 32  }
0x10ba   :  { %5119 = vsyncadd [#allocation16], 4294967264 }
0x10bb   :  { %4199 = vsyncpa [#allocation3], 1 }
0x10bc   :  { %4200 = vsyncpa [#allocation6], 1 }
0x10bd   :  { %4201 = vsyncpa [#allocation9], 1 }
0x10be   :  { %4202 = vsyncpa [#allocation12], 1 }
0x10bf   :  { %4203 = vsyncpa [#allocation4], 1 }
0x10c0   :  { %4204 = vsyncpa [#allocation16], 1 }

</bundles_post_ra>
